<compile_context>
chip_gen: v7x
topology: tpu7x:2x2x1
jax: 0.10.0
libtpu: 0.0.40
codegen_flags: <defaults>
</compile_context>

<pallas_src>
import functools

import jax
import jax.numpy as jnp
from jax.experimental import pallas as pl
from jax.experimental.pallas import tpu as pltpu

BN_EPS = 1e-5
LANE = 128                         # pad channel / contraction dims to this
ROW_TILE = 512                     # spatial-row tile (>=256 keeps MXU streams long)
MATMUL_DTYPE = jnp.bfloat16        # MXU-native operands; accumulation is f32
VMEM_LIMIT_BYTES = 32 * 1024 * 1024  # comfortably inside v7x's 64 MiB VMEM


def _round_up(x, m):
    return (x + m - 1) // m * m


# ------------------------------------------------------------------ kernels --
def _make_phase1_kernel(n_in):
    """Tiled matmul + per-channel sum / sum-of-squares accumulation."""

    def kernel(*refs):
        cols_refs = refs[:n_in]
        w_refs = refs[n_in:2 * n_in]
        y_ref, sum_ref, sq_ref = refs[2 * n_in:2 * n_in + 3]

        @pl.when(pl.program_id(0) == 0)
        def _():
            sum_ref[...] = jnp.zeros_like(sum_ref)
            sq_ref[...] = jnp.zeros_like(sq_ref)

        y = jnp.dot(cols_refs[0][...], w_refs[0][...],
                    preferred_element_type=jnp.float32)
        for c_ref, w_ref in zip(cols_refs[1:], w_refs[1:]):
            y = y + jnp.dot(c_ref[...], w_ref[...],
                            preferred_element_type=jnp.float32)
        y_ref[...] = y
        # Padded rows/channels are exactly zero (no bias), so they contribute
        # nothing to the statistics; the true divisor N is applied in phase 2.
        sum_ref[...] += jnp.sum(y, axis=0, keepdims=True)
        sq_ref[...] += jnp.sum(y * y, axis=0, keepdims=True)

    return kernel


def _make_phase2_kernel(n_true, has_residual):
    """Normalize + affine + ReLU (+ fused residual add)."""
    inv_n = 1.0 / float(n_true)

    def kernel(*refs):
        if has_residual:
            y_ref, sum_ref, sq_ref, g_ref, b_ref, res_ref, o_ref = refs
        else:
            y_ref, sum_ref, sq_ref, g_ref, b_ref, o_ref = refs
            res_ref = None
        mean = sum_ref[...] * inv_n                        # (1, Cp)
        var = sq_ref[...] * inv_n - mean * mean            # biased variance
        var = jnp.maximum(var, 0.0)                        # guard fp cancellation
        scale = g_ref[...] * jax.lax.rsqrt(var + BN_EPS)   # gamma folded in
        shift = b_ref[...] - mean * scale
        out = jnp.maximum(y_ref[...] * scale + shift, 0.0)
        if res_ref is not None:
            out = out + res_ref[...]
        o_ref[...] = out

    return kernel


# --------------------------------------------------------------------- glue --
def _im2col_3x3(x, dilation):
    """NHWC -> (B*H*W, 9*C) patches for a 'same' 3x3 conv with given dilation."""
    B, H, W, C = x.shape
    d = dilation
    xp = jnp.pad(x, ((0, 0), (d, d), (d, d), (0, 0)))
    taps = [xp[:, ky * d:ky * d + H, kx * d:kx * d + W, :]
            for ky in range(3) for kx in range(3)]
    cols = jnp.concatenate(taps, axis=-1)   # (B,H,W,9C); (ky,kx,cin) minor order
    return cols.reshape(B * H * W, 9 * C)


def conv_bn_relu(xs, w, b, gamma, beta, dilation=1, residual=None):
    """ConvBlock: Conv2d(3x3, pad=dilation, dilation) + BN(train) + ReLU.

    xs: one NHWC tensor or a list of NHWC tensors whose channel-concat is the
        conv input (decoder skip connections are passed un-concatenated).
    w:  (Cout, sum(Cin_i), 3, 3) PyTorch layout.
    The conv bias `b` is ignored: training-mode BN subtracts the per-channel
    mean immediately after the conv, so the bias cancels exactly.
    """
    del b
    if not isinstance(xs, (list, tuple)):
        xs = [xs]
    B, H, W_sp, _ = xs[0].shape
    Cout = w.shape[0]
    N = B * H * W_sp
    Cp = _round_up(Cout, LANE)
    TN = min(ROW_TILE, _round_up(N, 8))
    N_pad = _round_up(N, TN)
    nt = N_pad // TN

    cols_list, w_list = [], []
    c_off = 0
    for x in xs:
        Cin = x.shape[-1]
        K = 9 * Cin
        Kp = _round_up(K, LANE)
        cols = _im2col_3x3(x, dilation)                                  # (N, K)
        cols = jnp.pad(cols, ((0, N_pad - N), (0, Kp - K)))
        cols_list.append(cols.astype(MATMUL_DTYPE))
        # (Cout,Cin,kh,kw) -> (kh,kw,Cin,Cout) -> (K, Cout): matches im2col order
        w2d = jnp.transpose(w[:, c_off:c_off + Cin], (2, 3, 1, 0)).reshape(K, Cout)
        w2d = jnp.pad(w2d, ((0, Kp - K), (0, Cp - Cout)))
        w_list.append(w2d.astype(MATMUL_DTYPE))
        c_off += Cin
    n_in = len(xs)

    # Phase 1: matmul + BN partial statistics (stats accumulate -> "arbitrary").
    y, ch_sum, ch_sqsum = pl.pallas_call(
        _make_phase1_kernel(n_in),
        out_shape=(jax.ShapeDtypeStruct((N_pad, Cp), jnp.float32),
                   jax.ShapeDtypeStruct((1, Cp), jnp.float32),
                   jax.ShapeDtypeStruct((1, Cp), jnp.float32)),
        grid=(nt,),
        in_specs=([pl.BlockSpec((TN, c.shape[1]), lambda i: (i, 0))
                   for c in cols_list]
                  + [pl.BlockSpec(wl.shape, lambda i: (0, 0)) for wl in w_list]),
        out_specs=(pl.BlockSpec((TN, Cp), lambda i: (i, 0)),
                   pl.BlockSpec((1, Cp), lambda i: (0, 0)),
                   pl.BlockSpec((1, Cp), lambda i: (0, 0))),
        compiler_params=pltpu.CompilerParams(
            dimension_semantics=("arbitrary",),
            vmem_limit_bytes=VMEM_LIMIT_BYTES),
    )(*cols_list, *w_list)

    # Phase 2: normalize + affine + ReLU (+ residual); tiles independent.
    g2d = jnp.pad(gamma.reshape(1, Cout).astype(jnp.float32),
                  ((0, 0), (0, Cp - Cout)))
    be2d = jnp.pad(beta.reshape(1, Cout).astype(jnp.float32),
                   ((0, 0), (0, Cp - Cout)))
    args = [y, ch_sum, ch_sqsum, g2d, be2d]
    in_specs = [pl.BlockSpec((TN, Cp), lambda i: (i, 0)),
                pl.BlockSpec((1, Cp), lambda i: (0, 0)),
                pl.BlockSpec((1, Cp), lambda i: (0, 0)),
                pl.BlockSpec((1, Cp), lambda i: (0, 0)),
                pl.BlockSpec((1, Cp), lambda i: (0, 0))]
    if residual is not None:
        res2d = jnp.pad(residual.reshape(N, Cout),
                        ((0, N_pad - N), (0, Cp - Cout)))
        args.append(res2d)
        in_specs.append(pl.BlockSpec((TN, Cp), lambda i: (i, 0)))

    out = pl.pallas_call(
        _make_phase2_kernel(N, residual is not None),
        out_shape=jax.ShapeDtypeStruct((N_pad, Cp), jnp.float32),
        grid=(nt,),
        in_specs=in_specs,
        out_specs=pl.BlockSpec((TN, Cp), lambda i: (i, 0)),
        compiler_params=pltpu.CompilerParams(
            dimension_semantics=("parallel",),
            vmem_limit_bytes=VMEM_LIMIT_BYTES),
    )(*args)

    return out[:N, :Cout].reshape(B, H, W_sp, Cout)


def maxpool2x2_ceil(x):
    """nn.MaxPool2d(kernel_size=2, stride=2, ceil_mode=True) on NHWC."""
    B, H, W, C = x.shape
    Ho, Wo = -(-H // 2), -(-W // 2)
    ph, pw = Ho * 2 - H, Wo * 2 - W
    xp = jnp.pad(x, ((0, 0), (0, ph), (0, pw), (0, 0)),
                 constant_values=-jnp.inf)
    return xp.reshape(B, Ho, 2, Wo, 2, C).max(axis=(2, 4))


def upsample_bilinear(x, Ho, Wo):
    """F.interpolate(mode='bilinear', align_corners=False) on NHWC."""
    # TODO(synk): plain-JAX gather glue; a Pallas version needs a data-dependent
    # row gather (Element-indexed BlockSpec) for little gain at these sizes.
    B, H, W, C = x.shape
    if (H, W) == (Ho, Wo):
        return x

    def src(out_size, in_size):
        scale = in_size / out_size
        d = (jnp.arange(out_size, dtype=jnp.float32) + 0.5) * scale - 0.5
        d = jnp.maximum(d, 0.0)
        i0 = jnp.minimum(jnp.floor(d).astype(jnp.int32), in_size - 1)
        i1 = jnp.minimum(i0 + 1, in_size - 1)
        return i0, i1, d - i0.astype(jnp.float32)

    h0, h1, fh = src(Ho, H)
    w0, w1, fw = src(Wo, W)
    fh_ = fh[None, :, None, None]
    fw_ = fw[None, None, :, None]
    xh = x[:, h0, :, :] * (1.0 - fh_) + x[:, h1, :, :] * fh_        # (B,Ho,W,C)
    return xh[:, :, w0, :] * (1.0 - fw_) + xh[:, :, w1, :] * fw_    # (B,Ho,Wo,C)


# ------------------------------------------------------------------- module --
def init_convblock(key, cin, cout):
    k1, k2, k3, k4 = jax.random.split(key, 4)
    fan_in = cin * 9
    bound = 1.0 / (fan_in ** 0.5)
    w = jax.random.uniform(k1, (cout, cin, 3, 3), jnp.float32, -bound, bound)
    b = jax.random.uniform(k2, (cout,), jnp.float32, -bound, bound)  # unused (BN)
    gamma = 1.0 + 0.1 * jax.random.normal(k3, (cout,), jnp.float32)
    beta = 0.1 * jax.random.normal(k4, (cout,), jnp.float32)
    return (w, b, gamma, beta)


def init_rsu6_params(key, in_ch, mid_ch, out_ch):
    names_shapes = [
        ("enconv1", in_ch, out_ch), ("enconv2", out_ch, mid_ch),
        ("enconv3", mid_ch, mid_ch), ("enconv4", mid_ch, mid_ch),
        ("enconv5", mid_ch, mid_ch), ("enconv6", mid_ch, mid_ch),
        ("enconv7", mid_ch, mid_ch),
        ("deconv1", 2 * mid_ch, mid_ch), ("deconv2", 2 * mid_ch, mid_ch),
        ("deconv3", 2 * mid_ch, mid_ch), ("deconv4", 2 * mid_ch, mid_ch),
        ("deconv5", 2 * mid_ch, out_ch),
    ]
    keys = jax.random.split(key, len(names_shapes))
    return {name: init_convblock(k, ci, co)
            for k, (name, ci, co) in zip(keys, names_shapes)}


def rsu6_forward(x_nchw, params):
    p = params
    x = jnp.transpose(x_nchw, (0, 2, 3, 1))                          # NCHW->NHWC

    out1 = conv_bn_relu(x, *p["enconv1"], dilation=1)
    out2 = conv_bn_relu(out1, *p["enconv2"], dilation=1)
    out2_1 = maxpool2x2_ceil(out2)
    out3 = conv_bn_relu(out2_1, *p["enconv3"], dilation=1)
    out3 = maxpool2x2_ceil(out3)
    out4 = conv_bn_relu(out3, *p["enconv4"], dilation=1)
    out4 = maxpool2x2_ceil(out4)
    out5 = conv_bn_relu(out4, *p["enconv5"], dilation=1)
    out5 = maxpool2x2_ceil(out5)
    out6 = conv_bn_relu(out5, *p["enconv6"], dilation=1)
    out7 = conv_bn_relu(out6, *p["enconv7"], dilation=2)

    # Decoder: torch.cat((a, b), dim=1) is realized as two refs + split weights.
    out8 = conv_bn_relu([out7, out6], *p["deconv1"], dilation=1)
    out8 = upsample_bilinear(out8, out5.shape[1], out5.shape[2])
    out9 = conv_bn_relu([out8, out5], *p["deconv2"], dilation=1)
    out9 = upsample_bilinear(out9, out4.shape[1], out4.shape[2])
    out10 = conv_bn_relu([out9, out4], *p["deconv3"], dilation=1)
    out10 = upsample_bilinear(out10, out3.shape[1], out3.shape[2])
    out11 = conv_bn_relu([out10, out3], *p["deconv4"], dilation=1)
    out11 = upsample_bilinear(out11, out2.shape[1], out2.shape[2])
    # deconv5 + residual add (out12 + out1) fused into the phase-2 kernel
    out = conv_bn_relu([out11, out2], *p["deconv5"], dilation=1, residual=out1)

    return jnp.transpose(out, (0, 3, 1, 2))                          # NHWC->NCHW


# --------------------------------------------------------------------- main --
if __name__ == "__main__":
    key = jax.random.PRNGKey(0)
    kx, kp = jax.random.split(key)

    in_ch, mid_ch, out_ch = 4, 8, 4
    B, H, W = 2, 16, 16

    x = jax.random.normal(kx, (B, in_ch, H, W), jnp.float32)         # NCHW input
    params = init_rsu6_params(kp, in_ch, mid_ch, out_ch)

    fwd = jax.jit(functools.partial(rsu6_forward, params=params))
    out = jax.block_until_ready(fwd(x))

    assert out.shape == (B, out_ch, H, W), out.shape
    assert bool(jnp.all(jnp.isfinite(out)))
    print("KERNEL_OK")
</pallas_src>

<mosaic_0001>
module attributes {stable_mosaic.version = 11 : i64} {
  func.func @kernel(%arg0: i32, %arg1: memref<512x128xbf16, #tpu.memory_space<vmem>>, %arg2: memref<128x128xbf16, #tpu.memory_space<vmem>>, %arg3: memref<512x128xf32, #tpu.memory_space<vmem>>, %arg4: memref<1x128xf32, #tpu.memory_space<vmem>>, %arg5: memref<1x128xf32, #tpu.memory_space<vmem>>) attributes {dimension_semantics = [#tpu.dimension_semantics<arbitrary>], iteration_bounds = array<i64: 1>, scalar_prefetch = 0 : i64, scratch_operands = 0 : i64, tpu.core_type = #tpu.core_type<tc>, window_params = [{transform_indices = @transform_0, window_bounds = array<i64: 512, 128>}, {pipeline_mode = #tpu.pipeline_mode<synchronous>, transform_indices = @transform_1, window_bounds = array<i64: 128, 128>}, {transform_indices = @transform_2, window_bounds = array<i64: 512, 128>}, {pipeline_mode = #tpu.pipeline_mode<synchronous>, transform_indices = @transform_3, window_bounds = array<i64: 1, 128>}, {pipeline_mode = #tpu.pipeline_mode<synchronous>, transform_indices = @transform_4, window_bounds = array<i64: 1, 128>}]} {
    %c0_i32 = arith.constant 0 : i32
    %0 = arith.cmpi eq, %arg0, %c0_i32 : i32
    %1 = arith.extui %0 : i1 to i32
    %c0_i32_0 = arith.constant 0 : i32
    %2 = arith.cmpi ne, %1, %c0_i32_0 : i32
    scf.if %2 {
      %cst_16 = arith.constant 0.000000e+00 : f32
      %18 = vector.broadcast %cst_16 : f32 to vector<1x128xf32>
      %c0_17 = arith.constant 0 : index
      %c0_18 = arith.constant 0 : index
      %19 = vector.load %arg4[%c0_17, %c0_18] : memref<1x128xf32, #tpu.memory_space<vmem>>, vector<1x128xf32>
      tpu.vector_store %arg4[%c0_17, %c0_18], %18 {strides = array<i32>} : memref<1x128xf32, #tpu.memory_space<vmem>>, vector<1x128xf32>,
      %cst_19 = arith.constant 0.000000e+00 : f32
      %20 = vector.broadcast %cst_19 : f32 to vector<1x128xf32>
      %c0_20 = arith.constant 0 : index
      %c0_21 = arith.constant 0 : index
      %21 = vector.load %arg5[%c0_20, %c0_21] : memref<1x128xf32, #tpu.memory_space<vmem>>, vector<1x128xf32>
      tpu.vector_store %arg5[%c0_20, %c0_21], %20 {strides = array<i32>} : memref<1x128xf32, #tpu.memory_space<vmem>>, vector<1x128xf32>,
    } else {
    }
    %c0 = arith.constant 0 : index
    %c0_1 = arith.constant 0 : index
    %3 = vector.load %arg1[%c0, %c0_1] : memref<512x128xbf16, #tpu.memory_space<vmem>>, vector<512x128xbf16>
    %c0_2 = arith.constant 0 : index
    %c0_3 = arith.constant 0 : index
    %4 = vector.load %arg2[%c0_2, %c0_3] : memref<128x128xbf16, #tpu.memory_space<vmem>>, vector<128x128xbf16>
    %cst = arith.constant dense<0.000000e+00> : vector<512x128xf32>
    %5 = tpu.matmul %3, %4, %cst {dimension_numbers = #tpu.dot_dimension_numbers<[1], [0], [0], [1], [0, 0, 1, 1], [], []>} : vector<512x128xbf16>, vector<128x128xbf16>, vector<512x128xf32> -> vector<512x128xf32>
    %c0_4 = arith.constant 0 : index
    %c0_5 = arith.constant 0 : index
    %6 = vector.load %arg3[%c0_4, %c0_5] : memref<512x128xf32, #tpu.memory_space<vmem>>, vector<512x128xf32>
    tpu.vector_store %arg3[%c0_4, %c0_5], %5 {strides = array<i32>} : memref<512x128xf32, #tpu.memory_space<vmem>>, vector<512x128xf32>,
    %c0_6 = arith.constant 0 : index
    %c0_7 = arith.constant 0 : index
    %7 = vector.load %arg4[%c0_6, %c0_7] : memref<1x128xf32, #tpu.memory_space<vmem>>, vector<1x128xf32>
    %cst_8 = arith.constant dense<0.000000e+00> : vector<128xf32>
    %8 = vector.multi_reduction <add>, %5, %cst_8 [0] : vector<512x128xf32> to vector<128xf32>
    %9 = vector.shape_cast %8 : vector<128xf32> to vector<1x128xf32>
    %10 = arith.addf %7, %9 : vector<1x128xf32>
    %c0_9 = arith.constant 0 : index
    %c0_10 = arith.constant 0 : index
    %11 = vector.load %arg4[%c0_9, %c0_10] : memref<1x128xf32, #tpu.memory_space<vmem>>, vector<1x128xf32>
    tpu.vector_store %arg4[%c0_9, %c0_10], %10 {strides = array<i32>} : memref<1x128xf32, #tpu.memory_space<vmem>>, vector<1x128xf32>,
    %c0_11 = arith.constant 0 : index
    %c0_12 = arith.constant 0 : index
    %12 = vector.load %arg5[%c0_11, %c0_12] : memref<1x128xf32, #tpu.memory_space<vmem>>, vector<1x128xf32>
    %13 = arith.mulf %5, %5 : vector<512x128xf32>
    %cst_13 = arith.constant dense<0.000000e+00> : vector<128xf32>
    %14 = vector.multi_reduction <add>, %13, %cst_13 [0] : vector<512x128xf32> to vector<128xf32>
    %15 = vector.shape_cast %14 : vector<128xf32> to vector<1x128xf32>
    %16 = arith.addf %12, %15 : vector<1x128xf32>
    %c0_14 = arith.constant 0 : index
    %c0_15 = arith.constant 0 : index
    %17 = vector.load %arg5[%c0_14, %c0_15] : memref<1x128xf32, #tpu.memory_space<vmem>>, vector<1x128xf32>
    tpu.vector_store %arg5[%c0_14, %c0_15], %16 {strides = array<i32>} : memref<1x128xf32, #tpu.memory_space<vmem>>, vector<1x128xf32>,
    return
  }
  func.func @transform_0(%arg0: i32) -> (i32, i32) {
    %c0_i32 = arith.constant 0 : i32
    %c0_i32_0 = arith.constant 0 : i32
    return %arg0, %c0_i32 : i32, i32
  }
  func.func @transform_1(%arg0: i32) -> (i32, i32) {
    %c0_i32 = arith.constant 0 : i32
    %c0_i32_0 = arith.constant 0 : i32
    %c0_i32_1 = arith.constant 0 : i32
    return %c0_i32, %c0_i32_0 : i32, i32
  }
  func.func @transform_2(%arg0: i32) -> (i32, i32) {
    %c0_i32 = arith.constant 0 : i32
    %c0_i32_0 = arith.constant 0 : i32
    return %arg0, %c0_i32 : i32, i32
  }
  func.func @transform_3(%arg0: i32) -> (i32, i32) {
    %c0_i32 = arith.constant 0 : i32
    %c0_i32_0 = arith.constant 0 : i32
    %c0_i32_1 = arith.constant 0 : i32
    return %c0_i32, %c0_i32_0 : i32, i32
  }
  func.func @transform_4(%arg0: i32) -> (i32, i32) {
    %c0_i32 = arith.constant 0 : i32
    %c0_i32_0 = arith.constant 0 : i32
    %c0_i32_1 = arith.constant 0 : i32
    return %c0_i32, %c0_i32_0 : i32, i32
  }
}

module attributes {stable_mosaic.version = 11 : i64} {
  func.func @kernel(%arg0: i32, %arg1: memref<512x128xf32, #tpu.memory_space<vmem>>, %arg2: memref<1x128xf32, #tpu.memory_space<vmem>>, %arg3: memref<1x128xf32, #tpu.memory_space<vmem>>, %arg4: memref<1x128xf32, #tpu.memory_space<vmem>>, %arg5: memref<1x128xf32, #tpu.memory_space<vmem>>, %arg6: memref<512x128xf32, #tpu.memory_space<vmem>>) attributes {dimension_semantics = [#tpu.dimension_semantics<parallel>], iteration_bounds = array<i64: 1>, scalar_prefetch = 0 : i64, scratch_operands = 0 : i64, tpu.core_type = #tpu.core_type<tc>, window_params = [{transform_indices = @transform_0, window_bounds = array<i64: 512, 128>}, {pipeline_mode = #tpu.pipeline_mode<synchronous>, transform_indices = @transform_1, window_bounds = array<i64: 1, 128>}, {pipeline_mode = #tpu.pipeline_mode<synchronous>, transform_indices = @transform_2, window_bounds = array<i64: 1, 128>}, {pipeline_mode = #tpu.pipeline_mode<synchronous>, transform_indices = @transform_3, window_bounds = array<i64: 1, 128>}, {pipeline_mode = #tpu.pipeline_mode<synchronous>, transform_indices = @transform_4, window_bounds = array<i64: 1, 128>}, {transform_indices = @transform_5, window_bounds = array<i64: 512, 128>}]} {
    %c0 = arith.constant 0 : index
    %c0_0 = arith.constant 0 : index
    %0 = vector.load %arg2[%c0, %c0_0] : memref<1x128xf32, #tpu.memory_space<vmem>>, vector<1x128xf32>
    %cst = arith.constant 0.001953125 : f32
    %1 = vector.broadcast %cst : f32 to vector<1x128xf32>
    %2 = arith.mulf %0, %1 : vector<1x128xf32>
    %c0_1 = arith.constant 0 : index
    %c0_2 = arith.constant 0 : index
    %3 = vector.load %arg3[%c0_1, %c0_2] : memref<1x128xf32, #tpu.memory_space<vmem>>, vector<1x128xf32>
    %cst_3 = arith.constant 0.001953125 : f32
    %4 = vector.broadcast %cst_3 : f32 to vector<1x128xf32>
    %5 = arith.mulf %3, %4 : vector<1x128xf32>
    %6 = arith.mulf %2, %2 : vector<1x128xf32>
    %7 = arith.subf %5, %6 : vector<1x128xf32>
    %cst_4 = arith.constant 0.000000e+00 : f32
    %8 = vector.broadcast %cst_4 : f32 to vector<1x128xf32>
    %9 = arith.maximumf %7, %8 : vector<1x128xf32>
    %c0_5 = arith.constant 0 : index
    %c0_6 = arith.constant 0 : index
    %10 = vector.load %arg4[%c0_5, %c0_6] : memref<1x128xf32, #tpu.memory_space<vmem>>, vector<1x128xf32>
    %cst_7 = arith.constant 9.99999974E-6 : f32
    %11 = vector.broadcast %cst_7 : f32 to vector<1x128xf32>
    %12 = arith.addf %9, %11 : vector<1x128xf32>
    %13 = math.rsqrt %12 : vector<1x128xf32>
    %14 = arith.mulf %10, %13 : vector<1x128xf32>
    %c0_8 = arith.constant 0 : index
    %c0_9 = arith.constant 0 : index
    %15 = vector.load %arg5[%c0_8, %c0_9] : memref<1x128xf32, #tpu.memory_space<vmem>>, vector<1x128xf32>
    %16 = arith.mulf %2, %14 : vector<1x128xf32>
    %17 = arith.subf %15, %16 : vector<1x128xf32>
    %c0_10 = arith.constant 0 : index
    %c0_11 = arith.constant 0 : index
    %18 = vector.load %arg1[%c0_10, %c0_11] : memref<512x128xf32, #tpu.memory_space<vmem>>, vector<512x128xf32>
    %19 = vector.broadcast %14 : vector<1x128xf32> to vector<512x128xf32>
    %20 = arith.mulf %18, %19 : vector<512x128xf32>
    %21 = vector.broadcast %17 : vector<1x128xf32> to vector<512x128xf32>
    %22 = arith.addf %20, %21 : vector<512x128xf32>
    %cst_12 = arith.constant 0.000000e+00 : f32
    %23 = vector.broadcast %cst_12 : f32 to vector<512x128xf32>
    %24 = arith.maximumf %22, %23 : vector<512x128xf32>
    %c0_13 = arith.constant 0 : index
    %c0_14 = arith.constant 0 : index
    %25 = vector.load %arg6[%c0_13, %c0_14] : memref<512x128xf32, #tpu.memory_space<vmem>>, vector<512x128xf32>
    tpu.vector_store %arg6[%c0_13, %c0_14], %24 {strides = array<i32>} : memref<512x128xf32, #tpu.memory_space<vmem>>, vector<512x128xf32>,
    return
  }
  func.func @transform_0(%arg0: i32) -> (i32, i32) {
    %c0_i32 = arith.constant 0 : i32
    %c0_i32_0 = arith.constant 0 : i32
    return %arg0, %c0_i32 : i32, i32
  }
  func.func @transform_1(%arg0: i32) -> (i32, i32) {
    %c0_i32 = arith.constant 0 : i32
    %c0_i32_0 = arith.constant 0 : i32
    %c0_i32_1 = arith.constant 0 : i32
    return %c0_i32, %c0_i32_0 : i32, i32
  }
  func.func @transform_2(%arg0: i32) -> (i32, i32) {
    %c0_i32 = arith.constant 0 : i32
    %c0_i32_0 = arith.constant 0 : i32
    %c0_i32_1 = arith.constant 0 : i32
    return %c0_i32, %c0_i32_0 : i32, i32
  }
  func.func @transform_3(%arg0: i32) -> (i32, i32) {
    %c0_i32 = arith.constant 0 : i32
    %c0_i32_0 = arith.constant 0 : i32
    %c0_i32_1 = arith.constant 0 : i32
    return %c0_i32, %c0_i32_0 : i32, i32
  }
  func.func @transform_4(%arg0: i32) -> (i32, i32) {
    %c0_i32 = arith.constant 0 : i32
    %c0_i32_0 = arith.constant 0 : i32
    %c0_i32_1 = arith.constant 0 : i32
    return %c0_i32, %c0_i32_0 : i32, i32
  }
  func.func @transform_5(%arg0: i32) -> (i32, i32) {
    %c0_i32 = arith.constant 0 : i32
    %c0_i32_0 = arith.constant 0 : i32
    return %arg0, %c0_i32 : i32, i32
  }
}

module attributes {stable_mosaic.version = 11 : i64} {
  func.func @kernel(%arg0: i32, %arg1: memref<128x128xbf16, #tpu.memory_space<vmem>>, %arg2: memref<128x128xbf16, #tpu.memory_space<vmem>>, %arg3: memref<128x128xf32, #tpu.memory_space<vmem>>, %arg4: memref<1x128xf32, #tpu.memory_space<vmem>>, %arg5: memref<1x128xf32, #tpu.memory_space<vmem>>) attributes {dimension_semantics = [#tpu.dimension_semantics<arbitrary>], iteration_bounds = array<i64: 1>, scalar_prefetch = 0 : i64, scratch_operands = 0 : i64, tpu.core_type = #tpu.core_type<tc>, window_params = [{transform_indices = @transform_0, window_bounds = array<i64: 128, 128>}, {pipeline_mode = #tpu.pipeline_mode<synchronous>, transform_indices = @transform_1, window_bounds = array<i64: 128, 128>}, {transform_indices = @transform_2, window_bounds = array<i64: 128, 128>}, {pipeline_mode = #tpu.pipeline_mode<synchronous>, transform_indices = @transform_3, window_bounds = array<i64: 1, 128>}, {pipeline_mode = #tpu.pipeline_mode<synchronous>, transform_indices = @transform_4, window_bounds = array<i64: 1, 128>}]} {
    %c0_i32 = arith.constant 0 : i32
    %0 = arith.cmpi eq, %arg0, %c0_i32 : i32
    %1 = arith.extui %0 : i1 to i32
    %c0_i32_0 = arith.constant 0 : i32
    %2 = arith.cmpi ne, %1, %c0_i32_0 : i32
    scf.if %2 {
      %cst_16 = arith.constant 0.000000e+00 : f32
      %18 = vector.broadcast %cst_16 : f32 to vector<1x128xf32>
      %c0_17 = arith.constant 0 : index
      %c0_18 = arith.constant 0 : index
      %19 = vector.load %arg4[%c0_17, %c0_18] : memref<1x128xf32, #tpu.memory_space<vmem>>, vector<1x128xf32>
      tpu.vector_store %arg4[%c0_17, %c0_18], %18 {strides = array<i32>} : memref<1x128xf32, #tpu.memory_space<vmem>>, vector<1x128xf32>,
      %cst_19 = arith.constant 0.000000e+00 : f32
      %20 = vector.broadcast %cst_19 : f32 to vector<1x128xf32>
      %c0_20 = arith.constant 0 : index
      %c0_21 = arith.constant 0 : index
      %21 = vector.load %arg5[%c0_20, %c0_21] : memref<1x128xf32, #tpu.memory_space<vmem>>, vector<1x128xf32>
      tpu.vector_store %arg5[%c0_20, %c0_21], %20 {strides = array<i32>} : memref<1x128xf32, #tpu.memory_space<vmem>>, vector<1x128xf32>,
    } else {
    }
    %c0 = arith.constant 0 : index
    %c0_1 = arith.constant 0 : index
    %3 = vector.load %arg1[%c0, %c0_1] : memref<128x128xbf16, #tpu.memory_space<vmem>>, vector<128x128xbf16>
    %c0_2 = arith.constant 0 : index
    %c0_3 = arith.constant 0 : index
    %4 = vector.load %arg2[%c0_2, %c0_3] : memref<128x128xbf16, #tpu.memory_space<vmem>>, vector<128x128xbf16>
    %cst = arith.constant dense<0.000000e+00> : vector<128x128xf32>
    %5 = tpu.matmul %3, %4, %cst {dimension_numbers = #tpu.dot_dimension_numbers<[1], [0], [0], [1], [0, 0, 1, 1], [], []>} : vector<128x128xbf16>, vector<128x128xbf16>, vector<128x128xf32> -> vector<128x128xf32>
    %c0_4 = arith.constant 0 : index
    %c0_5 = arith.constant 0 : index
    %6 = vector.load %arg3[%c0_4, %c0_5] : memref<128x128xf32, #tpu.memory_space<vmem>>, vector<128x128xf32>
    tpu.vector_store %arg3[%c0_4, %c0_5], %5 {strides = array<i32>} : memref<128x128xf32, #tpu.memory_space<vmem>>, vector<128x128xf32>,
    %c0_6 = arith.constant 0 : index
    %c0_7 = arith.constant 0 : index
    %7 = vector.load %arg4[%c0_6, %c0_7] : memref<1x128xf32, #tpu.memory_space<vmem>>, vector<1x128xf32>
    %cst_8 = arith.constant dense<0.000000e+00> : vector<128xf32>
    %8 = vector.multi_reduction <add>, %5, %cst_8 [0] : vector<128x128xf32> to vector<128xf32>
    %9 = vector.shape_cast %8 : vector<128xf32> to vector<1x128xf32>
    %10 = arith.addf %7, %9 : vector<1x128xf32>
    %c0_9 = arith.constant 0 : index
    %c0_10 = arith.constant 0 : index
    %11 = vector.load %arg4[%c0_9, %c0_10] : memref<1x128xf32, #tpu.memory_space<vmem>>, vector<1x128xf32>
    tpu.vector_store %arg4[%c0_9, %c0_10], %10 {strides = array<i32>} : memref<1x128xf32, #tpu.memory_space<vmem>>, vector<1x128xf32>,
    %c0_11 = arith.constant 0 : index
    %c0_12 = arith.constant 0 : index
    %12 = vector.load %arg5[%c0_11, %c0_12] : memref<1x128xf32, #tpu.memory_space<vmem>>, vector<1x128xf32>
    %13 = arith.mulf %5, %5 : vector<128x128xf32>
    %cst_13 = arith.constant dense<0.000000e+00> : vector<128xf32>
    %14 = vector.multi_reduction <add>, %13, %cst_13 [0] : vector<128x128xf32> to vector<128xf32>
    %15 = vector.shape_cast %14 : vector<128xf32> to vector<1x128xf32>
    %16 = arith.addf %12, %15 : vector<1x128xf32>
    %c0_14 = arith.constant 0 : index
    %c0_15 = arith.constant 0 : index
    %17 = vector.load %arg5[%c0_14, %c0_15] : memref<1x128xf32, #tpu.memory_space<vmem>>, vector<1x128xf32>
    tpu.vector_store %arg5[%c0_14, %c0_15], %16 {strides = array<i32>} : memref<1x128xf32, #tpu.memory_space<vmem>>, vector<1x128xf32>,
    return
  }
  func.func @transform_0(%arg0: i32) -> (i32, i32) {
    %c0_i32 = arith.constant 0 : i32
    %c0_i32_0 = arith.constant 0 : i32
    return %arg0, %c0_i32 : i32, i32
  }
  func.func @transform_1(%arg0: i32) -> (i32, i32) {
    %c0_i32 = arith.constant 0 : i32
    %c0_i32_0 = arith.constant 0 : i32
    %c0_i32_1 = arith.constant 0 : i32
    return %c0_i32, %c0_i32_0 : i32, i32
  }
  func.func @transform_2(%arg0: i32) -> (i32, i32) {
    %c0_i32 = arith.constant 0 : i32
    %c0_i32_0 = arith.constant 0 : i32
    return %arg0, %c0_i32 : i32, i32
  }
  func.func @transform_3(%arg0: i32) -> (i32, i32) {
    %c0_i32 = arith.constant 0 : i32
    %c0_i32_0 = arith.constant 0 : i32
    %c0_i32_1 = arith.constant 0 : i32
    return %c0_i32, %c0_i32_0 : i32, i32
  }
  func.func @transform_4(%arg0: i32) -> (i32, i32) {
    %c0_i32 = arith.constant 0 : i32
    %c0_i32_0 = arith.constant 0 : i32
    %c0_i32_1 = arith.constant 0 : i32
    return %c0_i32, %c0_i32_0 : i32, i32
  }
}

module attributes {stable_mosaic.version = 11 : i64} {
  func.func @kernel(%arg0: i32, %arg1: memref<128x128xf32, #tpu.memory_space<vmem>>, %arg2: memref<1x128xf32, #tpu.memory_space<vmem>>, %arg3: memref<1x128xf32, #tpu.memory_space<vmem>>, %arg4: memref<1x128xf32, #tpu.memory_space<vmem>>, %arg5: memref<1x128xf32, #tpu.memory_space<vmem>>, %arg6: memref<128x128xf32, #tpu.memory_space<vmem>>) attributes {dimension_semantics = [#tpu.dimension_semantics<parallel>], iteration_bounds = array<i64: 1>, scalar_prefetch = 0 : i64, scratch_operands = 0 : i64, tpu.core_type = #tpu.core_type<tc>, window_params = [{transform_indices = @transform_0, window_bounds = array<i64: 128, 128>}, {pipeline_mode = #tpu.pipeline_mode<synchronous>, transform_indices = @transform_1, window_bounds = array<i64: 1, 128>}, {pipeline_mode = #tpu.pipeline_mode<synchronous>, transform_indices = @transform_2, window_bounds = array<i64: 1, 128>}, {pipeline_mode = #tpu.pipeline_mode<synchronous>, transform_indices = @transform_3, window_bounds = array<i64: 1, 128>}, {pipeline_mode = #tpu.pipeline_mode<synchronous>, transform_indices = @transform_4, window_bounds = array<i64: 1, 128>}, {transform_indices = @transform_5, window_bounds = array<i64: 128, 128>}]} {
    %c0 = arith.constant 0 : index
    %c0_0 = arith.constant 0 : index
    %0 = vector.load %arg2[%c0, %c0_0] : memref<1x128xf32, #tpu.memory_space<vmem>>, vector<1x128xf32>
    %cst = arith.constant 7.812500e-03 : f32
    %1 = vector.broadcast %cst : f32 to vector<1x128xf32>
    %2 = arith.mulf %0, %1 : vector<1x128xf32>
    %c0_1 = arith.constant 0 : index
    %c0_2 = arith.constant 0 : index
    %3 = vector.load %arg3[%c0_1, %c0_2] : memref<1x128xf32, #tpu.memory_space<vmem>>, vector<1x128xf32>
    %cst_3 = arith.constant 7.812500e-03 : f32
    %4 = vector.broadcast %cst_3 : f32 to vector<1x128xf32>
    %5 = arith.mulf %3, %4 : vector<1x128xf32>
    %6 = arith.mulf %2, %2 : vector<1x128xf32>
    %7 = arith.subf %5, %6 : vector<1x128xf32>
    %cst_4 = arith.constant 0.000000e+00 : f32
    %8 = vector.broadcast %cst_4 : f32 to vector<1x128xf32>
    %9 = arith.maximumf %7, %8 : vector<1x128xf32>
    %c0_5 = arith.constant 0 : index
    %c0_6 = arith.constant 0 : index
    %10 = vector.load %arg4[%c0_5, %c0_6] : memref<1x128xf32, #tpu.memory_space<vmem>>, vector<1x128xf32>
    %cst_7 = arith.constant 9.99999974E-6 : f32
    %11 = vector.broadcast %cst_7 : f32 to vector<1x128xf32>
    %12 = arith.addf %9, %11 : vector<1x128xf32>
    %13 = math.rsqrt %12 : vector<1x128xf32>
    %14 = arith.mulf %10, %13 : vector<1x128xf32>
    %c0_8 = arith.constant 0 : index
    %c0_9 = arith.constant 0 : index
    %15 = vector.load %arg5[%c0_8, %c0_9] : memref<1x128xf32, #tpu.memory_space<vmem>>, vector<1x128xf32>
    %16 = arith.mulf %2, %14 : vector<1x128xf32>
    %17 = arith.subf %15, %16 : vector<1x128xf32>
    %c0_10 = arith.constant 0 : index
    %c0_11 = arith.constant 0 : index
    %18 = vector.load %arg1[%c0_10, %c0_11] : memref<128x128xf32, #tpu.memory_space<vmem>>, vector<128x128xf32>
    %19 = vector.broadcast %14 : vector<1x128xf32> to vector<128x128xf32>
    %20 = arith.mulf %18, %19 : vector<128x128xf32>
    %21 = vector.broadcast %17 : vector<1x128xf32> to vector<128x128xf32>
    %22 = arith.addf %20, %21 : vector<128x128xf32>
    %cst_12 = arith.constant 0.000000e+00 : f32
    %23 = vector.broadcast %cst_12 : f32 to vector<128x128xf32>
    %24 = arith.maximumf %22, %23 : vector<128x128xf32>
    %c0_13 = arith.constant 0 : index
    %c0_14 = arith.constant 0 : index
    %25 = vector.load %arg6[%c0_13, %c0_14] : memref<128x128xf32, #tpu.memory_space<vmem>>, vector<128x128xf32>
    tpu.vector_store %arg6[%c0_13, %c0_14], %24 {strides = array<i32>} : memref<128x128xf32, #tpu.memory_space<vmem>>, vector<128x128xf32>,
    return
  }
  func.func @transform_0(%arg0: i32) -> (i32, i32) {
    %c0_i32 = arith.constant 0 : i32
    %c0_i32_0 = arith.constant 0 : i32
    return %arg0, %c0_i32 : i32, i32
  }
  func.func @transform_1(%arg0: i32) -> (i32, i32) {
    %c0_i32 = arith.constant 0 : i32
    %c0_i32_0 = arith.constant 0 : i32
    %c0_i32_1 = arith.constant 0 : i32
    return %c0_i32, %c0_i32_0 : i32, i32
  }
  func.func @transform_2(%arg0: i32) -> (i32, i32) {
    %c0_i32 = arith.constant 0 : i32
    %c0_i32_0 = arith.constant 0 : i32
    %c0_i32_1 = arith.constant 0 : i32
    return %c0_i32, %c0_i32_0 : i32, i32
  }
  func.func @transform_3(%arg0: i32) -> (i32, i32) {
    %c0_i32 = arith.constant 0 : i32
    %c0_i32_0 = arith.constant 0 : i32
    %c0_i32_1 = arith.constant 0 : i32
    return %c0_i32, %c0_i32_0 : i32, i32
  }
  func.func @transform_4(%arg0: i32) -> (i32, i32) {
    %c0_i32 = arith.constant 0 : i32
    %c0_i32_0 = arith.constant 0 : i32
    %c0_i32_1 = arith.constant 0 : i32
    return %c0_i32, %c0_i32_0 : i32, i32
  }
  func.func @transform_5(%arg0: i32) -> (i32, i32) {
    %c0_i32 = arith.constant 0 : i32
    %c0_i32_0 = arith.constant 0 : i32
    return %arg0, %c0_i32 : i32, i32
  }
}

module attributes {stable_mosaic.version = 11 : i64} {
  func.func @kernel(%arg0: i32, %arg1: memref<32x128xbf16, #tpu.memory_space<vmem>>, %arg2: memref<128x128xbf16, #tpu.memory_space<vmem>>, %arg3: memref<32x128xf32, #tpu.memory_space<vmem>>, %arg4: memref<1x128xf32, #tpu.memory_space<vmem>>, %arg5: memref<1x128xf32, #tpu.memory_space<vmem>>) attributes {dimension_semantics = [#tpu.dimension_semantics<arbitrary>], iteration_bounds = array<i64: 1>, scalar_prefetch = 0 : i64, scratch_operands = 0 : i64, tpu.core_type = #tpu.core_type<tc>, window_params = [{transform_indices = @transform_0, window_bounds = array<i64: 32, 128>}, {pipeline_mode = #tpu.pipeline_mode<synchronous>, transform_indices = @transform_1, window_bounds = array<i64: 128, 128>}, {transform_indices = @transform_2, window_bounds = array<i64: 32, 128>}, {pipeline_mode = #tpu.pipeline_mode<synchronous>, transform_indices = @transform_3, window_bounds = array<i64: 1, 128>}, {pipeline_mode = #tpu.pipeline_mode<synchronous>, transform_indices = @transform_4, window_bounds = array<i64: 1, 128>}]} {
    %c0_i32 = arith.constant 0 : i32
    %0 = arith.cmpi eq, %arg0, %c0_i32 : i32
    %1 = arith.extui %0 : i1 to i32
    %c0_i32_0 = arith.constant 0 : i32
    %2 = arith.cmpi ne, %1, %c0_i32_0 : i32
    scf.if %2 {
      %cst_16 = arith.constant 0.000000e+00 : f32
      %18 = vector.broadcast %cst_16 : f32 to vector<1x128xf32>
      %c0_17 = arith.constant 0 : index
      %c0_18 = arith.constant 0 : index
      %19 = vector.load %arg4[%c0_17, %c0_18] : memref<1x128xf32, #tpu.memory_space<vmem>>, vector<1x128xf32>
      tpu.vector_store %arg4[%c0_17, %c0_18], %18 {strides = array<i32>} : memref<1x128xf32, #tpu.memory_space<vmem>>, vector<1x128xf32>,
      %cst_19 = arith.constant 0.000000e+00 : f32
      %20 = vector.broadcast %cst_19 : f32 to vector<1x128xf32>
      %c0_20 = arith.constant 0 : index
      %c0_21 = arith.constant 0 : index
      %21 = vector.load %arg5[%c0_20, %c0_21] : memref<1x128xf32, #tpu.memory_space<vmem>>, vector<1x128xf32>
      tpu.vector_store %arg5[%c0_20, %c0_21], %20 {strides = array<i32>} : memref<1x128xf32, #tpu.memory_space<vmem>>, vector<1x128xf32>,
    } else {
    }
    %c0 = arith.constant 0 : index
    %c0_1 = arith.constant 0 : index
    %3 = vector.load %arg1[%c0, %c0_1] : memref<32x128xbf16, #tpu.memory_space<vmem>>, vector<32x128xbf16>
    %c0_2 = arith.constant 0 : index
    %c0_3 = arith.constant 0 : index
    %4 = vector.load %arg2[%c0_2, %c0_3] : memref<128x128xbf16, #tpu.memory_space<vmem>>, vector<128x128xbf16>
    %cst = arith.constant dense<0.000000e+00> : vector<32x128xf32>
    %5 = tpu.matmul %3, %4, %cst {dimension_numbers = #tpu.dot_dimension_numbers<[1], [0], [0], [1], [0, 0, 1, 1], [], []>} : vector<32x128xbf16>, vector<128x128xbf16>, vector<32x128xf32> -> vector<32x128xf32>
    %c0_4 = arith.constant 0 : index
    %c0_5 = arith.constant 0 : index
    %6 = vector.load %arg3[%c0_4, %c0_5] : memref<32x128xf32, #tpu.memory_space<vmem>>, vector<32x128xf32>
    tpu.vector_store %arg3[%c0_4, %c0_5], %5 {strides = array<i32>} : memref<32x128xf32, #tpu.memory_space<vmem>>, vector<32x128xf32>,
    %c0_6 = arith.constant 0 : index
    %c0_7 = arith.constant 0 : index
    %7 = vector.load %arg4[%c0_6, %c0_7] : memref<1x128xf32, #tpu.memory_space<vmem>>, vector<1x128xf32>
    %cst_8 = arith.constant dense<0.000000e+00> : vector<128xf32>
    %8 = vector.multi_reduction <add>, %5, %cst_8 [0] : vector<32x128xf32> to vector<128xf32>
    %9 = vector.shape_cast %8 : vector<128xf32> to vector<1x128xf32>
    %10 = arith.addf %7, %9 : vector<1x128xf32>
    %c0_9 = arith.constant 0 : index
    %c0_10 = arith.constant 0 : index
    %11 = vector.load %arg4[%c0_9, %c0_10] : memref<1x128xf32, #tpu.memory_space<vmem>>, vector<1x128xf32>
    tpu.vector_store %arg4[%c0_9, %c0_10], %10 {strides = array<i32>} : memref<1x128xf32, #tpu.memory_space<vmem>>, vector<1x128xf32>,
    %c0_11 = arith.constant 0 : index
    %c0_12 = arith.constant 0 : index
    %12 = vector.load %arg5[%c0_11, %c0_12] : memref<1x128xf32, #tpu.memory_space<vmem>>, vector<1x128xf32>
    %13 = arith.mulf %5, %5 : vector<32x128xf32>
    %cst_13 = arith.constant dense<0.000000e+00> : vector<128xf32>
    %14 = vector.multi_reduction <add>, %13, %cst_13 [0] : vector<32x128xf32> to vector<128xf32>
    %15 = vector.shape_cast %14 : vector<128xf32> to vector<1x128xf32>
    %16 = arith.addf %12, %15 : vector<1x128xf32>
    %c0_14 = arith.constant 0 : index
    %c0_15 = arith.constant 0 : index
    %17 = vector.load %arg5[%c0_14, %c0_15] : memref<1x128xf32, #tpu.memory_space<vmem>>, vector<1x128xf32>
    tpu.vector_store %arg5[%c0_14, %c0_15], %16 {strides = array<i32>} : memref<1x128xf32, #tpu.memory_space<vmem>>, vector<1x128xf32>,
    return
  }
  func.func @transform_0(%arg0: i32) -> (i32, i32) {
    %c0_i32 = arith.constant 0 : i32
    %c0_i32_0 = arith.constant 0 : i32
    return %arg0, %c0_i32 : i32, i32
  }
  func.func @transform_1(%arg0: i32) -> (i32, i32) {
    %c0_i32 = arith.constant 0 : i32
    %c0_i32_0 = arith.constant 0 : i32
    %c0_i32_1 = arith.constant 0 : i32
    return %c0_i32, %c0_i32_0 : i32, i32
  }
  func.func @transform_2(%arg0: i32) -> (i32, i32) {
    %c0_i32 = arith.constant 0 : i32
    %c0_i32_0 = arith.constant 0 : i32
    return %arg0, %c0_i32 : i32, i32
  }
  func.func @transform_3(%arg0: i32) -> (i32, i32) {
    %c0_i32 = arith.constant 0 : i32
    %c0_i32_0 = arith.constant 0 : i32
    %c0_i32_1 = arith.constant 0 : i32
    return %c0_i32, %c0_i32_0 : i32, i32
  }
  func.func @transform_4(%arg0: i32) -> (i32, i32) {
    %c0_i32 = arith.constant 0 : i32
    %c0_i32_0 = arith.constant 0 : i32
    %c0_i32_1 = arith.constant 0 : i32
    return %c0_i32, %c0_i32_0 : i32, i32
  }
}

module attributes {stable_mosaic.version = 11 : i64} {
  func.func @kernel(%arg0: i32, %arg1: memref<32x128xf32, #tpu.memory_space<vmem>>, %arg2: memref<1x128xf32, #tpu.memory_space<vmem>>, %arg3: memref<1x128xf32, #tpu.memory_space<vmem>>, %arg4: memref<1x128xf32, #tpu.memory_space<vmem>>, %arg5: memref<1x128xf32, #tpu.memory_space<vmem>>, %arg6: memref<32x128xf32, #tpu.memory_space<vmem>>) attributes {dimension_semantics = [#tpu.dimension_semantics<parallel>], iteration_bounds = array<i64: 1>, scalar_prefetch = 0 : i64, scratch_operands = 0 : i64, tpu.core_type = #tpu.core_type<tc>, window_params = [{transform_indices = @transform_0, window_bounds = array<i64: 32, 128>}, {pipeline_mode = #tpu.pipeline_mode<synchronous>, transform_indices = @transform_1, window_bounds = array<i64: 1, 128>}, {pipeline_mode = #tpu.pipeline_mode<synchronous>, transform_indices = @transform_2, window_bounds = array<i64: 1, 128>}, {pipeline_mode = #tpu.pipeline_mode<synchronous>, transform_indices = @transform_3, window_bounds = array<i64: 1, 128>}, {pipeline_mode = #tpu.pipeline_mode<synchronous>, transform_indices = @transform_4, window_bounds = array<i64: 1, 128>}, {transform_indices = @transform_5, window_bounds = array<i64: 32, 128>}]} {
    %c0 = arith.constant 0 : index
    %c0_0 = arith.constant 0 : index
    %0 = vector.load %arg2[%c0, %c0_0] : memref<1x128xf32, #tpu.memory_space<vmem>>, vector<1x128xf32>
    %cst = arith.constant 3.125000e-02 : f32
    %1 = vector.broadcast %cst : f32 to vector<1x128xf32>
    %2 = arith.mulf %0, %1 : vector<1x128xf32>
    %c0_1 = arith.constant 0 : index
    %c0_2 = arith.constant 0 : index
    %3 = vector.load %arg3[%c0_1, %c0_2] : memref<1x128xf32, #tpu.memory_space<vmem>>, vector<1x128xf32>
    %cst_3 = arith.constant 3.125000e-02 : f32
    %4 = vector.broadcast %cst_3 : f32 to vector<1x128xf32>
    %5 = arith.mulf %3, %4 : vector<1x128xf32>
    %6 = arith.mulf %2, %2 : vector<1x128xf32>
    %7 = arith.subf %5, %6 : vector<1x128xf32>
    %cst_4 = arith.constant 0.000000e+00 : f32
    %8 = vector.broadcast %cst_4 : f32 to vector<1x128xf32>
    %9 = arith.maximumf %7, %8 : vector<1x128xf32>
    %c0_5 = arith.constant 0 : index
    %c0_6 = arith.constant 0 : index
    %10 = vector.load %arg4[%c0_5, %c0_6] : memref<1x128xf32, #tpu.memory_space<vmem>>, vector<1x128xf32>
    %cst_7 = arith.constant 9.99999974E-6 : f32
    %11 = vector.broadcast %cst_7 : f32 to vector<1x128xf32>
    %12 = arith.addf %9, %11 : vector<1x128xf32>
    %13 = math.rsqrt %12 : vector<1x128xf32>
    %14 = arith.mulf %10, %13 : vector<1x128xf32>
    %c0_8 = arith.constant 0 : index
    %c0_9 = arith.constant 0 : index
    %15 = vector.load %arg5[%c0_8, %c0_9] : memref<1x128xf32, #tpu.memory_space<vmem>>, vector<1x128xf32>
    %16 = arith.mulf %2, %14 : vector<1x128xf32>
    %17 = arith.subf %15, %16 : vector<1x128xf32>
    %c0_10 = arith.constant 0 : index
    %c0_11 = arith.constant 0 : index
    %18 = vector.load %arg1[%c0_10, %c0_11] : memref<32x128xf32, #tpu.memory_space<vmem>>, vector<32x128xf32>
    %19 = vector.broadcast %14 : vector<1x128xf32> to vector<32x128xf32>
    %20 = arith.mulf %18, %19 : vector<32x128xf32>
    %21 = vector.broadcast %17 : vector<1x128xf32> to vector<32x128xf32>
    %22 = arith.addf %20, %21 : vector<32x128xf32>
    %cst_12 = arith.constant 0.000000e+00 : f32
    %23 = vector.broadcast %cst_12 : f32 to vector<32x128xf32>
    %24 = arith.maximumf %22, %23 : vector<32x128xf32>
    %c0_13 = arith.constant 0 : index
    %c0_14 = arith.constant 0 : index
    %25 = vector.load %arg6[%c0_13, %c0_14] : memref<32x128xf32, #tpu.memory_space<vmem>>, vector<32x128xf32>
    tpu.vector_store %arg6[%c0_13, %c0_14], %24 {strides = array<i32>} : memref<32x128xf32, #tpu.memory_space<vmem>>, vector<32x128xf32>,
    return
  }
  func.func @transform_0(%arg0: i32) -> (i32, i32) {
    %c0_i32 = arith.constant 0 : i32
    %c0_i32_0 = arith.constant 0 : i32
    return %arg0, %c0_i32 : i32, i32
  }
  func.func @transform_1(%arg0: i32) -> (i32, i32) {
    %c0_i32 = arith.constant 0 : i32
    %c0_i32_0 = arith.constant 0 : i32
    %c0_i32_1 = arith.constant 0 : i32
    return %c0_i32, %c0_i32_0 : i32, i32
  }
  func.func @transform_2(%arg0: i32) -> (i32, i32) {
    %c0_i32 = arith.constant 0 : i32
    %c0_i32_0 = arith.constant 0 : i32
    %c0_i32_1 = arith.constant 0 : i32
    return %c0_i32, %c0_i32_0 : i32, i32
  }
  func.func @transform_3(%arg0: i32) -> (i32, i32) {
    %c0_i32 = arith.constant 0 : i32
    %c0_i32_0 = arith.constant 0 : i32
    %c0_i32_1 = arith.constant 0 : i32
    return %c0_i32, %c0_i32_0 : i32, i32
  }
  func.func @transform_4(%arg0: i32) -> (i32, i32) {
    %c0_i32 = arith.constant 0 : i32
    %c0_i32_0 = arith.constant 0 : i32
    %c0_i32_1 = arith.constant 0 : i32
    return %c0_i32, %c0_i32_0 : i32, i32
  }
  func.func @transform_5(%arg0: i32) -> (i32, i32) {
    %c0_i32 = arith.constant 0 : i32
    %c0_i32_0 = arith.constant 0 : i32
    return %arg0, %c0_i32 : i32, i32
  }
}

module attributes {stable_mosaic.version = 11 : i64} {
  func.func @kernel(%arg0: i32, %arg1: memref<8x128xf32, #tpu.memory_space<vmem>>, %arg2: memref<1x128xf32, #tpu.memory_space<vmem>>, %arg3: memref<1x128xf32, #tpu.memory_space<vmem>>, %arg4: memref<1x128xf32, #tpu.memory_space<vmem>>, %arg5: memref<1x128xf32, #tpu.memory_space<vmem>>, %arg6: memref<8x128xf32, #tpu.memory_space<vmem>>) attributes {dimension_semantics = [#tpu.dimension_semantics<parallel>], iteration_bounds = array<i64: 1>, scalar_prefetch = 0 : i64, scratch_operands = 0 : i64, tpu.core_type = #tpu.core_type<tc>, window_params = [{transform_indices = @transform_0, window_bounds = array<i64: 8, 128>}, {pipeline_mode = #tpu.pipeline_mode<synchronous>, transform_indices = @transform_1, window_bounds = array<i64: 1, 128>}, {pipeline_mode = #tpu.pipeline_mode<synchronous>, transform_indices = @transform_2, window_bounds = array<i64: 1, 128>}, {pipeline_mode = #tpu.pipeline_mode<synchronous>, transform_indices = @transform_3, window_bounds = array<i64: 1, 128>}, {pipeline_mode = #tpu.pipeline_mode<synchronous>, transform_indices = @transform_4, window_bounds = array<i64: 1, 128>}, {transform_indices = @transform_5, window_bounds = array<i64: 8, 128>}]} {
    %c0 = arith.constant 0 : index
    %c0_0 = arith.constant 0 : index
    %0 = vector.load %arg2[%c0, %c0_0] : memref<1x128xf32, #tpu.memory_space<vmem>>, vector<1x128xf32>
    %cst = arith.constant 1.250000e-01 : f32
    %1 = vector.broadcast %cst : f32 to vector<1x128xf32>
    %2 = arith.mulf %0, %1 : vector<1x128xf32>
    %c0_1 = arith.constant 0 : index
    %c0_2 = arith.constant 0 : index
    %3 = vector.load %arg3[%c0_1, %c0_2] : memref<1x128xf32, #tpu.memory_space<vmem>>, vector<1x128xf32>
    %cst_3 = arith.constant 1.250000e-01 : f32
    %4 = vector.broadcast %cst_3 : f32 to vector<1x128xf32>
    %5 = arith.mulf %3, %4 : vector<1x128xf32>
    %6 = arith.mulf %2, %2 : vector<1x128xf32>
    %7 = arith.subf %5, %6 : vector<1x128xf32>
    %cst_4 = arith.constant 0.000000e+00 : f32
    %8 = vector.broadcast %cst_4 : f32 to vector<1x128xf32>
    %9 = arith.maximumf %7, %8 : vector<1x128xf32>
    %c0_5 = arith.constant 0 : index
    %c0_6 = arith.constant 0 : index
    %10 = vector.load %arg4[%c0_5, %c0_6] : memref<1x128xf32, #tpu.memory_space<vmem>>, vector<1x128xf32>
    %cst_7 = arith.constant 9.99999974E-6 : f32
    %11 = vector.broadcast %cst_7 : f32 to vector<1x128xf32>
    %12 = arith.addf %9, %11 : vector<1x128xf32>
    %13 = math.rsqrt %12 : vector<1x128xf32>
    %14 = arith.mulf %10, %13 : vector<1x128xf32>
    %c0_8 = arith.constant 0 : index
    %c0_9 = arith.constant 0 : index
    %15 = vector.load %arg5[%c0_8, %c0_9] : memref<1x128xf32, #tpu.memory_space<vmem>>, vector<1x128xf32>
    %16 = arith.mulf %2, %14 : vector<1x128xf32>
    %17 = arith.subf %15, %16 : vector<1x128xf32>
    %c0_10 = arith.constant 0 : index
    %c0_11 = arith.constant 0 : index
    %18 = vector.load %arg1[%c0_10, %c0_11] : memref<8x128xf32, #tpu.memory_space<vmem>>, vector<8x128xf32>
    %19 = vector.broadcast %14 : vector<1x128xf32> to vector<8x128xf32>
    %20 = arith.mulf %18, %19 : vector<8x128xf32>
    %21 = vector.broadcast %17 : vector<1x128xf32> to vector<8x128xf32>
    %22 = arith.addf %20, %21 : vector<8x128xf32>
    %cst_12 = arith.constant 0.000000e+00 : f32
    %23 = vector.broadcast %cst_12 : f32 to vector<8x128xf32>
    %24 = arith.maximumf %22, %23 : vector<8x128xf32>
    %c0_13 = arith.constant 0 : index
    %c0_14 = arith.constant 0 : index
    %25 = vector.load %arg6[%c0_13, %c0_14] : memref<8x128xf32, #tpu.memory_space<vmem>>, vector<8x128xf32>
    tpu.vector_store %arg6[%c0_13, %c0_14], %24 {strides = array<i32>} : memref<8x128xf32, #tpu.memory_space<vmem>>, vector<8x128xf32>,
    return
  }
  func.func @transform_0(%arg0: i32) -> (i32, i32) {
    %c0_i32 = arith.constant 0 : i32
    %c0_i32_0 = arith.constant 0 : i32
    return %arg0, %c0_i32 : i32, i32
  }
  func.func @transform_1(%arg0: i32) -> (i32, i32) {
    %c0_i32 = arith.constant 0 : i32
    %c0_i32_0 = arith.constant 0 : i32
    %c0_i32_1 = arith.constant 0 : i32
    return %c0_i32, %c0_i32_0 : i32, i32
  }
  func.func @transform_2(%arg0: i32) -> (i32, i32) {
    %c0_i32 = arith.constant 0 : i32
    %c0_i32_0 = arith.constant 0 : i32
    %c0_i32_1 = arith.constant 0 : i32
    return %c0_i32, %c0_i32_0 : i32, i32
  }
  func.func @transform_3(%arg0: i32) -> (i32, i32) {
    %c0_i32 = arith.constant 0 : i32
    %c0_i32_0 = arith.constant 0 : i32
    %c0_i32_1 = arith.constant 0 : i32
    return %c0_i32, %c0_i32_0 : i32, i32
  }
  func.func @transform_4(%arg0: i32) -> (i32, i32) {
    %c0_i32 = arith.constant 0 : i32
    %c0_i32_0 = arith.constant 0 : i32
    %c0_i32_1 = arith.constant 0 : i32
    return %c0_i32, %c0_i32_0 : i32, i32
  }
  func.func @transform_5(%arg0: i32) -> (i32, i32) {
    %c0_i32 = arith.constant 0 : i32
    %c0_i32_0 = arith.constant 0 : i32
    return %arg0, %c0_i32 : i32, i32
  }
}

module attributes {stable_mosaic.version = 11 : i64} {
  func.func @kernel(%arg0: i32, %arg1: memref<8x128xbf16, #tpu.memory_space<vmem>>, %arg2: memref<128x128xbf16, #tpu.memory_space<vmem>>, %arg3: memref<8x128xf32, #tpu.memory_space<vmem>>, %arg4: memref<1x128xf32, #tpu.memory_space<vmem>>, %arg5: memref<1x128xf32, #tpu.memory_space<vmem>>) attributes {dimension_semantics = [#tpu.dimension_semantics<arbitrary>], iteration_bounds = array<i64: 1>, scalar_prefetch = 0 : i64, scratch_operands = 0 : i64, tpu.core_type = #tpu.core_type<tc>, window_params = [{transform_indices = @transform_0, window_bounds = array<i64: 8, 128>}, {pipeline_mode = #tpu.pipeline_mode<synchronous>, transform_indices = @transform_1, window_bounds = array<i64: 128, 128>}, {transform_indices = @transform_2, window_bounds = array<i64: 8, 128>}, {pipeline_mode = #tpu.pipeline_mode<synchronous>, transform_indices = @transform_3, window_bounds = array<i64: 1, 128>}, {pipeline_mode = #tpu.pipeline_mode<synchronous>, transform_indices = @transform_4, window_bounds = array<i64: 1, 128>}]} {
    %c0_i32 = arith.constant 0 : i32
    %0 = arith.cmpi eq, %arg0, %c0_i32 : i32
    %1 = arith.extui %0 : i1 to i32
    %c0_i32_0 = arith.constant 0 : i32
    %2 = arith.cmpi ne, %1, %c0_i32_0 : i32
    scf.if %2 {
      %cst_16 = arith.constant 0.000000e+00 : f32
      %18 = vector.broadcast %cst_16 : f32 to vector<1x128xf32>
      %c0_17 = arith.constant 0 : index
      %c0_18 = arith.constant 0 : index
      %19 = vector.load %arg4[%c0_17, %c0_18] : memref<1x128xf32, #tpu.memory_space<vmem>>, vector<1x128xf32>
      tpu.vector_store %arg4[%c0_17, %c0_18], %18 {strides = array<i32>} : memref<1x128xf32, #tpu.memory_space<vmem>>, vector<1x128xf32>,
      %cst_19 = arith.constant 0.000000e+00 : f32
      %20 = vector.broadcast %cst_19 : f32 to vector<1x128xf32>
      %c0_20 = arith.constant 0 : index
      %c0_21 = arith.constant 0 : index
      %21 = vector.load %arg5[%c0_20, %c0_21] : memref<1x128xf32, #tpu.memory_space<vmem>>, vector<1x128xf32>
      tpu.vector_store %arg5[%c0_20, %c0_21], %20 {strides = array<i32>} : memref<1x128xf32, #tpu.memory_space<vmem>>, vector<1x128xf32>,
    } else {
    }
    %c0 = arith.constant 0 : index
    %c0_1 = arith.constant 0 : index
    %3 = vector.load %arg1[%c0, %c0_1] : memref<8x128xbf16, #tpu.memory_space<vmem>>, vector<8x128xbf16>
    %c0_2 = arith.constant 0 : index
    %c0_3 = arith.constant 0 : index
    %4 = vector.load %arg2[%c0_2, %c0_3] : memref<128x128xbf16, #tpu.memory_space<vmem>>, vector<128x128xbf16>
    %cst = arith.constant dense<0.000000e+00> : vector<8x128xf32>
    %5 = tpu.matmul %3, %4, %cst {dimension_numbers = #tpu.dot_dimension_numbers<[1], [0], [0], [1], [0, 0, 1, 1], [], []>} : vector<8x128xbf16>, vector<128x128xbf16>, vector<8x128xf32> -> vector<8x128xf32>
    %c0_4 = arith.constant 0 : index
    %c0_5 = arith.constant 0 : index
    %6 = vector.load %arg3[%c0_4, %c0_5] : memref<8x128xf32, #tpu.memory_space<vmem>>, vector<8x128xf32>
    tpu.vector_store %arg3[%c0_4, %c0_5], %5 {strides = array<i32>} : memref<8x128xf32, #tpu.memory_space<vmem>>, vector<8x128xf32>,
    %c0_6 = arith.constant 0 : index
    %c0_7 = arith.constant 0 : index
    %7 = vector.load %arg4[%c0_6, %c0_7] : memref<1x128xf32, #tpu.memory_space<vmem>>, vector<1x128xf32>
    %cst_8 = arith.constant dense<0.000000e+00> : vector<128xf32>
    %8 = vector.multi_reduction <add>, %5, %cst_8 [0] : vector<8x128xf32> to vector<128xf32>
    %9 = vector.shape_cast %8 : vector<128xf32> to vector<1x128xf32>
    %10 = arith.addf %7, %9 : vector<1x128xf32>
    %c0_9 = arith.constant 0 : index
    %c0_10 = arith.constant 0 : index
    %11 = vector.load %arg4[%c0_9, %c0_10] : memref<1x128xf32, #tpu.memory_space<vmem>>, vector<1x128xf32>
    tpu.vector_store %arg4[%c0_9, %c0_10], %10 {strides = array<i32>} : memref<1x128xf32, #tpu.memory_space<vmem>>, vector<1x128xf32>,
    %c0_11 = arith.constant 0 : index
    %c0_12 = arith.constant 0 : index
    %12 = vector.load %arg5[%c0_11, %c0_12] : memref<1x128xf32, #tpu.memory_space<vmem>>, vector<1x128xf32>
    %13 = arith.mulf %5, %5 : vector<8x128xf32>
    %cst_13 = arith.constant dense<0.000000e+00> : vector<128xf32>
    %14 = vector.multi_reduction <add>, %13, %cst_13 [0] : vector<8x128xf32> to vector<128xf32>
    %15 = vector.shape_cast %14 : vector<128xf32> to vector<1x128xf32>
    %16 = arith.addf %12, %15 : vector<1x128xf32>
    %c0_14 = arith.constant 0 : index
    %c0_15 = arith.constant 0 : index
    %17 = vector.load %arg5[%c0_14, %c0_15] : memref<1x128xf32, #tpu.memory_space<vmem>>, vector<1x128xf32>
    tpu.vector_store %arg5[%c0_14, %c0_15], %16 {strides = array<i32>} : memref<1x128xf32, #tpu.memory_space<vmem>>, vector<1x128xf32>,
    return
  }
  func.func @transform_0(%arg0: i32) -> (i32, i32) {
    %c0_i32 = arith.constant 0 : i32
    %c0_i32_0 = arith.constant 0 : i32
    return %arg0, %c0_i32 : i32, i32
  }
  func.func @transform_1(%arg0: i32) -> (i32, i32) {
    %c0_i32 = arith.constant 0 : i32
    %c0_i32_0 = arith.constant 0 : i32
    %c0_i32_1 = arith.constant 0 : i32
    return %c0_i32, %c0_i32_0 : i32, i32
  }
  func.func @transform_2(%arg0: i32) -> (i32, i32) {
    %c0_i32 = arith.constant 0 : i32
    %c0_i32_0 = arith.constant 0 : i32
    return %arg0, %c0_i32 : i32, i32
  }
  func.func @transform_3(%arg0: i32) -> (i32, i32) {
    %c0_i32 = arith.constant 0 : i32
    %c0_i32_0 = arith.constant 0 : i32
    %c0_i32_1 = arith.constant 0 : i32
    return %c0_i32, %c0_i32_0 : i32, i32
  }
  func.func @transform_4(%arg0: i32) -> (i32, i32) {
    %c0_i32 = arith.constant 0 : i32
    %c0_i32_0 = arith.constant 0 : i32
    %c0_i32_1 = arith.constant 0 : i32
    return %c0_i32, %c0_i32_0 : i32, i32
  }
}

module attributes {stable_mosaic.version = 11 : i64} {
  func.func @kernel(%arg0: i32, %arg1: memref<8x128xbf16, #tpu.memory_space<vmem>>, %arg2: memref<8x128xbf16, #tpu.memory_space<vmem>>, %arg3: memref<128x128xbf16, #tpu.memory_space<vmem>>, %arg4: memref<128x128xbf16, #tpu.memory_space<vmem>>, %arg5: memref<8x128xf32, #tpu.memory_space<vmem>>, %arg6: memref<1x128xf32, #tpu.memory_space<vmem>>, %arg7: memref<1x128xf32, #tpu.memory_space<vmem>>) attributes {dimension_semantics = [#tpu.dimension_semantics<arbitrary>], iteration_bounds = array<i64: 1>, scalar_prefetch = 0 : i64, scratch_operands = 0 : i64, tpu.core_type = #tpu.core_type<tc>, window_params = [{transform_indices = @transform_0, window_bounds = array<i64: 8, 128>}, {transform_indices = @transform_1, window_bounds = array<i64: 8, 128>}, {pipeline_mode = #tpu.pipeline_mode<synchronous>, transform_indices = @transform_2, window_bounds = array<i64: 128, 128>}, {pipeline_mode = #tpu.pipeline_mode<synchronous>, transform_indices = @transform_3, window_bounds = array<i64: 128, 128>}, {transform_indices = @transform_4, window_bounds = array<i64: 8, 128>}, {pipeline_mode = #tpu.pipeline_mode<synchronous>, transform_indices = @transform_5, window_bounds = array<i64: 1, 128>}, {pipeline_mode = #tpu.pipeline_mode<synchronous>, transform_indices = @transform_6, window_bounds = array<i64: 1, 128>}]} {
    %c0_i32 = arith.constant 0 : i32
    %0 = arith.cmpi eq, %arg0, %c0_i32 : i32
    %1 = arith.extui %0 : i1 to i32
    %c0_i32_0 = arith.constant 0 : i32
    %2 = arith.cmpi ne, %1, %c0_i32_0 : i32
    scf.if %2 {
      %cst_21 = arith.constant 0.000000e+00 : f32
      %22 = vector.broadcast %cst_21 : f32 to vector<1x128xf32>
      %c0_22 = arith.constant 0 : index
      %c0_23 = arith.constant 0 : index
      %23 = vector.load %arg6[%c0_22, %c0_23] : memref<1x128xf32, #tpu.memory_space<vmem>>, vector<1x128xf32>
      tpu.vector_store %arg6[%c0_22, %c0_23], %22 {strides = array<i32>} : memref<1x128xf32, #tpu.memory_space<vmem>>, vector<1x128xf32>,
      %cst_24 = arith.constant 0.000000e+00 : f32
      %24 = vector.broadcast %cst_24 : f32 to vector<1x128xf32>
      %c0_25 = arith.constant 0 : index
      %c0_26 = arith.constant 0 : index
      %25 = vector.load %arg7[%c0_25, %c0_26] : memref<1x128xf32, #tpu.memory_space<vmem>>, vector<1x128xf32>
      tpu.vector_store %arg7[%c0_25, %c0_26], %24 {strides = array<i32>} : memref<1x128xf32, #tpu.memory_space<vmem>>, vector<1x128xf32>,
    } else {
    }
    %c0 = arith.constant 0 : index
    %c0_1 = arith.constant 0 : index
    %3 = vector.load %arg1[%c0, %c0_1] : memref<8x128xbf16, #tpu.memory_space<vmem>>, vector<8x128xbf16>
    %c0_2 = arith.constant 0 : index
    %c0_3 = arith.constant 0 : index
    %4 = vector.load %arg3[%c0_2, %c0_3] : memref<128x128xbf16, #tpu.memory_space<vmem>>, vector<128x128xbf16>
    %cst = arith.constant dense<0.000000e+00> : vector<8x128xf32>
    %5 = tpu.matmul %3, %4, %cst {dimension_numbers = #tpu.dot_dimension_numbers<[1], [0], [0], [1], [0, 0, 1, 1], [], []>} : vector<8x128xbf16>, vector<128x128xbf16>, vector<8x128xf32> -> vector<8x128xf32>
    %c0_4 = arith.constant 0 : index
    %c0_5 = arith.constant 0 : index
    %6 = vector.load %arg2[%c0_4, %c0_5] : memref<8x128xbf16, #tpu.memory_space<vmem>>, vector<8x128xbf16>
    %c0_6 = arith.constant 0 : index
    %c0_7 = arith.constant 0 : index
    %7 = vector.load %arg4[%c0_6, %c0_7] : memref<128x128xbf16, #tpu.memory_space<vmem>>, vector<128x128xbf16>
    %cst_8 = arith.constant dense<0.000000e+00> : vector<8x128xf32>
    %8 = tpu.matmul %6, %7, %cst_8 {dimension_numbers = #tpu.dot_dimension_numbers<[1], [0], [0], [1], [0, 0, 1, 1], [], []>} : vector<8x128xbf16>, vector<128x128xbf16>, vector<8x128xf32> -> vector<8x128xf32>
    %9 = arith.addf %5, %8 : vector<8x128xf32>
    %c0_9 = arith.constant 0 : index
    %c0_10 = arith.constant 0 : index
    %10 = vector.load %arg5[%c0_9, %c0_10] : memref<8x128xf32, #tpu.memory_space<vmem>>, vector<8x128xf32>
    tpu.vector_store %arg5[%c0_9, %c0_10], %9 {strides = array<i32>} : memref<8x128xf32, #tpu.memory_space<vmem>>, vector<8x128xf32>,
    %c0_11 = arith.constant 0 : index
    %c0_12 = arith.constant 0 : index
    %11 = vector.load %arg6[%c0_11, %c0_12] : memref<1x128xf32, #tpu.memory_space<vmem>>, vector<1x128xf32>
    %cst_13 = arith.constant dense<0.000000e+00> : vector<128xf32>
    %12 = vector.multi_reduction <add>, %9, %cst_13 [0] : vector<8x128xf32> to vector<128xf32>
    %13 = vector.shape_cast %12 : vector<128xf32> to vector<1x128xf32>
    %14 = arith.addf %11, %13 : vector<1x128xf32>
    %c0_14 = arith.constant 0 : index
    %c0_15 = arith.constant 0 : index
    %15 = vector.load %arg6[%c0_14, %c0_15] : memref<1x128xf32, #tpu.memory_space<vmem>>, vector<1x128xf32>
    tpu.vector_store %arg6[%c0_14, %c0_15], %14 {strides = array<i32>} : memref<1x128xf32, #tpu.memory_space<vmem>>, vector<1x128xf32>,
    %c0_16 = arith.constant 0 : index
    %c0_17 = arith.constant 0 : index
    %16 = vector.load %arg7[%c0_16, %c0_17] : memref<1x128xf32, #tpu.memory_space<vmem>>, vector<1x128xf32>
    %17 = arith.mulf %9, %9 : vector<8x128xf32>
    %cst_18 = arith.constant dense<0.000000e+00> : vector<128xf32>
    %18 = vector.multi_reduction <add>, %17, %cst_18 [0] : vector<8x128xf32> to vector<128xf32>
    %19 = vector.shape_cast %18 : vector<128xf32> to vector<1x128xf32>
    %20 = arith.addf %16, %19 : vector<1x128xf32>
    %c0_19 = arith.constant 0 : index
    %c0_20 = arith.constant 0 : index
    %21 = vector.load %arg7[%c0_19, %c0_20] : memref<1x128xf32, #tpu.memory_space<vmem>>, vector<1x128xf32>
    tpu.vector_store %arg7[%c0_19, %c0_20], %20 {strides = array<i32>} : memref<1x128xf32, #tpu.memory_space<vmem>>, vector<1x128xf32>,
    return
  }
  func.func @transform_0(%arg0: i32) -> (i32, i32) {
    %c0_i32 = arith.constant 0 : i32
    %c0_i32_0 = arith.constant 0 : i32
    return %arg0, %c0_i32 : i32, i32
  }
  func.func @transform_1(%arg0: i32) -> (i32, i32) {
    %c0_i32 = arith.constant 0 : i32
    %c0_i32_0 = arith.constant 0 : i32
    return %arg0, %c0_i32 : i32, i32
  }
  func.func @transform_2(%arg0: i32) -> (i32, i32) {
    %c0_i32 = arith.constant 0 : i32
    %c0_i32_0 = arith.constant 0 : i32
    %c0_i32_1 = arith.constant 0 : i32
    return %c0_i32, %c0_i32_0 : i32, i32
  }
  func.func @transform_3(%arg0: i32) -> (i32, i32) {
    %c0_i32 = arith.constant 0 : i32
    %c0_i32_0 = arith.constant 0 : i32
    %c0_i32_1 = arith.constant 0 : i32
    return %c0_i32, %c0_i32_0 : i32, i32
  }
  func.func @transform_4(%arg0: i32) -> (i32, i32) {
    %c0_i32 = arith.constant 0 : i32
    %c0_i32_0 = arith.constant 0 : i32
    return %arg0, %c0_i32 : i32, i32
  }
  func.func @transform_5(%arg0: i32) -> (i32, i32) {
    %c0_i32 = arith.constant 0 : i32
    %c0_i32_0 = arith.constant 0 : i32
    %c0_i32_1 = arith.constant 0 : i32
    return %c0_i32, %c0_i32_0 : i32, i32
  }
  func.func @transform_6(%arg0: i32) -> (i32, i32) {
    %c0_i32 = arith.constant 0 : i32
    %c0_i32_0 = arith.constant 0 : i32
    %c0_i32_1 = arith.constant 0 : i32
    return %c0_i32, %c0_i32_0 : i32, i32
  }
}

module attributes {stable_mosaic.version = 11 : i64} {
  func.func @kernel(%arg0: i32, %arg1: memref<8x128xf32, #tpu.memory_space<vmem>>, %arg2: memref<1x128xf32, #tpu.memory_space<vmem>>, %arg3: memref<1x128xf32, #tpu.memory_space<vmem>>, %arg4: memref<1x128xf32, #tpu.memory_space<vmem>>, %arg5: memref<1x128xf32, #tpu.memory_space<vmem>>, %arg6: memref<8x128xf32, #tpu.memory_space<vmem>>) attributes {dimension_semantics = [#tpu.dimension_semantics<parallel>], iteration_bounds = array<i64: 1>, scalar_prefetch = 0 : i64, scratch_operands = 0 : i64, tpu.core_type = #tpu.core_type<tc>, window_params = [{transform_indices = @transform_0, window_bounds = array<i64: 8, 128>}, {pipeline_mode = #tpu.pipeline_mode<synchronous>, transform_indices = @transform_1, window_bounds = array<i64: 1, 128>}, {pipeline_mode = #tpu.pipeline_mode<synchronous>, transform_indices = @transform_2, window_bounds = array<i64: 1, 128>}, {pipeline_mode = #tpu.pipeline_mode<synchronous>, transform_indices = @transform_3, window_bounds = array<i64: 1, 128>}, {pipeline_mode = #tpu.pipeline_mode<synchronous>, transform_indices = @transform_4, window_bounds = array<i64: 1, 128>}, {transform_indices = @transform_5, window_bounds = array<i64: 8, 128>}]} {
    %c0 = arith.constant 0 : index
    %c0_0 = arith.constant 0 : index
    %0 = vector.load %arg2[%c0, %c0_0] : memref<1x128xf32, #tpu.memory_space<vmem>>, vector<1x128xf32>
    %cst = arith.constant 5.000000e-01 : f32
    %1 = vector.broadcast %cst : f32 to vector<1x128xf32>
    %2 = arith.mulf %0, %1 : vector<1x128xf32>
    %c0_1 = arith.constant 0 : index
    %c0_2 = arith.constant 0 : index
    %3 = vector.load %arg3[%c0_1, %c0_2] : memref<1x128xf32, #tpu.memory_space<vmem>>, vector<1x128xf32>
    %cst_3 = arith.constant 5.000000e-01 : f32
    %4 = vector.broadcast %cst_3 : f32 to vector<1x128xf32>
    %5 = arith.mulf %3, %4 : vector<1x128xf32>
    %6 = arith.mulf %2, %2 : vector<1x128xf32>
    %7 = arith.subf %5, %6 : vector<1x128xf32>
    %cst_4 = arith.constant 0.000000e+00 : f32
    %8 = vector.broadcast %cst_4 : f32 to vector<1x128xf32>
    %9 = arith.maximumf %7, %8 : vector<1x128xf32>
    %c0_5 = arith.constant 0 : index
    %c0_6 = arith.constant 0 : index
    %10 = vector.load %arg4[%c0_5, %c0_6] : memref<1x128xf32, #tpu.memory_space<vmem>>, vector<1x128xf32>
    %cst_7 = arith.constant 9.99999974E-6 : f32
    %11 = vector.broadcast %cst_7 : f32 to vector<1x128xf32>
    %12 = arith.addf %9, %11 : vector<1x128xf32>
    %13 = math.rsqrt %12 : vector<1x128xf32>
    %14 = arith.mulf %10, %13 : vector<1x128xf32>
    %c0_8 = arith.constant 0 : index
    %c0_9 = arith.constant 0 : index
    %15 = vector.load %arg5[%c0_8, %c0_9] : memref<1x128xf32, #tpu.memory_space<vmem>>, vector<1x128xf32>
    %16 = arith.mulf %2, %14 : vector<1x128xf32>
    %17 = arith.subf %15, %16 : vector<1x128xf32>
    %c0_10 = arith.constant 0 : index
    %c0_11 = arith.constant 0 : index
    %18 = vector.load %arg1[%c0_10, %c0_11] : memref<8x128xf32, #tpu.memory_space<vmem>>, vector<8x128xf32>
    %19 = vector.broadcast %14 : vector<1x128xf32> to vector<8x128xf32>
    %20 = arith.mulf %18, %19 : vector<8x128xf32>
    %21 = vector.broadcast %17 : vector<1x128xf32> to vector<8x128xf32>
    %22 = arith.addf %20, %21 : vector<8x128xf32>
    %cst_12 = arith.constant 0.000000e+00 : f32
    %23 = vector.broadcast %cst_12 : f32 to vector<8x128xf32>
    %24 = arith.maximumf %22, %23 : vector<8x128xf32>
    %c0_13 = arith.constant 0 : index
    %c0_14 = arith.constant 0 : index
    %25 = vector.load %arg6[%c0_13, %c0_14] : memref<8x128xf32, #tpu.memory_space<vmem>>, vector<8x128xf32>
    tpu.vector_store %arg6[%c0_13, %c0_14], %24 {strides = array<i32>} : memref<8x128xf32, #tpu.memory_space<vmem>>, vector<8x128xf32>,
    return
  }
  func.func @transform_0(%arg0: i32) -> (i32, i32) {
    %c0_i32 = arith.constant 0 : i32
    %c0_i32_0 = arith.constant 0 : i32
    return %arg0, %c0_i32 : i32, i32
  }
  func.func @transform_1(%arg0: i32) -> (i32, i32) {
    %c0_i32 = arith.constant 0 : i32
    %c0_i32_0 = arith.constant 0 : i32
    %c0_i32_1 = arith.constant 0 : i32
    return %c0_i32, %c0_i32_0 : i32, i32
  }
  func.func @transform_2(%arg0: i32) -> (i32, i32) {
    %c0_i32 = arith.constant 0 : i32
    %c0_i32_0 = arith.constant 0 : i32
    %c0_i32_1 = arith.constant 0 : i32
    return %c0_i32, %c0_i32_0 : i32, i32
  }
  func.func @transform_3(%arg0: i32) -> (i32, i32) {
    %c0_i32 = arith.constant 0 : i32
    %c0_i32_0 = arith.constant 0 : i32
    %c0_i32_1 = arith.constant 0 : i32
    return %c0_i32, %c0_i32_0 : i32, i32
  }
  func.func @transform_4(%arg0: i32) -> (i32, i32) {
    %c0_i32 = arith.constant 0 : i32
    %c0_i32_0 = arith.constant 0 : i32
    %c0_i32_1 = arith.constant 0 : i32
    return %c0_i32, %c0_i32_0 : i32, i32
  }
  func.func @transform_5(%arg0: i32) -> (i32, i32) {
    %c0_i32 = arith.constant 0 : i32
    %c0_i32_0 = arith.constant 0 : i32
    return %arg0, %c0_i32 : i32, i32
  }
}

module attributes {stable_mosaic.version = 11 : i64} {
  func.func @kernel(%arg0: i32, %arg1: memref<32x128xbf16, #tpu.memory_space<vmem>>, %arg2: memref<32x128xbf16, #tpu.memory_space<vmem>>, %arg3: memref<128x128xbf16, #tpu.memory_space<vmem>>, %arg4: memref<128x128xbf16, #tpu.memory_space<vmem>>, %arg5: memref<32x128xf32, #tpu.memory_space<vmem>>, %arg6: memref<1x128xf32, #tpu.memory_space<vmem>>, %arg7: memref<1x128xf32, #tpu.memory_space<vmem>>) attributes {dimension_semantics = [#tpu.dimension_semantics<arbitrary>], iteration_bounds = array<i64: 1>, scalar_prefetch = 0 : i64, scratch_operands = 0 : i64, tpu.core_type = #tpu.core_type<tc>, window_params = [{transform_indices = @transform_0, window_bounds = array<i64: 32, 128>}, {transform_indices = @transform_1, window_bounds = array<i64: 32, 128>}, {pipeline_mode = #tpu.pipeline_mode<synchronous>, transform_indices = @transform_2, window_bounds = array<i64: 128, 128>}, {pipeline_mode = #tpu.pipeline_mode<synchronous>, transform_indices = @transform_3, window_bounds = array<i64: 128, 128>}, {transform_indices = @transform_4, window_bounds = array<i64: 32, 128>}, {pipeline_mode = #tpu.pipeline_mode<synchronous>, transform_indices = @transform_5, window_bounds = array<i64: 1, 128>}, {pipeline_mode = #tpu.pipeline_mode<synchronous>, transform_indices = @transform_6, window_bounds = array<i64: 1, 128>}]} {
    %c0_i32 = arith.constant 0 : i32
    %0 = arith.cmpi eq, %arg0, %c0_i32 : i32
    %1 = arith.extui %0 : i1 to i32
    %c0_i32_0 = arith.constant 0 : i32
    %2 = arith.cmpi ne, %1, %c0_i32_0 : i32
    scf.if %2 {
      %cst_21 = arith.constant 0.000000e+00 : f32
      %22 = vector.broadcast %cst_21 : f32 to vector<1x128xf32>
      %c0_22 = arith.constant 0 : index
      %c0_23 = arith.constant 0 : index
      %23 = vector.load %arg6[%c0_22, %c0_23] : memref<1x128xf32, #tpu.memory_space<vmem>>, vector<1x128xf32>
      tpu.vector_store %arg6[%c0_22, %c0_23], %22 {strides = array<i32>} : memref<1x128xf32, #tpu.memory_space<vmem>>, vector<1x128xf32>,
      %cst_24 = arith.constant 0.000000e+00 : f32
      %24 = vector.broadcast %cst_24 : f32 to vector<1x128xf32>
      %c0_25 = arith.constant 0 : index
      %c0_26 = arith.constant 0 : index
      %25 = vector.load %arg7[%c0_25, %c0_26] : memref<1x128xf32, #tpu.memory_space<vmem>>, vector<1x128xf32>
      tpu.vector_store %arg7[%c0_25, %c0_26], %24 {strides = array<i32>} : memref<1x128xf32, #tpu.memory_space<vmem>>, vector<1x128xf32>,
    } else {
    }
    %c0 = arith.constant 0 : index
    %c0_1 = arith.constant 0 : index
    %3 = vector.load %arg1[%c0, %c0_1] : memref<32x128xbf16, #tpu.memory_space<vmem>>, vector<32x128xbf16>
    %c0_2 = arith.constant 0 : index
    %c0_3 = arith.constant 0 : index
    %4 = vector.load %arg3[%c0_2, %c0_3] : memref<128x128xbf16, #tpu.memory_space<vmem>>, vector<128x128xbf16>
    %cst = arith.constant dense<0.000000e+00> : vector<32x128xf32>
    %5 = tpu.matmul %3, %4, %cst {dimension_numbers = #tpu.dot_dimension_numbers<[1], [0], [0], [1], [0, 0, 1, 1], [], []>} : vector<32x128xbf16>, vector<128x128xbf16>, vector<32x128xf32> -> vector<32x128xf32>
    %c0_4 = arith.constant 0 : index
    %c0_5 = arith.constant 0 : index
    %6 = vector.load %arg2[%c0_4, %c0_5] : memref<32x128xbf16, #tpu.memory_space<vmem>>, vector<32x128xbf16>
    %c0_6 = arith.constant 0 : index
    %c0_7 = arith.constant 0 : index
    %7 = vector.load %arg4[%c0_6, %c0_7] : memref<128x128xbf16, #tpu.memory_space<vmem>>, vector<128x128xbf16>
    %cst_8 = arith.constant dense<0.000000e+00> : vector<32x128xf32>
    %8 = tpu.matmul %6, %7, %cst_8 {dimension_numbers = #tpu.dot_dimension_numbers<[1], [0], [0], [1], [0, 0, 1, 1], [], []>} : vector<32x128xbf16>, vector<128x128xbf16>, vector<32x128xf32> -> vector<32x128xf32>
    %9 = arith.addf %5, %8 : vector<32x128xf32>
    %c0_9 = arith.constant 0 : index
    %c0_10 = arith.constant 0 : index
    %10 = vector.load %arg5[%c0_9, %c0_10] : memref<32x128xf32, #tpu.memory_space<vmem>>, vector<32x128xf32>
    tpu.vector_store %arg5[%c0_9, %c0_10], %9 {strides = array<i32>} : memref<32x128xf32, #tpu.memory_space<vmem>>, vector<32x128xf32>,
    %c0_11 = arith.constant 0 : index
    %c0_12 = arith.constant 0 : index
    %11 = vector.load %arg6[%c0_11, %c0_12] : memref<1x128xf32, #tpu.memory_space<vmem>>, vector<1x128xf32>
    %cst_13 = arith.constant dense<0.000000e+00> : vector<128xf32>
    %12 = vector.multi_reduction <add>, %9, %cst_13 [0] : vector<32x128xf32> to vector<128xf32>
    %13 = vector.shape_cast %12 : vector<128xf32> to vector<1x128xf32>
    %14 = arith.addf %11, %13 : vector<1x128xf32>
    %c0_14 = arith.constant 0 : index
    %c0_15 = arith.constant 0 : index
    %15 = vector.load %arg6[%c0_14, %c0_15] : memref<1x128xf32, #tpu.memory_space<vmem>>, vector<1x128xf32>
    tpu.vector_store %arg6[%c0_14, %c0_15], %14 {strides = array<i32>} : memref<1x128xf32, #tpu.memory_space<vmem>>, vector<1x128xf32>,
    %c0_16 = arith.constant 0 : index
    %c0_17 = arith.constant 0 : index
    %16 = vector.load %arg7[%c0_16, %c0_17] : memref<1x128xf32, #tpu.memory_space<vmem>>, vector<1x128xf32>
    %17 = arith.mulf %9, %9 : vector<32x128xf32>
    %cst_18 = arith.constant dense<0.000000e+00> : vector<128xf32>
    %18 = vector.multi_reduction <add>, %17, %cst_18 [0] : vector<32x128xf32> to vector<128xf32>
    %19 = vector.shape_cast %18 : vector<128xf32> to vector<1x128xf32>
    %20 = arith.addf %16, %19 : vector<1x128xf32>
    %c0_19 = arith.constant 0 : index
    %c0_20 = arith.constant 0 : index
    %21 = vector.load %arg7[%c0_19, %c0_20] : memref<1x128xf32, #tpu.memory_space<vmem>>, vector<1x128xf32>
    tpu.vector_store %arg7[%c0_19, %c0_20], %20 {strides = array<i32>} : memref<1x128xf32, #tpu.memory_space<vmem>>, vector<1x128xf32>,
    return
  }
  func.func @transform_0(%arg0: i32) -> (i32, i32) {
    %c0_i32 = arith.constant 0 : i32
    %c0_i32_0 = arith.constant 0 : i32
    return %arg0, %c0_i32 : i32, i32
  }
  func.func @transform_1(%arg0: i32) -> (i32, i32) {
    %c0_i32 = arith.constant 0 : i32
    %c0_i32_0 = arith.constant 0 : i32
    return %arg0, %c0_i32 : i32, i32
  }
  func.func @transform_2(%arg0: i32) -> (i32, i32) {
    %c0_i32 = arith.constant 0 : i32
    %c0_i32_0 = arith.constant 0 : i32
    %c0_i32_1 = arith.constant 0 : i32
    return %c0_i32, %c0_i32_0 : i32, i32
  }
  func.func @transform_3(%arg0: i32) -> (i32, i32) {
    %c0_i32 = arith.constant 0 : i32
    %c0_i32_0 = arith.constant 0 : i32
    %c0_i32_1 = arith.constant 0 : i32
    return %c0_i32, %c0_i32_0 : i32, i32
  }
  func.func @transform_4(%arg0: i32) -> (i32, i32) {
    %c0_i32 = arith.constant 0 : i32
    %c0_i32_0 = arith.constant 0 : i32
    return %arg0, %c0_i32 : i32, i32
  }
  func.func @transform_5(%arg0: i32) -> (i32, i32) {
    %c0_i32 = arith.constant 0 : i32
    %c0_i32_0 = arith.constant 0 : i32
    %c0_i32_1 = arith.constant 0 : i32
    return %c0_i32, %c0_i32_0 : i32, i32
  }
  func.func @transform_6(%arg0: i32) -> (i32, i32) {
    %c0_i32 = arith.constant 0 : i32
    %c0_i32_0 = arith.constant 0 : i32
    %c0_i32_1 = arith.constant 0 : i32
    return %c0_i32, %c0_i32_0 : i32, i32
  }
}

module attributes {stable_mosaic.version = 11 : i64} {
  func.func @kernel(%arg0: i32, %arg1: memref<512x128xbf16, #tpu.memory_space<vmem>>, %arg2: memref<512x128xbf16, #tpu.memory_space<vmem>>, %arg3: memref<128x128xbf16, #tpu.memory_space<vmem>>, %arg4: memref<128x128xbf16, #tpu.memory_space<vmem>>, %arg5: memref<512x128xf32, #tpu.memory_space<vmem>>, %arg6: memref<1x128xf32, #tpu.memory_space<vmem>>, %arg7: memref<1x128xf32, #tpu.memory_space<vmem>>) attributes {dimension_semantics = [#tpu.dimension_semantics<arbitrary>], iteration_bounds = array<i64: 1>, scalar_prefetch = 0 : i64, scratch_operands = 0 : i64, tpu.core_type = #tpu.core_type<tc>, window_params = [{transform_indices = @transform_0, window_bounds = array<i64: 512, 128>}, {transform_indices = @transform_1, window_bounds = array<i64: 512, 128>}, {pipeline_mode = #tpu.pipeline_mode<synchronous>, transform_indices = @transform_2, window_bounds = array<i64: 128, 128>}, {pipeline_mode = #tpu.pipeline_mode<synchronous>, transform_indices = @transform_3, window_bounds = array<i64: 128, 128>}, {transform_indices = @transform_4, window_bounds = array<i64: 512, 128>}, {pipeline_mode = #tpu.pipeline_mode<synchronous>, transform_indices = @transform_5, window_bounds = array<i64: 1, 128>}, {pipeline_mode = #tpu.pipeline_mode<synchronous>, transform_indices = @transform_6, window_bounds = array<i64: 1, 128>}]} {
    %c0_i32 = arith.constant 0 : i32
    %0 = arith.cmpi eq, %arg0, %c0_i32 : i32
    %1 = arith.extui %0 : i1 to i32
    %c0_i32_0 = arith.constant 0 : i32
    %2 = arith.cmpi ne, %1, %c0_i32_0 : i32
    scf.if %2 {
      %cst_21 = arith.constant 0.000000e+00 : f32
      %22 = vector.broadcast %cst_21 : f32 to vector<1x128xf32>
      %c0_22 = arith.constant 0 : index
      %c0_23 = arith.constant 0 : index
      %23 = vector.load %arg6[%c0_22, %c0_23] : memref<1x128xf32, #tpu.memory_space<vmem>>, vector<1x128xf32>
      tpu.vector_store %arg6[%c0_22, %c0_23], %22 {strides = array<i32>} : memref<1x128xf32, #tpu.memory_space<vmem>>, vector<1x128xf32>,
      %cst_24 = arith.constant 0.000000e+00 : f32
      %24 = vector.broadcast %cst_24 : f32 to vector<1x128xf32>
      %c0_25 = arith.constant 0 : index
      %c0_26 = arith.constant 0 : index
      %25 = vector.load %arg7[%c0_25, %c0_26] : memref<1x128xf32, #tpu.memory_space<vmem>>, vector<1x128xf32>
      tpu.vector_store %arg7[%c0_25, %c0_26], %24 {strides = array<i32>} : memref<1x128xf32, #tpu.memory_space<vmem>>, vector<1x128xf32>,
    } else {
    }
    %c0 = arith.constant 0 : index
    %c0_1 = arith.constant 0 : index
    %3 = vector.load %arg1[%c0, %c0_1] : memref<512x128xbf16, #tpu.memory_space<vmem>>, vector<512x128xbf16>
    %c0_2 = arith.constant 0 : index
    %c0_3 = arith.constant 0 : index
    %4 = vector.load %arg3[%c0_2, %c0_3] : memref<128x128xbf16, #tpu.memory_space<vmem>>, vector<128x128xbf16>
    %cst = arith.constant dense<0.000000e+00> : vector<512x128xf32>
    %5 = tpu.matmul %3, %4, %cst {dimension_numbers = #tpu.dot_dimension_numbers<[1], [0], [0], [1], [0, 0, 1, 1], [], []>} : vector<512x128xbf16>, vector<128x128xbf16>, vector<512x128xf32> -> vector<512x128xf32>
    %c0_4 = arith.constant 0 : index
    %c0_5 = arith.constant 0 : index
    %6 = vector.load %arg2[%c0_4, %c0_5] : memref<512x128xbf16, #tpu.memory_space<vmem>>, vector<512x128xbf16>
    %c0_6 = arith.constant 0 : index
    %c0_7 = arith.constant 0 : index
    %7 = vector.load %arg4[%c0_6, %c0_7] : memref<128x128xbf16, #tpu.memory_space<vmem>>, vector<128x128xbf16>
    %cst_8 = arith.constant dense<0.000000e+00> : vector<512x128xf32>
    %8 = tpu.matmul %6, %7, %cst_8 {dimension_numbers = #tpu.dot_dimension_numbers<[1], [0], [0], [1], [0, 0, 1, 1], [], []>} : vector<512x128xbf16>, vector<128x128xbf16>, vector<512x128xf32> -> vector<512x128xf32>
    %9 = arith.addf %5, %8 : vector<512x128xf32>
    %c0_9 = arith.constant 0 : index
    %c0_10 = arith.constant 0 : index
    %10 = vector.load %arg5[%c0_9, %c0_10] : memref<512x128xf32, #tpu.memory_space<vmem>>, vector<512x128xf32>
    tpu.vector_store %arg5[%c0_9, %c0_10], %9 {strides = array<i32>} : memref<512x128xf32, #tpu.memory_space<vmem>>, vector<512x128xf32>,
    %c0_11 = arith.constant 0 : index
    %c0_12 = arith.constant 0 : index
    %11 = vector.load %arg6[%c0_11, %c0_12] : memref<1x128xf32, #tpu.memory_space<vmem>>, vector<1x128xf32>
    %cst_13 = arith.constant dense<0.000000e+00> : vector<128xf32>
    %12 = vector.multi_reduction <add>, %9, %cst_13 [0] : vector<512x128xf32> to vector<128xf32>
    %13 = vector.shape_cast %12 : vector<128xf32> to vector<1x128xf32>
    %14 = arith.addf %11, %13 : vector<1x128xf32>
    %c0_14 = arith.constant 0 : index
    %c0_15 = arith.constant 0 : index
    %15 = vector.load %arg6[%c0_14, %c0_15] : memref<1x128xf32, #tpu.memory_space<vmem>>, vector<1x128xf32>
    tpu.vector_store %arg6[%c0_14, %c0_15], %14 {strides = array<i32>} : memref<1x128xf32, #tpu.memory_space<vmem>>, vector<1x128xf32>,
    %c0_16 = arith.constant 0 : index
    %c0_17 = arith.constant 0 : index
    %16 = vector.load %arg7[%c0_16, %c0_17] : memref<1x128xf32, #tpu.memory_space<vmem>>, vector<1x128xf32>
    %17 = arith.mulf %9, %9 : vector<512x128xf32>
    %cst_18 = arith.constant dense<0.000000e+00> : vector<128xf32>
    %18 = vector.multi_reduction <add>, %17, %cst_18 [0] : vector<512x128xf32> to vector<128xf32>
    %19 = vector.shape_cast %18 : vector<128xf32> to vector<1x128xf32>
    %20 = arith.addf %16, %19 : vector<1x128xf32>
    %c0_19 = arith.constant 0 : index
    %c0_20 = arith.constant 0 : index
    %21 = vector.load %arg7[%c0_19, %c0_20] : memref<1x128xf32, #tpu.memory_space<vmem>>, vector<1x128xf32>
    tpu.vector_store %arg7[%c0_19, %c0_20], %20 {strides = array<i32>} : memref<1x128xf32, #tpu.memory_space<vmem>>, vector<1x128xf32>,
    return
  }
  func.func @transform_0(%arg0: i32) -> (i32, i32) {
    %c0_i32 = arith.constant 0 : i32
    %c0_i32_0 = arith.constant 0 : i32
    return %arg0, %c0_i32 : i32, i32
  }
  func.func @transform_1(%arg0: i32) -> (i32, i32) {
    %c0_i32 = arith.constant 0 : i32
    %c0_i32_0 = arith.constant 0 : i32
    return %arg0, %c0_i32 : i32, i32
  }
  func.func @transform_2(%arg0: i32) -> (i32, i32) {
    %c0_i32 = arith.constant 0 : i32
    %c0_i32_0 = arith.constant 0 : i32
    %c0_i32_1 = arith.constant 0 : i32
    return %c0_i32, %c0_i32_0 : i32, i32
  }
  func.func @transform_3(%arg0: i32) -> (i32, i32) {
    %c0_i32 = arith.constant 0 : i32
    %c0_i32_0 = arith.constant 0 : i32
    %c0_i32_1 = arith.constant 0 : i32
    return %c0_i32, %c0_i32_0 : i32, i32
  }
  func.func @transform_4(%arg0: i32) -> (i32, i32) {
    %c0_i32 = arith.constant 0 : i32
    %c0_i32_0 = arith.constant 0 : i32
    return %arg0, %c0_i32 : i32, i32
  }
  func.func @transform_5(%arg0: i32) -> (i32, i32) {
    %c0_i32 = arith.constant 0 : i32
    %c0_i32_0 = arith.constant 0 : i32
    %c0_i32_1 = arith.constant 0 : i32
    return %c0_i32, %c0_i32_0 : i32, i32
  }
  func.func @transform_6(%arg0: i32) -> (i32, i32) {
    %c0_i32 = arith.constant 0 : i32
    %c0_i32_0 = arith.constant 0 : i32
    %c0_i32_1 = arith.constant 0 : i32
    return %c0_i32, %c0_i32_0 : i32, i32
  }
}

module attributes {stable_mosaic.version = 11 : i64} {
  func.func @kernel(%arg0: i32, %arg1: memref<512x128xf32, #tpu.memory_space<vmem>>, %arg2: memref<1x128xf32, #tpu.memory_space<vmem>>, %arg3: memref<1x128xf32, #tpu.memory_space<vmem>>, %arg4: memref<1x128xf32, #tpu.memory_space<vmem>>, %arg5: memref<1x128xf32, #tpu.memory_space<vmem>>, %arg6: memref<512x128xf32, #tpu.memory_space<vmem>>, %arg7: memref<512x128xf32, #tpu.memory_space<vmem>>) attributes {dimension_semantics = [#tpu.dimension_semantics<parallel>], iteration_bounds = array<i64: 1>, scalar_prefetch = 0 : i64, scratch_operands = 0 : i64, tpu.core_type = #tpu.core_type<tc>, window_params = [{transform_indices = @transform_0, window_bounds = array<i64: 512, 128>}, {pipeline_mode = #tpu.pipeline_mode<synchronous>, transform_indices = @transform_1, window_bounds = array<i64: 1, 128>}, {pipeline_mode = #tpu.pipeline_mode<synchronous>, transform_indices = @transform_2, window_bounds = array<i64: 1, 128>}, {pipeline_mode = #tpu.pipeline_mode<synchronous>, transform_indices = @transform_3, window_bounds = array<i64: 1, 128>}, {pipeline_mode = #tpu.pipeline_mode<synchronous>, transform_indices = @transform_4, window_bounds = array<i64: 1, 128>}, {transform_indices = @transform_5, window_bounds = array<i64: 512, 128>}, {transform_indices = @transform_6, window_bounds = array<i64: 512, 128>}]} {
    %c0 = arith.constant 0 : index
    %c0_0 = arith.constant 0 : index
    %0 = vector.load %arg2[%c0, %c0_0] : memref<1x128xf32, #tpu.memory_space<vmem>>, vector<1x128xf32>
    %cst = arith.constant 0.001953125 : f32
    %1 = vector.broadcast %cst : f32 to vector<1x128xf32>
    %2 = arith.mulf %0, %1 : vector<1x128xf32>
    %c0_1 = arith.constant 0 : index
    %c0_2 = arith.constant 0 : index
    %3 = vector.load %arg3[%c0_1, %c0_2] : memref<1x128xf32, #tpu.memory_space<vmem>>, vector<1x128xf32>
    %cst_3 = arith.constant 0.001953125 : f32
    %4 = vector.broadcast %cst_3 : f32 to vector<1x128xf32>
    %5 = arith.mulf %3, %4 : vector<1x128xf32>
    %6 = arith.mulf %2, %2 : vector<1x128xf32>
    %7 = arith.subf %5, %6 : vector<1x128xf32>
    %cst_4 = arith.constant 0.000000e+00 : f32
    %8 = vector.broadcast %cst_4 : f32 to vector<1x128xf32>
    %9 = arith.maximumf %7, %8 : vector<1x128xf32>
    %c0_5 = arith.constant 0 : index
    %c0_6 = arith.constant 0 : index
    %10 = vector.load %arg4[%c0_5, %c0_6] : memref<1x128xf32, #tpu.memory_space<vmem>>, vector<1x128xf32>
    %cst_7 = arith.constant 9.99999974E-6 : f32
    %11 = vector.broadcast %cst_7 : f32 to vector<1x128xf32>
    %12 = arith.addf %9, %11 : vector<1x128xf32>
    %13 = math.rsqrt %12 : vector<1x128xf32>
    %14 = arith.mulf %10, %13 : vector<1x128xf32>
    %c0_8 = arith.constant 0 : index
    %c0_9 = arith.constant 0 : index
    %15 = vector.load %arg5[%c0_8, %c0_9] : memref<1x128xf32, #tpu.memory_space<vmem>>, vector<1x128xf32>
    %16 = arith.mulf %2, %14 : vector<1x128xf32>
    %17 = arith.subf %15, %16 : vector<1x128xf32>
    %c0_10 = arith.constant 0 : index
    %c0_11 = arith.constant 0 : index
    %18 = vector.load %arg1[%c0_10, %c0_11] : memref<512x128xf32, #tpu.memory_space<vmem>>, vector<512x128xf32>
    %19 = vector.broadcast %14 : vector<1x128xf32> to vector<512x128xf32>
    %20 = arith.mulf %18, %19 : vector<512x128xf32>
    %21 = vector.broadcast %17 : vector<1x128xf32> to vector<512x128xf32>
    %22 = arith.addf %20, %21 : vector<512x128xf32>
    %cst_12 = arith.constant 0.000000e+00 : f32
    %23 = vector.broadcast %cst_12 : f32 to vector<512x128xf32>
    %24 = arith.maximumf %22, %23 : vector<512x128xf32>
    %c0_13 = arith.constant 0 : index
    %c0_14 = arith.constant 0 : index
    %25 = vector.load %arg6[%c0_13, %c0_14] : memref<512x128xf32, #tpu.memory_space<vmem>>, vector<512x128xf32>
    %26 = arith.addf %24, %25 : vector<512x128xf32>
    %c0_15 = arith.constant 0 : index
    %c0_16 = arith.constant 0 : index
    %27 = vector.load %arg7[%c0_15, %c0_16] : memref<512x128xf32, #tpu.memory_space<vmem>>, vector<512x128xf32>
    tpu.vector_store %arg7[%c0_15, %c0_16], %26 {strides = array<i32>} : memref<512x128xf32, #tpu.memory_space<vmem>>, vector<512x128xf32>,
    return
  }
  func.func @transform_0(%arg0: i32) -> (i32, i32) {
    %c0_i32 = arith.constant 0 : i32
    %c0_i32_0 = arith.constant 0 : i32
    return %arg0, %c0_i32 : i32, i32
  }
  func.func @transform_1(%arg0: i32) -> (i32, i32) {
    %c0_i32 = arith.constant 0 : i32
    %c0_i32_0 = arith.constant 0 : i32
    %c0_i32_1 = arith.constant 0 : i32
    return %c0_i32, %c0_i32_0 : i32, i32
  }
  func.func @transform_2(%arg0: i32) -> (i32, i32) {
    %c0_i32 = arith.constant 0 : i32
    %c0_i32_0 = arith.constant 0 : i32
    %c0_i32_1 = arith.constant 0 : i32
    return %c0_i32, %c0_i32_0 : i32, i32
  }
  func.func @transform_3(%arg0: i32) -> (i32, i32) {
    %c0_i32 = arith.constant 0 : i32
    %c0_i32_0 = arith.constant 0 : i32
    %c0_i32_1 = arith.constant 0 : i32
    return %c0_i32, %c0_i32_0 : i32, i32
  }
  func.func @transform_4(%arg0: i32) -> (i32, i32) {
    %c0_i32 = arith.constant 0 : i32
    %c0_i32_0 = arith.constant 0 : i32
    %c0_i32_1 = arith.constant 0 : i32
    return %c0_i32, %c0_i32_0 : i32, i32
  }
  func.func @transform_5(%arg0: i32) -> (i32, i32) {
    %c0_i32 = arith.constant 0 : i32
    %c0_i32_0 = arith.constant 0 : i32
    return %arg0, %c0_i32 : i32, i32
  }
  func.func @transform_6(%arg0: i32) -> (i32, i32) {
    %c0_i32 = arith.constant 0 : i32
    %c0_i32_0 = arith.constant 0 : i32
    return %arg0, %c0_i32 : i32, i32
  }
}

</mosaic_0001>

<bundles_post_ra>
// kernel: rsu6_forward.24
= control target key start
LH: loop header
LB: loop body
LE: loop exit
PB: predicated region body
PF: predicated region fallthrough
CT: control target
= control target key end

     0   :  { %v1131_v40 = vmov 0.0   ;;  %s1679_s1 = inlined_call_operand.vmem [shape: bf16[128,128], index: 1, kind: input, shape index: {}]   ;;  %s1680_s0 = inlined_call_operand.vmem [shape: bf16[512,128], index: 0, kind: input, shape index: {}]   ;;  %s1681_s3 = inlined_call_operand.vmem [shape: f32[1,128], index: 3, kind: output, shape index: {1}]   ;;  %s1682_s4 = inlined_call_operand.vmem [shape: f32[1,128], index: 4, kind: output, shape index: {2}]   ;;  %s1683_s2 = inlined_call_operand.vmem [shape: f32[512,128], index: 2, kind: output, shape index: {0}]  }
   0x1   :  { %v1091_v0 = vld [vmem:[%s1679_s1] sm:$0xff]   ;;  %v1092_v1 = vld [vmem:[%s1679_s1 + $0x8] sm:$0xff]   ;;  %v1093_v2 = vld [vmem:[%s1679_s1 + $0x10] sm:$0xff]   ;;  %19 = vst [vmem:[%s1681_s3] sm:$0x1] %v1131_v40 }
   0x2   :  { %994 = vmatprep.subr.bf16.mxu0 %v1091_v0  ;;  %1074 = vmatprep.subr.bf16.mxu1 %v1091_v0  ;;  %v1094_v3 = vld [vmem:[%s1679_s1 + $0x18] sm:$0xff]   ;;  %v1099_v4 = vld [vmem:[%s1680_s0] sm:$0xff]   ;;  %v1096_v6 = vld [vmem:[%s1679_s1 + $0x28] sm:$0xff]   ;;  %20 = vst [vmem:[%s1682_s4] sm:$0x1] %v1131_v40 }
   0x3   :  { %995 = vmatpush3.bf16.msra.mxu0 %v1091_v0  ;;  %1082 = vmatpush3.bf16.msra.mxu1 %v1091_v0  ;;  %v1095_v5 = vld [vmem:[%s1679_s1 + $0x20] sm:$0xff]   ;;  %v1097_v7 = vld [vmem:[%s1679_s1 + $0x30] sm:$0xff]   ;;  %v1098_v8 = vld [vmem:[%s1679_s1 + $0x38] sm:$0xff]  }
   0x4   :  { %996 = vmatprep.subr.bf16.mxu0 %v1092_v1  ;;  %1075 = vmatprep.subr.bf16.mxu1 %v1092_v1  ;;  %v1115_v9 = vld [vmem:[%s1680_s0 + $0x80] sm:$0xff]   ;;  %v1100_v10 = vld [vmem:[%s1680_s0 + $0x8] sm:$0xff]   ;;  %v1101_v11 = vld [vmem:[%s1680_s0 + $0x10] sm:$0xff]  }
   0x5   :  { %1010 = vmatprep.mubr.bf16.mxu0 %v1099_v4  ;;  %1042 = vmatprep.mubr.bf16.mxu1 %v1115_v9  ;;  %v1116_v12 = vld [vmem:[%s1680_s0 + $0x88] sm:$0xff]   ;;  %v1117_v13 = vld [vmem:[%s1680_s0 + $0x90] sm:$0xff]   ;;  %v1102_v14 = vld [vmem:[%s1680_s0 + $0x18] sm:$0xff]  }
   0x6   :  { %v1103_v15 = vld [vmem:[%s1680_s0 + $0x20] sm:$0xff]   ;;  %v1118_v16 = vld [vmem:[%s1680_s0 + $0x98] sm:$0xff]   ;;  %v1104_v18 = vld [vmem:[%s1680_s0 + $0x28] sm:$0xff]  }
   0x7   :  { %997 = vmatpush3.bf16.msra.mxu0 %v1092_v1  ;;  %1083 = vmatpush3.bf16.msra.mxu1 %v1092_v1  ;;  %v1119_v17 = vld [vmem:[%s1680_s0 + $0xa0] sm:$0xff]   ;;  %v1120_v19 = vld [vmem:[%s1680_s0 + $0xa8] sm:$0xff]   ;;  %v1105_v20 = vld [vmem:[%s1680_s0 + $0x30] sm:$0xff]  }
   0x8   :  { %998 = vmatprep.subr.bf16.mxu0 %v1093_v2  ;;  %1076 = vmatprep.subr.bf16.mxu1 %v1093_v2  ;;  %v1121_v21 = vld [vmem:[%s1680_s0 + $0xb0] sm:$0xff]   ;;  %v1106_v22 = vld [vmem:[%s1680_s0 + $0x38] sm:$0xff]   ;;  %v1107_v24 = vld [vmem:[%s1680_s0 + $0x40] sm:$0xff]  }
   0x9   :  { %v1122_v23 = vld [vmem:[%s1680_s0 + $0xb8] sm:$0xff]   ;;  %v1123_v25 = vld [vmem:[%s1680_s0 + $0xc0] sm:$0xff]   ;;  %v1108_v26 = vld [vmem:[%s1680_s0 + $0x48] sm:$0xff]  }
   0xa   :  { %v1124_v27 = vld [vmem:[%s1680_s0 + $0xc8] sm:$0xff]   ;;  %v1109_v28 = vld [vmem:[%s1680_s0 + $0x50] sm:$0xff]   ;;  %v1110_v30 = vld [vmem:[%s1680_s0 + $0x58] sm:$0xff]  }
   0xb   :  { %999 = vmatpush3.bf16.msra.mxu0 %v1093_v2  ;;  %1084 = vmatpush3.bf16.msra.mxu1 %v1093_v2  ;;  %v1125_v29 = vld [vmem:[%s1680_s0 + $0xd0] sm:$0xff]   ;;  %v1126_v31 = vld [vmem:[%s1680_s0 + $0xd8] sm:$0xff]   ;;  %v1111_v32 = vld [vmem:[%s1680_s0 + $0x60] sm:$0xff]  }
   0xc   :  { %1000 = vmatprep.subr.bf16.mxu0 %v1094_v3  ;;  %1077 = vmatprep.subr.bf16.mxu1 %v1094_v3  ;;  %v1127_v33 = vld [vmem:[%s1680_s0 + $0xe0] sm:$0xff]   ;;  %v1112_v34 = vld [vmem:[%s1680_s0 + $0x68] sm:$0xff]   ;;  %v1113_v36 = vld [vmem:[%s1680_s0 + $0x70] sm:$0xff]  }
   0xd   :  { %v1128_v35 = vld [vmem:[%s1680_s0 + $0xe8] sm:$0xff]   ;;  %v1129_v37 = vld [vmem:[%s1680_s0 + $0xf0] sm:$0xff]   ;;  %v1114_v38 = vld [vmem:[%s1680_s0 + $0x78] sm:$0xff]  }
   0xe   :  { %v1130_v39 = vld [vmem:[%s1680_s0 + $0xf8] sm:$0xff]  }
   0xf   :  { %1001 = vmatpush3.bf16.msra.mxu0 %v1094_v3  ;;  %1085 = vmatpush3.bf16.msra.mxu1 %v1094_v3 }
  0x10   :  { %1002 = vmatprep.subr.bf16.mxu0 %v1095_v5  ;;  %1078 = vmatprep.subr.bf16.mxu1 %v1095_v5 }
  0x13   :  { %1003 = vmatpush3.bf16.msra.mxu0 %v1095_v5  ;;  %1086 = vmatpush3.bf16.msra.mxu1 %v1095_v5 }
  0x14   :  { %1004 = vmatprep.subr.bf16.mxu0 %v1096_v6  ;;  %1079 = vmatprep.subr.bf16.mxu1 %v1096_v6 }
  0x17   :  { %1005 = vmatpush3.bf16.msra.mxu0 %v1096_v6  ;;  %1087 = vmatpush3.bf16.msra.mxu1 %v1096_v6 }
  0x18   :  { %1006 = vmatprep.subr.bf16.mxu0 %v1097_v7  ;;  %1080 = vmatprep.subr.bf16.mxu1 %v1097_v7 }
  0x1b   :  { %1007 = vmatpush3.bf16.msra.mxu0 %v1097_v7  ;;  %1088 = vmatpush3.bf16.msra.mxu1 %v1097_v7 }
  0x1c   :  { %1008 = vmatprep.subr.bf16.mxu0 %v1098_v8  ;;  %1081 = vmatprep.subr.bf16.mxu1 %v1098_v8 }
  0x1f   :  { %1009 = vmatpush3.bf16.msra.mxu0 %v1098_v8  ;;  %1089 = vmatpush3.bf16.msra.mxu1 %v1098_v8 }
  0x22   :  { %1011 = vmatmul.mubr.bf16.vlgmr.msra.gmra.mrb[0].mxu0 %v1100_v10  ;;  %1043 = vmatmul.mubr.bf16.vlgmr.msra.gmra.mrb[0].mxu1 %v1116_v12 }
  0x23   :  { %1014 = vmatprep.mubr.bf16.mxu0 %v1101_v11  ;;  %1046 = vmatprep.mubr.bf16.mxu1 %v1117_v13 }
  0x2a   :  { %1015 = vmatmul.mubr.bf16.gmra.mrb[4].mxu0 %v1102_v14  ;;  %1047 = vmatmul.mubr.bf16.gmra.mrb[4].mxu1 %v1118_v16 }
  0x2b   :  { %1018 = vmatprep.mubr.bf16.mxu0 %v1103_v15  ;;  %1050 = vmatprep.mubr.bf16.mxu1 %v1119_v17 }
  0x32   :  { %1019 = vmatmul.mubr.bf16.gmra.mrb[8].mxu0 %v1104_v18  ;;  %1051 = vmatmul.mubr.bf16.gmra.mrb[8].mxu1 %v1120_v19 }
  0x33   :  { %1022 = vmatprep.mubr.bf16.mxu0 %v1105_v20  ;;  %1054 = vmatprep.mubr.bf16.mxu1 %v1121_v21 }
  0x3a   :  { %1023 = vmatmul.mubr.bf16.gmra.mrb[12].mxu0 %v1106_v22  ;;  %1055 = vmatmul.mubr.bf16.gmra.mrb[12].mxu1 %v1122_v23 }
  0x3b   :  { %1026 = vmatprep.mubr.bf16.mxu0 %v1107_v24  ;;  %1058 = vmatprep.mubr.bf16.mxu1 %v1123_v25 }
  0x42   :  { %1027 = vmatmul.mubr.bf16.gmra.mrb[16].mxu0 %v1108_v26  ;;  %1059 = vmatmul.mubr.bf16.gmra.mrb[16].mxu1 %v1124_v27 }
  0x43   :  { %1030 = vmatprep.mubr.bf16.mxu0 %v1109_v28  ;;  %1062 = vmatprep.mubr.bf16.mxu1 %v1125_v29 }
  0x4a   :  { %1031 = vmatmul.mubr.bf16.gmra.mrb[20].mxu0 %v1110_v30  ;;  %1063 = vmatmul.mubr.bf16.gmra.mrb[20].mxu1 %v1126_v31 }
  0x4b   :  { %1034 = vmatprep.mubr.bf16.mxu0 %v1111_v32  ;;  %1066 = vmatprep.mubr.bf16.mxu1 %v1127_v33 }
  0x52   :  { %1035 = vmatmul.mubr.bf16.gmra.mrb[24].mxu0 %v1112_v34  ;;  %1067 = vmatmul.mubr.bf16.gmra.mrb[24].mxu1 %v1128_v35 }
  0x53   :  { %1038 = vmatprep.mubr.bf16.mxu0 %v1113_v36  ;;  %1070 = vmatprep.mubr.bf16.mxu1 %v1129_v37 }
  0x5a   :  { %1039 = vmatmul.mubr.bf16.gmra.mrb[28].mxu0 %v1114_v38  ;;  %1071 = vmatmul.mubr.bf16.gmra.mrb[28].mxu1 %v1130_v39 }
  0xf5   :  { %v1012_v41 = vpop.f32.mrb[0].mxu0  ;;  %v1283_v42 = vpop.f32.mrb[0].mxu1 }
  0xf6   :  { %632 = vst [vmem:[%s1683_s2 + $0x10] sm:$0xff] %v1012_v41  ;;  %v375_v43 = vpop.f32.mrb[1].mxu0  ;;  %664 = vst [vmem:[%s1683_s2 + $0x110] sm:$0xff] %v1283_v42  ;;  %v1292_v44 = vpop.f32.mrb[1].mxu1  ;;  %v769_v52 = vmul.f32 %v1012_v41, %v1012_v41 }
  0xf7   :  { %630 = vst [vmem:[%s1683_s2] sm:$0xff] %v375_v43  ;;  %v1013_v45 = vpop.f32.mrb[2].mxu0  ;;  %662 = vst [vmem:[%s1683_s2 + $0x100] sm:$0xff] %v1292_v44  ;;  %v1301_v46 = vpop.f32.mrb[2].mxu1  ;;  %v767_v49 = vmul.f32 %v375_v43, %v375_v43 }
  0xf8   :  { %633 = vst [vmem:[%s1683_s2 + $0x18] sm:$0xff] %v1013_v45  ;;  %v378_v47 = vpop.f32.mrb[3].mxu0  ;;  %665 = vst [vmem:[%s1683_s2 + $0x118] sm:$0xff] %v1301_v46  ;;  %v1310_v48 = vpop.f32.mrb[3].mxu1  ;;  %v770_v55 = vmul.f32 %v1013_v45, %v1013_v45 }
  0xf9   :  { %631 = vst [vmem:[%s1683_s2 + $0x8] sm:$0xff] %v378_v47  ;;  %v695_v50 = vadd.f32 %v378_v47, %v375_v43  ;;  %v768_v51 = vmul.f32 %v378_v47, %v378_v47  ;;  %663 = vst [vmem:[%s1683_s2 + $0x108] sm:$0xff] %v1310_v48 }
  0xfb   :  { %v696_v53 = vadd.f32 %v1012_v41, %v695_v50  ;;  %v831_v54 = vadd.f32 %v768_v51, %v767_v49 }
  0xfd   :  { %v832_v56 = vadd.f32 %v831_v54, %v769_v52  ;;  %v1016_v57 = vpop.f32.mrb[4].mxu0  ;;  %v697_v58 = vadd.f32 %v1013_v45, %v696_v53  ;;  %v1319_v59 = vpop.f32.mrb[4].mxu1 }
  0xfe   :  { %636 = vst [vmem:[%s1683_s2 + $0x30] sm:$0xff] %v1016_v57  ;;  %v391_v60 = vpop.f32.mrb[5].mxu0  ;;  %668 = vst [vmem:[%s1683_s2 + $0x130] sm:$0xff] %v1319_v59  ;;  %v1328_v61 = vpop.f32.mrb[5].mxu1  ;;  %v773_v8 = vmul.f32 %v1016_v57, %v1016_v57 }
  0xff   :  { %634 = vst [vmem:[%s1683_s2 + $0x20] sm:$0xff] %v391_v60  ;;  %v698_v62 = vadd.f32 %v697_v58, %v391_v60  ;;  %v771_v63 = vmul.f32 %v391_v60, %v391_v60  ;;  %v833_v0 = vadd.f32 %v832_v56, %v770_v55  ;;  %v1017_v1 = vpop.f32.mrb[6].mxu0  ;;  %666 = vst [vmem:[%s1683_s2 + $0x120] sm:$0xff] %v1328_v61  ;;  %v1337_v2 = vpop.f32.mrb[6].mxu1 }
 0x100   :  { %637 = vst [vmem:[%s1683_s2 + $0x38] sm:$0xff] %v1017_v1  ;;  %v394_v3 = vpop.f32.mrb[7].mxu0  ;;  %669 = vst [vmem:[%s1683_s2 + $0x138] sm:$0xff] %v1337_v2  ;;  %v1346_v4 = vpop.f32.mrb[7].mxu1  ;;  %v774_v11 = vmul.f32 %v1017_v1, %v1017_v1 }
 0x101   :  { %v834_v5 = vadd.f32 %v833_v0, %v771_v63  ;;  %635 = vst [vmem:[%s1683_s2 + $0x28] sm:$0xff] %v394_v3  ;;  %v699_v6 = vadd.f32 %v698_v62, %v394_v3  ;;  %v772_v7 = vmul.f32 %v394_v3, %v394_v3  ;;  %667 = vst [vmem:[%s1683_s2 + $0x128] sm:$0xff] %v1346_v4 }
 0x103   :  { %v700_v9 = vadd.f32 %v1016_v57, %v699_v6  ;;  %v835_v10 = vadd.f32 %v834_v5, %v772_v7 }
 0x105   :  { %v836_v12 = vadd.f32 %v835_v10, %v773_v8  ;;  %v1020_v13 = vpop.f32.mrb[8].mxu0  ;;  %v701_v14 = vadd.f32 %v1017_v1, %v700_v9  ;;  %v1355_v15 = vpop.f32.mrb[8].mxu1 }
 0x106   :  { %640 = vst [vmem:[%s1683_s2 + $0x50] sm:$0xff] %v1020_v13  ;;  %v407_v16 = vpop.f32.mrb[9].mxu0  ;;  %672 = vst [vmem:[%s1683_s2 + $0x150] sm:$0xff] %v1355_v15  ;;  %v1364_v17 = vpop.f32.mrb[9].mxu1  ;;  %v777_v28 = vmul.f32 %v1020_v13, %v1020_v13 }
 0x107   :  { %638 = vst [vmem:[%s1683_s2 + $0x40] sm:$0xff] %v407_v16  ;;  %v702_v18 = vadd.f32 %v701_v14, %v407_v16  ;;  %v775_v19 = vmul.f32 %v407_v16, %v407_v16  ;;  %v837_v20 = vadd.f32 %v836_v12, %v774_v11  ;;  %v1021_v21 = vpop.f32.mrb[10].mxu0  ;;  %670 = vst [vmem:[%s1683_s2 + $0x140] sm:$0xff] %v1364_v17  ;;  %v1373_v22 = vpop.f32.mrb[10].mxu1 }
 0x108   :  { %641 = vst [vmem:[%s1683_s2 + $0x58] sm:$0xff] %v1021_v21  ;;  %v410_v23 = vpop.f32.mrb[11].mxu0  ;;  %673 = vst [vmem:[%s1683_s2 + $0x158] sm:$0xff] %v1373_v22  ;;  %v1382_v24 = vpop.f32.mrb[11].mxu1  ;;  %v778_v31 = vmul.f32 %v1021_v21, %v1021_v21 }
 0x109   :  { %v838_v25 = vadd.f32 %v837_v20, %v775_v19  ;;  %639 = vst [vmem:[%s1683_s2 + $0x48] sm:$0xff] %v410_v23  ;;  %v703_v26 = vadd.f32 %v702_v18, %v410_v23  ;;  %v776_v27 = vmul.f32 %v410_v23, %v410_v23  ;;  %671 = vst [vmem:[%s1683_s2 + $0x148] sm:$0xff] %v1382_v24 }
 0x10b   :  { %v704_v29 = vadd.f32 %v1020_v13, %v703_v26  ;;  %v839_v30 = vadd.f32 %v838_v25, %v776_v27 }
 0x10d   :  { %v840_v32 = vadd.f32 %v839_v30, %v777_v28  ;;  %v1024_v33 = vpop.f32.mrb[12].mxu0  ;;  %v705_v34 = vadd.f32 %v1021_v21, %v704_v29  ;;  %v1391_v35 = vpop.f32.mrb[12].mxu1 }
 0x10e   :  { %644 = vst [vmem:[%s1683_s2 + $0x70] sm:$0xff] %v1024_v33  ;;  %v423_v36 = vpop.f32.mrb[13].mxu0  ;;  %676 = vst [vmem:[%s1683_s2 + $0x170] sm:$0xff] %v1391_v35  ;;  %v1400_v37 = vpop.f32.mrb[13].mxu1  ;;  %v781_v52 = vmul.f32 %v1024_v33, %v1024_v33 }
 0x10f   :  { %642 = vst [vmem:[%s1683_s2 + $0x60] sm:$0xff] %v423_v36  ;;  %v706_v38 = vadd.f32 %v705_v34, %v423_v36  ;;  %v779_v39 = vmul.f32 %v423_v36, %v423_v36  ;;  %v841_v40 = vadd.f32 %v840_v32, %v778_v31  ;;  %v1025_v41 = vpop.f32.mrb[14].mxu0  ;;  %674 = vst [vmem:[%s1683_s2 + $0x160] sm:$0xff] %v1400_v37  ;;  %v1409_v43 = vpop.f32.mrb[14].mxu1 }
 0x110   :  { %645 = vst [vmem:[%s1683_s2 + $0x78] sm:$0xff] %v1025_v41  ;;  %v426_v45 = vpop.f32.mrb[15].mxu0  ;;  %677 = vst [vmem:[%s1683_s2 + $0x178] sm:$0xff] %v1409_v43  ;;  %v1418_v47 = vpop.f32.mrb[15].mxu1  ;;  %v782_v55 = vmul.f32 %v1025_v41, %v1025_v41 }
 0x111   :  { %v842_v49 = vadd.f32 %v841_v40, %v779_v39  ;;  %643 = vst [vmem:[%s1683_s2 + $0x68] sm:$0xff] %v426_v45  ;;  %v707_v50 = vadd.f32 %v706_v38, %v426_v45  ;;  %v780_v51 = vmul.f32 %v426_v45, %v426_v45  ;;  %675 = vst [vmem:[%s1683_s2 + $0x168] sm:$0xff] %v1418_v47 }
 0x113   :  { %v708_v53 = vadd.f32 %v1024_v33, %v707_v50  ;;  %v843_v54 = vadd.f32 %v842_v49, %v780_v51 }
 0x115   :  { %v844_v56 = vadd.f32 %v843_v54, %v781_v52  ;;  %v1028_v57 = vpop.f32.mrb[16].mxu0  ;;  %v709_v58 = vadd.f32 %v1025_v41, %v708_v53  ;;  %v1427_v60 = vpop.f32.mrb[16].mxu1 }
 0x116   :  { %648 = vst [vmem:[%s1683_s2 + $0x90] sm:$0xff] %v1028_v57  ;;  %v439_v62 = vpop.f32.mrb[17].mxu0  ;;  %680 = vst [vmem:[%s1683_s2 + $0x190] sm:$0xff] %v1427_v60  ;;  %v1436_v63 = vpop.f32.mrb[17].mxu1  ;;  %v785_v12 = vmul.f32 %v1028_v57, %v1028_v57 }
 0x117   :  { %646 = vst [vmem:[%s1683_s2 + $0x80] sm:$0xff] %v439_v62  ;;  %v710_v0 = vadd.f32 %v709_v58, %v439_v62  ;;  %v783_v1 = vmul.f32 %v439_v62, %v439_v62  ;;  %v845_v3 = vadd.f32 %v844_v56, %v782_v55  ;;  %v1029_v5 = vpop.f32.mrb[18].mxu0  ;;  %678 = vst [vmem:[%s1683_s2 + $0x180] sm:$0xff] %v1436_v63  ;;  %v1445_v6 = vpop.f32.mrb[18].mxu1 }
 0x118   :  { %649 = vst [vmem:[%s1683_s2 + $0x98] sm:$0xff] %v1029_v5  ;;  %v442_v7 = vpop.f32.mrb[19].mxu0  ;;  %681 = vst [vmem:[%s1683_s2 + $0x198] sm:$0xff] %v1445_v6  ;;  %v1454_v8 = vpop.f32.mrb[19].mxu1  ;;  %v786_v16 = vmul.f32 %v1029_v5, %v1029_v5 }
 0x119   :  { %v846_v9 = vadd.f32 %v845_v3, %v783_v1  ;;  %647 = vst [vmem:[%s1683_s2 + $0x88] sm:$0xff] %v442_v7  ;;  %v711_v10 = vadd.f32 %v710_v0, %v442_v7  ;;  %v784_v11 = vmul.f32 %v442_v7, %v442_v7  ;;  %679 = vst [vmem:[%s1683_s2 + $0x188] sm:$0xff] %v1454_v8 }
 0x11b   :  { %v712_v13 = vadd.f32 %v1028_v57, %v711_v10  ;;  %v847_v14 = vadd.f32 %v846_v9, %v784_v11 }
 0x11d   :  { %v848_v18 = vadd.f32 %v847_v14, %v785_v12  ;;  %v1032_v19 = vpop.f32.mrb[20].mxu0  ;;  %v713_v20 = vadd.f32 %v1029_v5, %v712_v13  ;;  %v1463_v21 = vpop.f32.mrb[20].mxu1 }
 0x11e   :  { %652 = vst [vmem:[%s1683_s2 + $0xb0] sm:$0xff] %v1032_v19  ;;  %v455_v23 = vpop.f32.mrb[21].mxu0  ;;  %684 = vst [vmem:[%s1683_s2 + $0x1b0] sm:$0xff] %v1463_v21  ;;  %v1472_v25 = vpop.f32.mrb[21].mxu1  ;;  %v789_v38 = vmul.f32 %v1032_v19, %v1032_v19 }
 0x11f   :  { %650 = vst [vmem:[%s1683_s2 + $0xa0] sm:$0xff] %v455_v23  ;;  %v714_v26 = vadd.f32 %v713_v20, %v455_v23  ;;  %v787_v27 = vmul.f32 %v455_v23, %v455_v23  ;;  %v849_v28 = vadd.f32 %v848_v18, %v786_v16  ;;  %v1033_v29 = vpop.f32.mrb[22].mxu0  ;;  %682 = vst [vmem:[%s1683_s2 + $0x1a0] sm:$0xff] %v1472_v25  ;;  %v1481_v30 = vpop.f32.mrb[22].mxu1 }
 0x120   :  { %653 = vst [vmem:[%s1683_s2 + $0xb8] sm:$0xff] %v1033_v29  ;;  %v458_v31 = vpop.f32.mrb[23].mxu0  ;;  %685 = vst [vmem:[%s1683_s2 + $0x1b8] sm:$0xff] %v1481_v30  ;;  %v1490_v32 = vpop.f32.mrb[23].mxu1  ;;  %v790_v41 = vmul.f32 %v1033_v29, %v1033_v29 }
 0x121   :  { %v850_v33 = vadd.f32 %v849_v28, %v787_v27  ;;  %651 = vst [vmem:[%s1683_s2 + $0xa8] sm:$0xff] %v458_v31  ;;  %v715_v34 = vadd.f32 %v714_v26, %v458_v31  ;;  %v788_v36 = vmul.f32 %v458_v31, %v458_v31  ;;  %683 = vst [vmem:[%s1683_s2 + $0x1a8] sm:$0xff] %v1490_v32 }
 0x123   :  { %v716_v39 = vadd.f32 %v1032_v19, %v715_v34  ;;  %v851_v40 = vadd.f32 %v850_v33, %v788_v36 }
 0x125   :  { %v852_v45 = vadd.f32 %v851_v40, %v789_v38  ;;  %v1036_v49 = vpop.f32.mrb[24].mxu0  ;;  %v717_v50 = vadd.f32 %v1033_v29, %v716_v39  ;;  %v1499_v51 = vpop.f32.mrb[24].mxu1 }
 0x126   :  { %656 = vst [vmem:[%s1683_s2 + $0xd0] sm:$0xff] %v1036_v49  ;;  %v471_v52 = vpop.f32.mrb[25].mxu0  ;;  %688 = vst [vmem:[%s1683_s2 + $0x1d0] sm:$0xff] %v1499_v51  ;;  %v1508_v53 = vpop.f32.mrb[25].mxu1  ;;  %v793_v7 = vmul.f32 %v1036_v49, %v1036_v49 }
 0x127   :  { %654 = vst [vmem:[%s1683_s2 + $0xc0] sm:$0xff] %v471_v52  ;;  %v718_v54 = vadd.f32 %v717_v50, %v471_v52  ;;  %v791_v55 = vmul.f32 %v471_v52, %v471_v52  ;;  %v853_v56 = vadd.f32 %v852_v45, %v790_v41  ;;  %v1037_v57 = vpop.f32.mrb[26].mxu0  ;;  %686 = vst [vmem:[%s1683_s2 + $0x1c0] sm:$0xff] %v1508_v53  ;;  %v1517_v58 = vpop.f32.mrb[26].mxu1 }
 0x128   :  { %657 = vst [vmem:[%s1683_s2 + $0xd8] sm:$0xff] %v1037_v57  ;;  %v474_v62 = vpop.f32.mrb[27].mxu0  ;;  %689 = vst [vmem:[%s1683_s2 + $0x1d8] sm:$0xff] %v1517_v58  ;;  %v1526_v0 = vpop.f32.mrb[27].mxu1  ;;  %v794_v11 = vmul.f32 %v1037_v57, %v1037_v57  ;;  %v799_v50 = vmul.f32 %v1292_v44, %v1292_v44 }
 0x129   :  { %v854_v1 = vadd.f32 %v853_v56, %v791_v55  ;;  %655 = vst [vmem:[%s1683_s2 + $0xc8] sm:$0xff] %v474_v62  ;;  %v719_v3 = vadd.f32 %v718_v54, %v474_v62  ;;  %v792_v5 = vmul.f32 %v474_v62, %v474_v62  ;;  %687 = vst [vmem:[%s1683_s2 + $0x1c8] sm:$0xff] %v1526_v0 }
 0x12a   :  { %v801_v62 = vmul.f32 %v1283_v42, %v1283_v42 }
 0x12b   :  { %v720_v9 = vadd.f32 %v1036_v49, %v719_v3  ;;  %v855_v10 = vadd.f32 %v854_v1, %v792_v5  ;;  %v802_v5 = vmul.f32 %v1301_v46, %v1301_v46 }
 0x12d   :  { %v856_v12 = vadd.f32 %v855_v10, %v793_v7  ;;  %v1040_v13 = vpop.f32.mrb[28].mxu0  ;;  %v721_v14 = vadd.f32 %v1037_v57, %v720_v9  ;;  %v1535_v16 = vpop.f32.mrb[28].mxu1  ;;  %v800_v57 = vmul.f32 %v1310_v48, %v1310_v48 }
 0x12e   :  { %660 = vst [vmem:[%s1683_s2 + $0xf0] sm:$0xff] %v1040_v13  ;;  %v487_v18 = vpop.f32.mrb[29].mxu0  ;;  %692 = vst [vmem:[%s1683_s2 + $0x1f0] sm:$0xff] %v1535_v16  ;;  %v1544_v19 = vpop.f32.mrb[29].mxu1  ;;  %v797_v38 = vmul.f32 %v1040_v13, %v1040_v13 }
 0x12f   :  { %658 = vst [vmem:[%s1683_s2 + $0xe0] sm:$0xff] %v487_v18  ;;  %v722_v20 = vadd.f32 %v721_v14, %v487_v18  ;;  %v795_v23 = vmul.f32 %v487_v18, %v487_v18  ;;  %v857_v26 = vadd.f32 %v856_v12, %v794_v11  ;;  %v1041_v27 = vpop.f32.mrb[30].mxu0  ;;  %690 = vst [vmem:[%s1683_s2 + $0x1e0] sm:$0xff] %v1544_v19  ;;  %v1553_v28 = vpop.f32.mrb[30].mxu1 }
 0x130   :  { %661 = vst [vmem:[%s1683_s2 + $0xf8] sm:$0xff] %v1041_v27  ;;  %v490_v29 = vpop.f32.mrb[31].mxu0  ;;  %693 = vst [vmem:[%s1683_s2 + $0x1f8] sm:$0xff] %v1553_v28  ;;  %v1562_v31 = vpop.f32.mrb[31].mxu1  ;;  %v798_v41 = vmul.f32 %v1041_v27, %v1041_v27 }
 0x131   :  { %v858_v33 = vadd.f32 %v857_v26, %v795_v23  ;;  %659 = vst [vmem:[%s1683_s2 + $0xe8] sm:$0xff] %v490_v29  ;;  %v723_v34 = vadd.f32 %v722_v20, %v490_v29  ;;  %v796_v36 = vmul.f32 %v490_v29, %v490_v29  ;;  %691 = vst [vmem:[%s1683_s2 + $0x1e8] sm:$0xff] %v1562_v31 }
 0x133   :  { %v724_v39 = vadd.f32 %v1040_v13, %v723_v34  ;;  %v859_v40 = vadd.f32 %v858_v33, %v796_v36  ;;  %v804_v13 = vmul.f32 %v1346_v4, %v1346_v4  ;;  %v808_v33 = vmul.f32 %v1382_v24, %v1382_v24 }
 0x135   :  { %v860_v45 = vadd.f32 %v859_v40, %v797_v38  ;;  %v725_v49 = vadd.f32 %v1041_v27, %v724_v39 }
 0x137   :  { %v726_v52 = vadd.f32 %v725_v49, %v1292_v44  ;;  %v861_v54 = vadd.f32 %v860_v45, %v798_v41  ;;  %v803_v44 = vmul.f32 %v1328_v61, %v1328_v61  ;;  %v812_v49 = vmul.f32 %v1418_v47, %v1418_v47 }
 0x139   :  { %v862_v55 = vadd.f32 %v861_v54, %v799_v50  ;;  %v727_v56 = vadd.f32 %v726_v52, %v1310_v48 }
 0x13b   :  { %v728_v1 = vadd.f32 %v1283_v42, %v727_v56  ;;  %v863_v3 = vadd.f32 %v862_v55, %v800_v57  ;;  %v805_v42 = vmul.f32 %v1319_v59, %v1319_v59 }
 0x13d   :  { %v864_v7 = vadd.f32 %v863_v3, %v801_v62  ;;  %v729_v9 = vadd.f32 %v1301_v46, %v728_v1  ;;  %v806_v46 = vmul.f32 %v1337_v2, %v1337_v2  ;;  %v816_v1 = vmul.f32 %v1454_v8, %v1454_v8 }
 0x13f   :  { %v730_v10 = vadd.f32 %v729_v9, %v1328_v61  ;;  %v865_v11 = vadd.f32 %v864_v7, %v802_v5  ;;  %v807_v61 = vmul.f32 %v1364_v17, %v1364_v17 }
 0x141   :  { %v866_v12 = vadd.f32 %v865_v11, %v803_v44  ;;  %v731_v48 = vadd.f32 %v730_v10, %v1346_v4 }
 0x143   :  { %v732_v14 = vadd.f32 %v1319_v59, %v731_v48  ;;  %v867_v18 = vadd.f32 %v866_v12, %v804_v13  ;;  %v809_v59 = vmul.f32 %v1355_v15, %v1355_v15  ;;  %v820_v12 = vmul.f32 %v1490_v32, %v1490_v32 }
 0x145   :  { %v868_v20 = vadd.f32 %v867_v18, %v805_v42  ;;  %v733_v23 = vadd.f32 %v1337_v2, %v732_v14  ;;  %v810_v2 = vmul.f32 %v1373_v22, %v1373_v22 }
 0x147   :  { %v734_v26 = vadd.f32 %v733_v23, %v1364_v17  ;;  %v869_v27 = vadd.f32 %v868_v20, %v806_v46  ;;  %v811_v17 = vmul.f32 %v1400_v37, %v1400_v37  ;;  %v824_v23 = vmul.f32 %v1526_v0, %v1526_v0 }
 0x149   :  { %v870_v29 = vadd.f32 %v869_v27, %v807_v61  ;;  %v735_v4 = vadd.f32 %v734_v26, %v1382_v24 }
 0x14b   :  { %v736_v34 = vadd.f32 %v1355_v15, %v735_v4  ;;  %v871_v36 = vadd.f32 %v870_v29, %v808_v33  ;;  %v813_v15 = vmul.f32 %v1391_v35, %v1391_v35 }
 0x14d   :  { %v872_v38 = vadd.f32 %v871_v36, %v809_v59  ;;  %v737_v39 = vadd.f32 %v1373_v22, %v736_v34  ;;  %v814_v22 = vmul.f32 %v1409_v43, %v1409_v43  ;;  %v828_v34 = vmul.f32 %v1562_v31, %v1562_v31 }
 0x14f   :  { %v738_v40 = vadd.f32 %v737_v39, %v1400_v37  ;;  %v873_v41 = vadd.f32 %v872_v38, %v810_v2  ;;  %v815_v37 = vmul.f32 %v1436_v63, %v1436_v63 }
 0x151   :  { %v874_v45 = vadd.f32 %v873_v41, %v811_v17  ;;  %v739_v24 = vadd.f32 %v738_v40, %v1418_v47 }
 0x153   :  { %v740_v50 = vadd.f32 %v1391_v35, %v739_v24  ;;  %v875_v52 = vadd.f32 %v874_v45, %v812_v49  ;;  %v817_v35 = vmul.f32 %v1427_v60, %v1427_v60 }
 0x155   :  { %v876_v54 = vadd.f32 %v875_v52, %v813_v15  ;;  %v741_v55 = vadd.f32 %v1409_v43, %v740_v50  ;;  %v818_v43 = vmul.f32 %v1445_v6, %v1445_v6 }
 0x157   :  { %v742_v56 = vadd.f32 %v741_v55, %v1436_v63  ;;  %v877_v57 = vadd.f32 %v876_v54, %v814_v22  ;;  %v819_v63 = vmul.f32 %v1472_v25, %v1472_v25 }
 0x159   :  { %v878_v62 = vadd.f32 %v877_v57, %v815_v37  ;;  %v743_v47 = vadd.f32 %v742_v56, %v1454_v8 }
 0x15b   :  { %v744_v3 = vadd.f32 %v1427_v60, %v743_v47  ;;  %v879_v5 = vadd.f32 %v878_v62, %v816_v1  ;;  %v821_v60 = vmul.f32 %v1463_v21, %v1463_v21 }
 0x15d   :  { %v880_v7 = vadd.f32 %v879_v5, %v817_v35  ;;  %v745_v9 = vadd.f32 %v1445_v6, %v744_v3  ;;  %v822_v6 = vmul.f32 %v1481_v30, %v1481_v30 }
 0x15f   :  { %v746_v44 = vadd.f32 %v745_v9, %v1472_v25  ;;  %v881_v10 = vadd.f32 %v880_v7, %v818_v43  ;;  %v823_v25 = vmul.f32 %v1508_v53, %v1508_v53 }
 0x161   :  { %v882_v11 = vadd.f32 %v881_v10, %v819_v63  ;;  %v747_v8 = vadd.f32 %v746_v44, %v1490_v32 }
 0x163   :  { %v748_v48 = vadd.f32 %v1463_v21, %v747_v8  ;;  %v883_v13 = vadd.f32 %v882_v11, %v820_v12  ;;  %v825_v21 = vmul.f32 %v1499_v51, %v1499_v51 }
 0x165   :  { %v884_v42 = vadd.f32 %v883_v13, %v821_v60  ;;  %v749_v14 = vadd.f32 %v1481_v30, %v748_v48  ;;  %v826_v30 = vmul.f32 %v1517_v58, %v1517_v58 }
 0x167   :  { %v750_v18 = vadd.f32 %v749_v14, %v1508_v53  ;;  %v885_v46 = vadd.f32 %v884_v42, %v822_v6  ;;  %v827_v53 = vmul.f32 %v1544_v19, %v1544_v19 }
 0x169   :  { %v886_v20 = vadd.f32 %v885_v46, %v823_v25  ;;  %v751_v32 = vadd.f32 %v750_v18, %v1526_v0 }
 0x16b   :  { %v752_v61 = vadd.f32 %v1499_v51, %v751_v32  ;;  %v887_v26 = vadd.f32 %v886_v20, %v824_v23  ;;  %v829_v51 = vmul.f32 %v1535_v16, %v1535_v16 }
 0x16d   :  { %v888_v27 = vadd.f32 %v887_v26, %v825_v21  ;;  %v753_v29 = vadd.f32 %v1517_v58, %v752_v61  ;;  %v830_v58 = vmul.f32 %v1553_v28, %v1553_v28 }
 0x16f   :  { %v754_v4 = vadd.f32 %v753_v29, %v1544_v19  ;;  %v889_v33 = vadd.f32 %v888_v27, %v826_v30 }
 0x171   :  { %v890_v59 = vadd.f32 %v889_v33, %v827_v53  ;;  %v755_v0 = vadd.f32 %v754_v4, %v1562_v31 }
 0x173   :  { %v756_v36 = vadd.f32 %v1535_v16, %v755_v0  ;;  %v891_v2 = vadd.f32 %v890_v59, %v828_v34  ;;  %v694_v16 = vld [vmem:[%s1681_s3] sm:$0x1] }
 0x175   :  { %v757_v38 = vadd.f32 %v1553_v28, %v756_v36  ;;  %v892_v39 = vadd.f32 %v891_v2, %v829_v51  ;;  %v766_v28 = vld [vmem:[%s1682_s4] sm:$0x1] }
 0x177   :  { %v758_v19 = vrot.slane %v757_v38, 4  ;;  %v893_v17 = vadd.f32 %v892_v39, %v830_v58 }
 0x179   :  { %v759_v40 = vadd.f32 %v758_v19, %v757_v38  ;;  %v894_v41 = vrot.slane %v893_v17, 4 }
 0x17b   :  { %v760_v45 = vrot.slane %v759_v40, 2  ;;  %v895_v24 = vadd.f32 %v894_v41, %v893_v17 }
 0x17d   :  { %v761_v49 = vadd.f32 %v760_v45, %v759_v40  ;;  %v896_v31 = vrot.slane %v895_v24, 2 }
 0x17f   :  { %v762_v15 = vrot.slane %v761_v49, 1  ;;  %v897_v50 = vadd.f32 %v896_v31, %v895_v24 }
 0x181   :  { %v763_v52 = vadd.f32 %v762_v15, %v761_v49  ;;  %v898_v22 = vrot.slane %v897_v50, 1 }
 0x183   :  { %v764_v54 = vadd.f32 %v763_v52, %v694_v16  ;;  %v899_v55 = vadd.f32 %v898_v22, %v897_v50 }
 0x185   :  { %765 = vst [vmem:[%s1681_s3] sm:$0x1] %v764_v54  ;;  %v900_v37 = vadd.f32 %v899_v55, %v766_v28 }
 0x187   :  { %901 = vst [vmem:[%s1682_s4] sm:$0x1] %v900_v37 }

// kernel: rsu6_forward.25
= control target key start
LH: loop header
LB: loop body
LE: loop exit
PB: predicated region body
PF: predicated region fallthrough
CT: control target
= control target key end

     0   :  { %v99_v8 = vlaneseq  ;;  %s930_s1 = inlined_call_operand.vmem [shape: f32[1,128], index: 1, kind: input, shape index: {}]   ;;  %s931_s2 = inlined_call_operand.vmem [shape: f32[1,128], index: 2, kind: input, shape index: {}]   ;;  %s932_s3 = inlined_call_operand.vmem [shape: f32[1,128], index: 3, kind: input, shape index: {}]   ;;  %s933_s0 = inlined_call_operand.vmem [shape: f32[512,128], index: 0, kind: input, shape index: {}]   ;;  %s934_s4 = inlined_call_operand.vmem [shape: f32[1,128], index: 4, kind: input, shape index: {}]   ;;  %s935_s5 = inlined_call_operand.vmem [shape: f32[512,128], index: 5, kind: output, shape index: {}]  }
   0x1   :  { %v20_v0 = vld [vmem:[%s930_s1] sm:$0x1]  ;;  %v35_v16 = vld [vmem:[%s933_s0 + $0x8] sm:$0xff]  ;;  %v36_v17 = vld [vmem:[%s933_s0 + $0x10] sm:$0xff] }
   0x2   :  { %v22_v1 = vld [vmem:[%s931_s2] sm:$0x1]  ;;  %v21_v2 = vmul.f32 0.001953125, %v20_v0  ;;  %v100_v9 = vshrl.u32 %v99_v8, 7  ;;  %v37_v18 = vld [vmem:[%s933_s0 + $0x18] sm:$0xff]  ;;  %v39_v22 = vld [vmem:[%s933_s0 + $0x28] sm:$0xff] }
   0x3   :  { %v23_v3 = vmul.f32 0.001953125, %v22_v1  ;;  %v27_v10 = vld [vmem:[%s932_s3] sm:$0x1]  ;;  %v40_v23 = vld [vmem:[%s933_s0 + $0x30] sm:$0xff]  ;;  %v41_v24 = vld [vmem:[%s933_s0 + $0x38] sm:$0xff] }
   0x4   :  { %v24_v4 = vmul.f32 %v21_v2, %v21_v2  ;;  %v101_v11 = vsub.s32 0, %v100_v9  ;;  %v31_v14 = vld [vmem:[%s934_s4] sm:$0x1]  ;;  %v43_v26 = vld [vmem:[%s933_s0 + $0x48] sm:$0xff]  ;;  %v44_v27 = vld [vmem:[%s933_s0 + $0x50] sm:$0xff] }
   0x5   :  { %v34_v15 = vld [vmem:[%s933_s0] sm:$0xff]  ;;  %v45_v32 = vld [vmem:[%s933_s0 + $0x58] sm:$0xff]  ;;  %v47_v34 = vld [vmem:[%s933_s0 + $0x68] sm:$0xff] }
   0x6   :  { %v25_v5 = vsub.f32 %v23_v3, %v24_v4  ;;  %v38_v19 = vld [vmem:[%s933_s0 + $0x20] sm:$0xff]  ;;  %v48_v59 = vld [vmem:[%s933_s0 + $0x70] sm:$0xff]  ;;  %v49_v60 = vld [vmem:[%s933_s0 + $0x78] sm:$0xff] }
   0x7   :  { %v42_v25 = vld [vmem:[%s933_s0 + $0x40] sm:$0xff] }
   0x8   :  { %v26_v6 = vmax.f32 %v25_v5, 0.0  ;;  %v46_v33 = vld [vmem:[%s933_s0 + $0x60] sm:$0xff] }
   0x9   :  { %v50_v5 = vld [vmem:[%s933_s0 + $0x80] sm:$0xff] }
   0xa   :  { %v28_v7 = vadd.f32 1e-05, %v26_v6 }
   0xc   :  { %370 = vrsqrt.f32 %v28_v7 }
  0x16   :  { %v371_v12 = vpop.eup %370 }
  0x17   :  { %v30_v13 = vmul.f32 %v371_v12, %v27_v10  ;;  %v51_v10 = vld [vmem:[%s933_s0 + $0x88] sm:$0xff]  ;;  %v53_v12 = vld [vmem:[%s933_s0 + $0x98] sm:$0xff] }
  0x19   :  { %v32_v20 = vmul.f32 %v30_v13, %v21_v2  ;;  %v429_v21 = vrot.slane %v30_v13, %v101_v11 }
  0x1b   :  { %v33_v28 = vsub.f32 %v31_v14, %v32_v20  ;;  %v104_v29 = vmul.f32 %v429_v21, %v34_v15  ;;  %v105_v30 = vmul.f32 %v429_v21, %v35_v16  ;;  %v106_v31 = vmul.f32 %v429_v21, %v36_v17  ;;  %v54_v17 = vld [vmem:[%s933_s0 + $0xa0] sm:$0xff] }
  0x1c   :  { %v107_v35 = vmul.f32 %v429_v21, %v37_v18  ;;  %v108_v36 = vmul.f32 %v429_v21, %v38_v19  ;;  %v109_v37 = vmul.f32 %v429_v21, %v39_v22  ;;  %v110_v38 = vmul.f32 %v429_v21, %v40_v23  ;;  %v55_v18 = vld [vmem:[%s933_s0 + $0xa8] sm:$0xff] }
  0x1d   :  { %v465_v39 = vrot.slane %v33_v28, %v101_v11  ;;  %v111_v40 = vmul.f32 %v429_v21, %v41_v24  ;;  %v112_v41 = vmul.f32 %v429_v21, %v42_v25  ;;  %v113_v42 = vmul.f32 %v429_v21, %v43_v26  ;;  %v52_v11 = vld [vmem:[%s933_s0 + $0x90] sm:$0xff] }
  0x1e   :  { %v114_v43 = vmul.f32 %v429_v21, %v44_v27  ;;  %v115_v44 = vmul.f32 %v429_v21, %v45_v32  ;;  %v116_v45 = vmul.f32 %v429_v21, %v46_v33  ;;  %v117_v46 = vmul.f32 %v429_v21, %v47_v34  ;;  %v56_v28 = vld [vmem:[%s933_s0 + $0xb0] sm:$0xff] }
  0x1f   :  { %v174_v47 = vadd.f32 %v465_v39, %v104_v29  ;;  %v175_v48 = vadd.f32 %v465_v39, %v105_v30  ;;  %v176_v49 = vadd.f32 %v465_v39, %v106_v31  ;;  %v177_v50 = vadd.f32 %v465_v39, %v107_v35  ;;  %v57_v29 = vld [vmem:[%s933_s0 + $0xb8] sm:$0xff] }
  0x20   :  { %v178_v51 = vadd.f32 %v465_v39, %v108_v36  ;;  %v179_v52 = vadd.f32 %v465_v39, %v109_v37  ;;  %v180_v53 = vadd.f32 %v465_v39, %v110_v38  ;;  %v181_v54 = vadd.f32 %v465_v39, %v111_v40  ;;  %v58_v38 = vld [vmem:[%s933_s0 + $0xc0] sm:$0xff] }
  0x21   :  { %v238_v55 = vmax.f32 %v174_v47, 0.0  ;;  %v239_v56 = vmax.f32 %v175_v48, 0.0  ;;  %v240_v57 = vmax.f32 %v176_v49, 0.0  ;;  %v241_v58 = vmax.f32 %v177_v50, 0.0 }
  0x22   :  { %v242_v61 = vmax.f32 %v178_v51, 0.0  ;;  %v243_v62 = vmax.f32 %v179_v52, 0.0  ;;  %v244_v63 = vmax.f32 %v180_v53, 0.0  ;;  %v245_v0 = vmax.f32 %v181_v54, 0.0  ;;  %v62_v51 = vld [vmem:[%s933_s0 + $0xe0] sm:$0xff]  ;;  %v63_v52 = vld [vmem:[%s933_s0 + $0xe8] sm:$0xff] }
  0x23   :  { %302 = vst [vmem:[%s935_s5] sm:$0xff] %v238_v55  ;;  %303 = vst [vmem:[%s935_s5 + $0x8] sm:$0xff] %v239_v56  ;;  %v182_v1 = vadd.f32 %v465_v39, %v112_v41  ;;  %v183_v2 = vadd.f32 %v465_v39, %v113_v42  ;;  %v184_v3 = vadd.f32 %v465_v39, %v114_v43 }
  0x24   :  { %304 = vst [vmem:[%s935_s5 + $0x10] sm:$0xff] %v240_v57  ;;  %305 = vst [vmem:[%s935_s5 + $0x18] sm:$0xff] %v241_v58  ;;  %v185_v4 = vadd.f32 %v465_v39, %v115_v44  ;;  %v186_v6 = vadd.f32 %v465_v39, %v116_v45  ;;  %v187_v7 = vadd.f32 %v465_v39, %v117_v46  ;;  %v59_v44 = vld [vmem:[%s933_s0 + $0xc8] sm:$0xff]  ;;  %v60_v45 = vld [vmem:[%s933_s0 + $0xd0] sm:$0xff] }
  0x25   :  { %306 = vst [vmem:[%s935_s5 + $0x20] sm:$0xff] %v242_v61  ;;  %307 = vst [vmem:[%s935_s5 + $0x28] sm:$0xff] %v243_v62  ;;  %v118_v8 = vmul.f32 %v429_v21, %v48_v59  ;;  %v119_v9 = vmul.f32 %v429_v21, %v49_v60  ;;  %v246_v13 = vmax.f32 %v182_v1, 0.0  ;;  %v247_v14 = vmax.f32 %v183_v2, 0.0  ;;  %v61_v46 = vld [vmem:[%s933_s0 + $0xd8] sm:$0xff]  ;;  %v64_v61 = vld [vmem:[%s933_s0 + $0xf0] sm:$0xff] }
  0x26   :  { %308 = vst [vmem:[%s935_s5 + $0x30] sm:$0xff] %v244_v63  ;;  %309 = vst [vmem:[%s935_s5 + $0x38] sm:$0xff] %v245_v0  ;;  %v248_v15 = vmax.f32 %v184_v3, 0.0  ;;  %v249_v16 = vmax.f32 %v185_v4, 0.0  ;;  %v250_v19 = vmax.f32 %v186_v6, 0.0  ;;  %v251_v20 = vmax.f32 %v187_v7, 0.0 }
  0x27   :  { %v188_v22 = vadd.f32 %v465_v39, %v118_v8  ;;  %v189_v23 = vadd.f32 %v465_v39, %v119_v9  ;;  %310 = vst [vmem:[%s935_s5 + $0x40] sm:$0xff] %v246_v13  ;;  %311 = vst [vmem:[%s935_s5 + $0x48] sm:$0xff] %v247_v14  ;;  %v120_v24 = vmul.f32 %v429_v21, %v50_v5  ;;  %v65_v62 = vld [vmem:[%s933_s0 + $0xf8] sm:$0xff]  ;;  %v66_v7 = vld [vmem:[%s933_s0 + $0x100] sm:$0xff] }
  0x28   :  { %312 = vst [vmem:[%s935_s5 + $0x50] sm:$0xff] %v248_v15  ;;  %313 = vst [vmem:[%s935_s5 + $0x58] sm:$0xff] %v249_v16  ;;  %v121_v25 = vmul.f32 %v429_v21, %v51_v10  ;;  %v122_v26 = vmul.f32 %v429_v21, %v52_v11  ;;  %v123_v27 = vmul.f32 %v429_v21, %v53_v12  ;;  %v67_v12 = vld [vmem:[%s933_s0 + $0x108] sm:$0xff]  ;;  %v68_v13 = vld [vmem:[%s933_s0 + $0x110] sm:$0xff] }
  0x29   :  { %314 = vst [vmem:[%s935_s5 + $0x60] sm:$0xff] %v250_v19  ;;  %315 = vst [vmem:[%s935_s5 + $0x68] sm:$0xff] %v251_v20  ;;  %v252_v30 = vmax.f32 %v188_v22, 0.0  ;;  %v253_v31 = vmax.f32 %v189_v23, 0.0  ;;  %v124_v32 = vmul.f32 %v429_v21, %v54_v17  ;;  %v125_v33 = vmul.f32 %v429_v21, %v55_v18  ;;  %v69_v14 = vld [vmem:[%s933_s0 + $0x118] sm:$0xff]  ;;  %v70_v19 = vld [vmem:[%s933_s0 + $0x120] sm:$0xff] }
  0x2a   :  { %v190_v34 = vadd.f32 %v465_v39, %v120_v24  ;;  %v191_v35 = vadd.f32 %v465_v39, %v121_v25  ;;  %v192_v36 = vadd.f32 %v465_v39, %v122_v26  ;;  %v193_v37 = vadd.f32 %v465_v39, %v123_v27  ;;  %v71_v20 = vld [vmem:[%s933_s0 + $0x128] sm:$0xff] }
  0x2b   :  { %316 = vst [vmem:[%s935_s5 + $0x70] sm:$0xff] %v252_v30  ;;  %317 = vst [vmem:[%s935_s5 + $0x78] sm:$0xff] %v253_v31  ;;  %v194_v40 = vadd.f32 %v465_v39, %v124_v32  ;;  %v195_v41 = vadd.f32 %v465_v39, %v125_v33  ;;  %v126_v42 = vmul.f32 %v429_v21, %v56_v28  ;;  %v72_v30 = vld [vmem:[%s933_s0 + $0x130] sm:$0xff]  ;;  %v73_v31 = vld [vmem:[%s933_s0 + $0x138] sm:$0xff] }
  0x2c   :  { %v127_v43 = vmul.f32 %v429_v21, %v57_v29  ;;  %v254_v47 = vmax.f32 %v190_v34, 0.0  ;;  %v255_v48 = vmax.f32 %v191_v35, 0.0  ;;  %v256_v49 = vmax.f32 %v192_v36, 0.0 }
  0x2d   :  { %v257_v50 = vmax.f32 %v193_v37, 0.0  ;;  %v258_v53 = vmax.f32 %v194_v40, 0.0  ;;  %v259_v54 = vmax.f32 %v195_v41, 0.0  ;;  %v196_v55 = vadd.f32 %v465_v39, %v126_v42  ;;  %v74_v41 = vld [vmem:[%s933_s0 + $0x140] sm:$0xff] }
  0x2e   :  { %v197_v56 = vadd.f32 %v465_v39, %v127_v43  ;;  %318 = vst [vmem:[%s935_s5 + $0x80] sm:$0xff] %v254_v47  ;;  %319 = vst [vmem:[%s935_s5 + $0x88] sm:$0xff] %v255_v48  ;;  %v128_v57 = vmul.f32 %v429_v21, %v58_v38  ;;  %v129_v58 = vmul.f32 %v429_v21, %v59_v44  ;;  %v76_v47 = vld [vmem:[%s933_s0 + $0x150] sm:$0xff]  ;;  %v77_v48 = vld [vmem:[%s933_s0 + $0x158] sm:$0xff] }
  0x2f   :  { %320 = vst [vmem:[%s935_s5 + $0x90] sm:$0xff] %v256_v49  ;;  %321 = vst [vmem:[%s935_s5 + $0x98] sm:$0xff] %v257_v50  ;;  %v130_v59 = vmul.f32 %v429_v21, %v60_v45  ;;  %v131_v60 = vmul.f32 %v429_v21, %v61_v46  ;;  %v260_v63 = vmax.f32 %v196_v55, 0.0  ;;  %v132_v1 = vmul.f32 %v429_v21, %v62_v51  ;;  %v75_v46 = vld [vmem:[%s933_s0 + $0x148] sm:$0xff] }
  0x30   :  { %322 = vst [vmem:[%s935_s5 + $0xa0] sm:$0xff] %v258_v53  ;;  %323 = vst [vmem:[%s935_s5 + $0xa8] sm:$0xff] %v259_v54  ;;  %v261_v0 = vmax.f32 %v197_v56, 0.0  ;;  %v133_v2 = vmul.f32 %v429_v21, %v63_v52  ;;  %v198_v3 = vadd.f32 %v465_v39, %v128_v57  ;;  %v199_v4 = vadd.f32 %v465_v39, %v129_v58  ;;  %v78_v53 = vld [vmem:[%s933_s0 + $0x160] sm:$0xff]  ;;  %v79_v54 = vld [vmem:[%s933_s0 + $0x168] sm:$0xff] }
  0x31   :  { %v200_v5 = vadd.f32 %v465_v39, %v130_v59  ;;  %v201_v6 = vadd.f32 %v465_v39, %v131_v60  ;;  %324 = vst [vmem:[%s935_s5 + $0xb0] sm:$0xff] %v260_v63  ;;  %v202_v8 = vadd.f32 %v465_v39, %v132_v1  ;;  %v134_v10 = vmul.f32 %v429_v21, %v64_v61  ;;  %v80_v63 = vld [vmem:[%s933_s0 + $0x170] sm:$0xff] }
  0x32   :  { %325 = vst [vmem:[%s935_s5 + $0xb8] sm:$0xff] %v261_v0  ;;  %v203_v9 = vadd.f32 %v465_v39, %v133_v2  ;;  %v135_v11 = vmul.f32 %v429_v21, %v65_v62  ;;  %v262_v15 = vmax.f32 %v198_v3, 0.0  ;;  %v263_v16 = vmax.f32 %v199_v4, 0.0  ;;  %v81_v0 = vld [vmem:[%s933_s0 + $0x178] sm:$0xff] }
  0x33   :  { %v264_v17 = vmax.f32 %v200_v5, 0.0  ;;  %v265_v18 = vmax.f32 %v201_v6, 0.0  ;;  %v266_v22 = vmax.f32 %v202_v8, 0.0  ;;  %v204_v24 = vadd.f32 %v465_v39, %v134_v10 }
  0x34   :  { %v267_v23 = vmax.f32 %v203_v9, 0.0  ;;  %v205_v25 = vadd.f32 %v465_v39, %v135_v11  ;;  %326 = vst [vmem:[%s935_s5 + $0xc0] sm:$0xff] %v262_v15  ;;  %327 = vst [vmem:[%s935_s5 + $0xc8] sm:$0xff] %v263_v16  ;;  %v136_v26 = vmul.f32 %v429_v21, %v66_v7  ;;  %v137_v27 = vmul.f32 %v429_v21, %v67_v12  ;;  %v82_v9 = vld [vmem:[%s933_s0 + $0x180] sm:$0xff]  ;;  %v84_v15 = vld [vmem:[%s933_s0 + $0x190] sm:$0xff] }
  0x35   :  { %328 = vst [vmem:[%s935_s5 + $0xd0] sm:$0xff] %v264_v17  ;;  %329 = vst [vmem:[%s935_s5 + $0xd8] sm:$0xff] %v265_v18  ;;  %v138_v28 = vmul.f32 %v429_v21, %v68_v13  ;;  %v139_v29 = vmul.f32 %v429_v21, %v69_v14  ;;  %v268_v32 = vmax.f32 %v204_v24, 0.0  ;;  %v140_v34 = vmul.f32 %v429_v21, %v70_v19  ;;  %v83_v14 = vld [vmem:[%s933_s0 + $0x188] sm:$0xff]  ;;  %v85_v16 = vld [vmem:[%s933_s0 + $0x198] sm:$0xff] }
  0x36   :  { %330 = vst [vmem:[%s935_s5 + $0xe0] sm:$0xff] %v266_v22  ;;  %331 = vst [vmem:[%s935_s5 + $0xe8] sm:$0xff] %v267_v23  ;;  %v269_v33 = vmax.f32 %v205_v25, 0.0  ;;  %v141_v35 = vmul.f32 %v429_v21, %v71_v20  ;;  %v206_v36 = vadd.f32 %v465_v39, %v136_v26  ;;  %v207_v37 = vadd.f32 %v465_v39, %v137_v27  ;;  %v86_v22 = vld [vmem:[%s933_s0 + $0x1a0] sm:$0xff]  ;;  %v87_v23 = vld [vmem:[%s933_s0 + $0x1a8] sm:$0xff] }
  0x37   :  { %v208_v38 = vadd.f32 %v465_v39, %v138_v28  ;;  %v209_v40 = vadd.f32 %v465_v39, %v139_v29  ;;  %332 = vst [vmem:[%s935_s5 + $0xf0] sm:$0xff] %v268_v32  ;;  %v210_v42 = vadd.f32 %v465_v39, %v140_v34  ;;  %v142_v44 = vmul.f32 %v429_v21, %v72_v30  ;;  %v88_v32 = vld [vmem:[%s933_s0 + $0x1b0] sm:$0xff] }
  0x38   :  { %333 = vst [vmem:[%s935_s5 + $0xf8] sm:$0xff] %v269_v33  ;;  %v211_v43 = vadd.f32 %v465_v39, %v141_v35  ;;  %v143_v45 = vmul.f32 %v429_v21, %v73_v31  ;;  %v270_v49 = vmax.f32 %v206_v36, 0.0  ;;  %v271_v50 = vmax.f32 %v207_v37, 0.0  ;;  %v89_v33 = vld [vmem:[%s933_s0 + $0x1b8] sm:$0xff] }
  0x39   :  { %v272_v51 = vmax.f32 %v208_v38, 0.0  ;;  %v273_v52 = vmax.f32 %v209_v40, 0.0  ;;  %v274_v55 = vmax.f32 %v210_v42, 0.0  ;;  %v212_v57 = vadd.f32 %v465_v39, %v142_v44 }
  0x3a   :  { %v275_v56 = vmax.f32 %v211_v43, 0.0  ;;  %v213_v58 = vadd.f32 %v465_v39, %v143_v45  ;;  %334 = vst [vmem:[%s935_s5 + $0x100] sm:$0xff] %v270_v49  ;;  %335 = vst [vmem:[%s935_s5 + $0x108] sm:$0xff] %v271_v50  ;;  %v144_v59 = vmul.f32 %v429_v21, %v74_v41  ;;  %v145_v60 = vmul.f32 %v429_v21, %v75_v46  ;;  %v90_v43 = vld [vmem:[%s933_s0 + $0x1c0] sm:$0xff]  ;;  %v92_v49 = vld [vmem:[%s933_s0 + $0x1d0] sm:$0xff] }
  0x3b   :  { %336 = vst [vmem:[%s935_s5 + $0x110] sm:$0xff] %v272_v51  ;;  %337 = vst [vmem:[%s935_s5 + $0x118] sm:$0xff] %v273_v52  ;;  %v146_v61 = vmul.f32 %v429_v21, %v76_v47  ;;  %v147_v62 = vmul.f32 %v429_v21, %v77_v48  ;;  %v276_v1 = vmax.f32 %v212_v57, 0.0  ;;  %v148_v3 = vmul.f32 %v429_v21, %v78_v53  ;;  %v91_v48 = vld [vmem:[%s933_s0 + $0x1c8] sm:$0xff]  ;;  %v93_v50 = vld [vmem:[%s933_s0 + $0x1d8] sm:$0xff] }
  0x3c   :  { %338 = vst [vmem:[%s935_s5 + $0x120] sm:$0xff] %v274_v55  ;;  %339 = vst [vmem:[%s935_s5 + $0x128] sm:$0xff] %v275_v56  ;;  %v277_v2 = vmax.f32 %v213_v58, 0.0  ;;  %v149_v4 = vmul.f32 %v429_v21, %v79_v54  ;;  %v214_v5 = vadd.f32 %v465_v39, %v144_v59  ;;  %v215_v6 = vadd.f32 %v465_v39, %v145_v60  ;;  %v94_v55 = vld [vmem:[%s933_s0 + $0x1e0] sm:$0xff]  ;;  %v95_v56 = vld [vmem:[%s933_s0 + $0x1e8] sm:$0xff] }
  0x3d   :  { %v216_v7 = vadd.f32 %v465_v39, %v146_v61  ;;  %v217_v8 = vadd.f32 %v465_v39, %v147_v62  ;;  %340 = vst [vmem:[%s935_s5 + $0x130] sm:$0xff] %v276_v1  ;;  %v218_v10 = vadd.f32 %v465_v39, %v148_v3  ;;  %v150_v12 = vmul.f32 %v429_v21, %v80_v63  ;;  %v96_v1 = vld [vmem:[%s933_s0 + $0x1f0] sm:$0xff] }
  0x3e   :  { %341 = vst [vmem:[%s935_s5 + $0x138] sm:$0xff] %v277_v2  ;;  %v219_v11 = vadd.f32 %v465_v39, %v149_v4  ;;  %v151_v13 = vmul.f32 %v429_v21, %v81_v0  ;;  %v278_v17 = vmax.f32 %v214_v5, 0.0  ;;  %v279_v18 = vmax.f32 %v215_v6, 0.0  ;;  %v97_v2 = vld [vmem:[%s933_s0 + $0x1f8] sm:$0xff] }
  0x3f   :  { %v280_v19 = vmax.f32 %v216_v7, 0.0  ;;  %v281_v20 = vmax.f32 %v217_v8, 0.0  ;;  %v282_v24 = vmax.f32 %v218_v10, 0.0  ;;  %v220_v26 = vadd.f32 %v465_v39, %v150_v12 }
  0x40   :  { %v283_v25 = vmax.f32 %v219_v11, 0.0  ;;  %v221_v27 = vadd.f32 %v465_v39, %v151_v13  ;;  %342 = vst [vmem:[%s935_s5 + $0x140] sm:$0xff] %v278_v17  ;;  %343 = vst [vmem:[%s935_s5 + $0x148] sm:$0xff] %v279_v18  ;;  %v152_v28 = vmul.f32 %v429_v21, %v82_v9  ;;  %v153_v29 = vmul.f32 %v429_v21, %v83_v14 }
  0x41   :  { %344 = vst [vmem:[%s935_s5 + $0x150] sm:$0xff] %v280_v19  ;;  %345 = vst [vmem:[%s935_s5 + $0x158] sm:$0xff] %v281_v20  ;;  %v154_v30 = vmul.f32 %v429_v21, %v84_v15  ;;  %v155_v31 = vmul.f32 %v429_v21, %v85_v16  ;;  %v284_v34 = vmax.f32 %v220_v26, 0.0  ;;  %v156_v36 = vmul.f32 %v429_v21, %v86_v22 }
  0x42   :  { %346 = vst [vmem:[%s935_s5 + $0x160] sm:$0xff] %v282_v24  ;;  %347 = vst [vmem:[%s935_s5 + $0x168] sm:$0xff] %v283_v25  ;;  %v285_v35 = vmax.f32 %v221_v27, 0.0  ;;  %v157_v37 = vmul.f32 %v429_v21, %v87_v23  ;;  %v222_v38 = vadd.f32 %v465_v39, %v152_v28  ;;  %v223_v40 = vadd.f32 %v465_v39, %v153_v29 }
  0x43   :  { %v224_v41 = vadd.f32 %v465_v39, %v154_v30  ;;  %v225_v42 = vadd.f32 %v465_v39, %v155_v31  ;;  %348 = vst [vmem:[%s935_s5 + $0x170] sm:$0xff] %v284_v34  ;;  %v226_v44 = vadd.f32 %v465_v39, %v156_v36  ;;  %v158_v46 = vmul.f32 %v429_v21, %v88_v32 }
  0x44   :  { %349 = vst [vmem:[%s935_s5 + $0x178] sm:$0xff] %v285_v35  ;;  %v227_v45 = vadd.f32 %v465_v39, %v157_v37  ;;  %v159_v47 = vmul.f32 %v429_v21, %v89_v33  ;;  %v286_v51 = vmax.f32 %v222_v38, 0.0  ;;  %v287_v52 = vmax.f32 %v223_v40, 0.0 }
  0x45   :  { %v288_v53 = vmax.f32 %v224_v41, 0.0  ;;  %v289_v54 = vmax.f32 %v225_v42, 0.0  ;;  %v290_v57 = vmax.f32 %v226_v44, 0.0  ;;  %v228_v59 = vadd.f32 %v465_v39, %v158_v46 }
  0x46   :  { %v291_v58 = vmax.f32 %v227_v45, 0.0  ;;  %v229_v60 = vadd.f32 %v465_v39, %v159_v47  ;;  %350 = vst [vmem:[%s935_s5 + $0x180] sm:$0xff] %v286_v51  ;;  %351 = vst [vmem:[%s935_s5 + $0x188] sm:$0xff] %v287_v52  ;;  %v160_v61 = vmul.f32 %v429_v21, %v90_v43  ;;  %v161_v62 = vmul.f32 %v429_v21, %v91_v48 }
  0x47   :  { %352 = vst [vmem:[%s935_s5 + $0x190] sm:$0xff] %v288_v53  ;;  %353 = vst [vmem:[%s935_s5 + $0x198] sm:$0xff] %v289_v54  ;;  %v162_v63 = vmul.f32 %v429_v21, %v92_v49  ;;  %v163_v0 = vmul.f32 %v429_v21, %v93_v50  ;;  %v292_v3 = vmax.f32 %v228_v59, 0.0  ;;  %v164_v5 = vmul.f32 %v429_v21, %v94_v55 }
  0x48   :  { %354 = vst [vmem:[%s935_s5 + $0x1a0] sm:$0xff] %v290_v57  ;;  %355 = vst [vmem:[%s935_s5 + $0x1a8] sm:$0xff] %v291_v58  ;;  %v293_v4 = vmax.f32 %v229_v60, 0.0  ;;  %v165_v6 = vmul.f32 %v429_v21, %v95_v56  ;;  %v230_v7 = vadd.f32 %v465_v39, %v160_v61  ;;  %v231_v8 = vadd.f32 %v465_v39, %v161_v62 }
  0x49   :  { %v232_v9 = vadd.f32 %v465_v39, %v162_v63  ;;  %v233_v10 = vadd.f32 %v465_v39, %v163_v0  ;;  %356 = vst [vmem:[%s935_s5 + $0x1b0] sm:$0xff] %v292_v3  ;;  %v234_v11 = vadd.f32 %v465_v39, %v164_v5  ;;  %v166_v13 = vmul.f32 %v429_v21, %v96_v1 }
  0x4a   :  { %357 = vst [vmem:[%s935_s5 + $0x1b8] sm:$0xff] %v293_v4  ;;  %v235_v12 = vadd.f32 %v465_v39, %v165_v6  ;;  %v167_v14 = vmul.f32 %v429_v21, %v97_v2  ;;  %v294_v15 = vmax.f32 %v230_v7, 0.0  ;;  %v295_v16 = vmax.f32 %v231_v8, 0.0 }
  0x4b   :  { %v296_v17 = vmax.f32 %v232_v9, 0.0  ;;  %v297_v18 = vmax.f32 %v233_v10, 0.0  ;;  %v298_v19 = vmax.f32 %v234_v11, 0.0  ;;  %v236_v22 = vadd.f32 %v465_v39, %v166_v13 }
  0x4c   :  { %v299_v20 = vmax.f32 %v235_v12, 0.0  ;;  %v237_v23 = vadd.f32 %v465_v39, %v167_v14  ;;  %358 = vst [vmem:[%s935_s5 + $0x1c0] sm:$0xff] %v294_v15  ;;  %359 = vst [vmem:[%s935_s5 + $0x1c8] sm:$0xff] %v295_v16 }
  0x4d   :  { %360 = vst [vmem:[%s935_s5 + $0x1d0] sm:$0xff] %v296_v17  ;;  %361 = vst [vmem:[%s935_s5 + $0x1d8] sm:$0xff] %v297_v18  ;;  %v300_v21 = vmax.f32 %v236_v22, 0.0 }
  0x4e   :  { %362 = vst [vmem:[%s935_s5 + $0x1e0] sm:$0xff] %v298_v19  ;;  %363 = vst [vmem:[%s935_s5 + $0x1e8] sm:$0xff] %v299_v20  ;;  %v301_v39 = vmax.f32 %v237_v23, 0.0 }
  0x4f   :  { %364 = vst [vmem:[%s935_s5 + $0x1f0] sm:$0xff] %v300_v21 }
  0x50   :  { %365 = vst [vmem:[%s935_s5 + $0x1f8] sm:$0xff] %v301_v39 }

// kernel: rsu6_forward.28
= control target key start
LH: loop header
LB: loop body
LE: loop exit
PB: predicated region body
PF: predicated region fallthrough
CT: control target
= control target key end

     0   :  { %v435_v16 = vmov 0.0   ;;  %s575_s1 = inlined_call_operand.vmem [shape: bf16[128,128], index: 1, kind: input, shape index: {}]   ;;  %s576_s0 = inlined_call_operand.vmem [shape: bf16[128,128], index: 0, kind: input, shape index: {}]   ;;  %s577_s3 = inlined_call_operand.vmem [shape: f32[1,128], index: 3, kind: output, shape index: {1}]   ;;  %s578_s4 = inlined_call_operand.vmem [shape: f32[1,128], index: 4, kind: output, shape index: {2}]   ;;  %s579_s2 = inlined_call_operand.vmem [shape: f32[128,128], index: 2, kind: output, shape index: {0}]  }
   0x1   :  { %v419_v0 = vld [vmem:[%s575_s1] sm:$0xff]   ;;  %v420_v1 = vld [vmem:[%s575_s1 + $0x8] sm:$0xff]   ;;  %v421_v2 = vld [vmem:[%s575_s1 + $0x10] sm:$0xff]   ;;  %19 = vst [vmem:[%s577_s3] sm:$0x1] %v435_v16 }
   0x2   :  { %370 = vmatprep.subr.bf16.mxu0 %v419_v0  ;;  %402 = vmatprep.subr.bf16.mxu1 %v419_v0  ;;  %v422_v3 = vld [vmem:[%s575_s1 + $0x18] sm:$0xff]   ;;  %v427_v4 = vld [vmem:[%s576_s0] sm:$0xff]   ;;  %v424_v7 = vld [vmem:[%s575_s1 + $0x28] sm:$0xff]   ;;  %20 = vst [vmem:[%s578_s4] sm:$0x1] %v435_v16 }
   0x3   :  { %371 = vmatpush3.bf16.msra.mxu0 %v419_v0  ;;  %410 = vmatpush3.bf16.msra.mxu1 %v419_v0  ;;  %v423_v5 = vld [vmem:[%s575_s1 + $0x20] sm:$0xff]   ;;  %v425_v8 = vld [vmem:[%s575_s1 + $0x30] sm:$0xff]   ;;  %v426_v9 = vld [vmem:[%s575_s1 + $0x38] sm:$0xff]  }
   0x4   :  { %372 = vmatprep.subr.bf16.mxu0 %v420_v1  ;;  %403 = vmatprep.subr.bf16.mxu1 %v420_v1  ;;  %v431_v6 = vld [vmem:[%s576_s0 + $0x20] sm:$0xff]   ;;  %v428_v10 = vld [vmem:[%s576_s0 + $0x8] sm:$0xff]   ;;  %v429_v12 = vld [vmem:[%s576_s0 + $0x10] sm:$0xff]  }
   0x5   :  { %386 = vmatprep.mubr.bf16.mxu0 %v427_v4  ;;  %394 = vmatprep.mubr.bf16.mxu1 %v431_v6  ;;  %v432_v11 = vld [vmem:[%s576_s0 + $0x28] sm:$0xff]   ;;  %v433_v13 = vld [vmem:[%s576_s0 + $0x30] sm:$0xff]   ;;  %v430_v14 = vld [vmem:[%s576_s0 + $0x18] sm:$0xff]  }
   0x6   :  { %v434_v15 = vld [vmem:[%s576_s0 + $0x38] sm:$0xff]  }
   0x7   :  { %373 = vmatpush3.bf16.msra.mxu0 %v420_v1  ;;  %411 = vmatpush3.bf16.msra.mxu1 %v420_v1 }
   0x8   :  { %374 = vmatprep.subr.bf16.mxu0 %v421_v2  ;;  %404 = vmatprep.subr.bf16.mxu1 %v421_v2 }
   0xb   :  { %375 = vmatpush3.bf16.msra.mxu0 %v421_v2  ;;  %412 = vmatpush3.bf16.msra.mxu1 %v421_v2 }
   0xc   :  { %376 = vmatprep.subr.bf16.mxu0 %v422_v3  ;;  %405 = vmatprep.subr.bf16.mxu1 %v422_v3 }
   0xf   :  { %377 = vmatpush3.bf16.msra.mxu0 %v422_v3  ;;  %413 = vmatpush3.bf16.msra.mxu1 %v422_v3 }
  0x10   :  { %378 = vmatprep.subr.bf16.mxu0 %v423_v5  ;;  %406 = vmatprep.subr.bf16.mxu1 %v423_v5 }
  0x13   :  { %379 = vmatpush3.bf16.msra.mxu0 %v423_v5  ;;  %414 = vmatpush3.bf16.msra.mxu1 %v423_v5 }
  0x14   :  { %380 = vmatprep.subr.bf16.mxu0 %v424_v7  ;;  %407 = vmatprep.subr.bf16.mxu1 %v424_v7 }
  0x17   :  { %381 = vmatpush3.bf16.msra.mxu0 %v424_v7  ;;  %415 = vmatpush3.bf16.msra.mxu1 %v424_v7 }
  0x18   :  { %382 = vmatprep.subr.bf16.mxu0 %v425_v8  ;;  %408 = vmatprep.subr.bf16.mxu1 %v425_v8 }
  0x1b   :  { %383 = vmatpush3.bf16.msra.mxu0 %v425_v8  ;;  %416 = vmatpush3.bf16.msra.mxu1 %v425_v8 }
  0x1c   :  { %384 = vmatprep.subr.bf16.mxu0 %v426_v9  ;;  %409 = vmatprep.subr.bf16.mxu1 %v426_v9 }
  0x1f   :  { %385 = vmatpush3.bf16.msra.mxu0 %v426_v9  ;;  %417 = vmatpush3.bf16.msra.mxu1 %v426_v9 }
  0x22   :  { %387 = vmatmul.mubr.bf16.vlgmr.msra.gmra.mrb[0].mxu0 %v428_v10  ;;  %395 = vmatmul.mubr.bf16.vlgmr.msra.gmra.mrb[0].mxu1 %v432_v11 }
  0x23   :  { %390 = vmatprep.mubr.bf16.mxu0 %v429_v12  ;;  %398 = vmatprep.mubr.bf16.mxu1 %v433_v13 }
  0x2a   :  { %391 = vmatmul.mubr.bf16.gmra.mrb[4].mxu0 %v430_v14  ;;  %399 = vmatmul.mubr.bf16.gmra.mrb[4].mxu1 %v434_v15 }
  0xf5   :  { %v388_v17 = vpop.f32.mrb[0].mxu0  ;;  %v396_v18 = vpop.f32.mrb[0].mxu1 }
  0xf6   :  { %248 = vst [vmem:[%s579_s2 + $0x10] sm:$0xff] %v388_v17  ;;  %v183_v19 = vpop.f32.mrb[1].mxu0  ;;  %256 = vst [vmem:[%s579_s2 + $0x50] sm:$0xff] %v396_v18  ;;  %v215_v20 = vpop.f32.mrb[1].mxu1  ;;  %v289_v28 = vmul.f32 %v388_v17, %v388_v17  ;;  %v297_v60 = vmul.f32 %v396_v18, %v396_v18 }
  0xf7   :  { %246 = vst [vmem:[%s579_s2] sm:$0xff] %v183_v19  ;;  %v389_v21 = vpop.f32.mrb[2].mxu0  ;;  %254 = vst [vmem:[%s579_s2 + $0x40] sm:$0xff] %v215_v20  ;;  %v397_v22 = vpop.f32.mrb[2].mxu1  ;;  %v287_v25 = vmul.f32 %v183_v19, %v183_v19  ;;  %v295_v54 = vmul.f32 %v215_v20, %v215_v20 }
  0xf8   :  { %249 = vst [vmem:[%s579_s2 + $0x18] sm:$0xff] %v389_v21  ;;  %v186_v23 = vpop.f32.mrb[3].mxu0  ;;  %257 = vst [vmem:[%s579_s2 + $0x58] sm:$0xff] %v397_v22  ;;  %v218_v24 = vpop.f32.mrb[3].mxu1  ;;  %v290_v31 = vmul.f32 %v389_v21, %v389_v21  ;;  %v298_v63 = vmul.f32 %v397_v22, %v397_v22 }
  0xf9   :  { %247 = vst [vmem:[%s579_s2 + $0x8] sm:$0xff] %v186_v23  ;;  %v263_v26 = vadd.f32 %v186_v23, %v183_v19  ;;  %v288_v27 = vmul.f32 %v186_v23, %v186_v23  ;;  %255 = vst [vmem:[%s579_s2 + $0x48] sm:$0xff] %v218_v24  ;;  %v296_v59 = vmul.f32 %v218_v24, %v218_v24 }
  0xfb   :  { %v264_v29 = vadd.f32 %v388_v17, %v263_v26  ;;  %v303_v30 = vadd.f32 %v288_v27, %v287_v25  ;;  %v286_v27 = vld [vmem:[%s578_s4] sm:$0x1] }
  0xfd   :  { %v304_v32 = vadd.f32 %v303_v30, %v289_v28  ;;  %v392_v33 = vpop.f32.mrb[4].mxu0  ;;  %v265_v34 = vadd.f32 %v389_v21, %v264_v29  ;;  %v400_v35 = vpop.f32.mrb[4].mxu1 }
  0xfe   :  { %252 = vst [vmem:[%s579_s2 + $0x30] sm:$0xff] %v392_v33  ;;  %v199_v36 = vpop.f32.mrb[5].mxu0  ;;  %260 = vst [vmem:[%s579_s2 + $0x70] sm:$0xff] %v400_v35  ;;  %v231_v37 = vpop.f32.mrb[5].mxu1  ;;  %v293_v48 = vmul.f32 %v392_v33, %v392_v33  ;;  %v301_v8 = vmul.f32 %v400_v35, %v400_v35 }
  0xff   :  { %250 = vst [vmem:[%s579_s2 + $0x20] sm:$0xff] %v199_v36  ;;  %v266_v38 = vadd.f32 %v265_v34, %v199_v36  ;;  %v291_v39 = vmul.f32 %v199_v36, %v199_v36  ;;  %v305_v40 = vadd.f32 %v304_v32, %v290_v31  ;;  %v393_v41 = vpop.f32.mrb[6].mxu0  ;;  %258 = vst [vmem:[%s579_s2 + $0x60] sm:$0xff] %v231_v37  ;;  %v401_v42 = vpop.f32.mrb[6].mxu1 }
 0x100   :  { %253 = vst [vmem:[%s579_s2 + $0x38] sm:$0xff] %v393_v41  ;;  %v202_v43 = vpop.f32.mrb[7].mxu0  ;;  %261 = vst [vmem:[%s579_s2 + $0x78] sm:$0xff] %v401_v42  ;;  %v234_v44 = vpop.f32.mrb[7].mxu1  ;;  %v294_v51 = vmul.f32 %v393_v41, %v393_v41  ;;  %v299_v2 = vmul.f32 %v231_v37, %v231_v37  ;;  %v302_v11 = vmul.f32 %v401_v42, %v401_v42 }
 0x101   :  { %v306_v45 = vadd.f32 %v305_v40, %v291_v39  ;;  %251 = vst [vmem:[%s579_s2 + $0x28] sm:$0xff] %v202_v43  ;;  %v267_v46 = vadd.f32 %v266_v38, %v202_v43  ;;  %v292_v47 = vmul.f32 %v202_v43, %v202_v43  ;;  %259 = vst [vmem:[%s579_s2 + $0x68] sm:$0xff] %v234_v44 }
 0x102   :  { %v300_v7 = vmul.f32 %v234_v44, %v234_v44 }
 0x103   :  { %v268_v49 = vadd.f32 %v392_v33, %v267_v46  ;;  %v307_v50 = vadd.f32 %v306_v45, %v292_v47 }
 0x105   :  { %v308_v52 = vadd.f32 %v307_v50, %v293_v48  ;;  %v269_v53 = vadd.f32 %v393_v41, %v268_v49 }
 0x107   :  { %v270_v55 = vadd.f32 %v269_v53, %v215_v20  ;;  %v309_v56 = vadd.f32 %v308_v52, %v294_v51 }
 0x109   :  { %v310_v57 = vadd.f32 %v309_v56, %v295_v54  ;;  %v271_v58 = vadd.f32 %v270_v55, %v218_v24  ;;  %v262_v24 = vld [vmem:[%s577_s3] sm:$0x1] }
 0x10b   :  { %v272_v61 = vadd.f32 %v396_v18, %v271_v58  ;;  %v311_v62 = vadd.f32 %v310_v57, %v296_v59 }
 0x10d   :  { %v312_v0 = vadd.f32 %v311_v62, %v297_v60  ;;  %v273_v1 = vadd.f32 %v397_v22, %v272_v61 }
 0x10f   :  { %v274_v3 = vadd.f32 %v273_v1, %v231_v37  ;;  %v313_v4 = vadd.f32 %v312_v0, %v298_v63 }
 0x111   :  { %v314_v5 = vadd.f32 %v313_v4, %v299_v2  ;;  %v275_v6 = vadd.f32 %v274_v3, %v234_v44 }
 0x113   :  { %v276_v9 = vadd.f32 %v400_v35, %v275_v6  ;;  %v315_v10 = vadd.f32 %v314_v5, %v300_v7 }
 0x115   :  { %v277_v12 = vadd.f32 %v401_v42, %v276_v9  ;;  %v316_v13 = vadd.f32 %v315_v10, %v301_v8 }
 0x117   :  { %v278_v14 = vrot.slane %v277_v12, 4  ;;  %v317_v15 = vadd.f32 %v316_v13, %v302_v11 }
 0x119   :  { %v279_v16 = vadd.f32 %v278_v14, %v277_v12  ;;  %v318_v17 = vrot.slane %v317_v15, 4 }
 0x11b   :  { %v280_v18 = vrot.slane %v279_v16, 2  ;;  %v319_v19 = vadd.f32 %v318_v17, %v317_v15 }
 0x11d   :  { %v281_v20 = vadd.f32 %v280_v18, %v279_v16  ;;  %v320_v21 = vrot.slane %v319_v19, 2 }
 0x11f   :  { %v282_v22 = vrot.slane %v281_v20, 1  ;;  %v321_v23 = vadd.f32 %v320_v21, %v319_v19 }
 0x121   :  { %v283_v25 = vadd.f32 %v282_v22, %v281_v20  ;;  %v322_v26 = vrot.slane %v321_v23, 1 }
 0x123   :  { %v284_v28 = vadd.f32 %v283_v25, %v262_v24  ;;  %v323_v29 = vadd.f32 %v322_v26, %v321_v23 }
 0x125   :  { %285 = vst [vmem:[%s577_s3] sm:$0x1] %v284_v28  ;;  %v324_v30 = vadd.f32 %v323_v29, %v286_v27 }
 0x127   :  { %325 = vst [vmem:[%s578_s4] sm:$0x1] %v324_v30 }

// kernel: rsu6_forward.29
= control target key start
LH: loop header
LB: loop body
LE: loop exit
PB: predicated region body
PF: predicated region fallthrough
CT: control target
= control target key end

     0   :  { %v51_v8 = vlaneseq  ;;  %s270_s1 = inlined_call_operand.vmem [shape: f32[1,128], index: 1, kind: input, shape index: {}]   ;;  %s271_s2 = inlined_call_operand.vmem [shape: f32[1,128], index: 2, kind: input, shape index: {}]   ;;  %s272_s3 = inlined_call_operand.vmem [shape: f32[1,128], index: 3, kind: input, shape index: {}]   ;;  %s273_s0 = inlined_call_operand.vmem [shape: f32[128,128], index: 0, kind: input, shape index: {}]   ;;  %s274_s4 = inlined_call_operand.vmem [shape: f32[1,128], index: 4, kind: input, shape index: {}]   ;;  %s275_s5 = inlined_call_operand.vmem [shape: f32[128,128], index: 5, kind: output, shape index: {}]  }
   0x1   :  { %v20_v0 = vld [vmem:[%s270_s1] sm:$0x1]  ;;  %v35_v16 = vld [vmem:[%s273_s0 + $0x8] sm:$0xff]  ;;  %v36_v17 = vld [vmem:[%s273_s0 + $0x10] sm:$0xff] }
   0x2   :  { %v22_v1 = vld [vmem:[%s271_s2] sm:$0x1]  ;;  %v21_v2 = vmul.f32 0.0078125, %v20_v0  ;;  %v52_v9 = vshrl.u32 %v51_v8, 7  ;;  %v37_v18 = vld [vmem:[%s273_s0 + $0x18] sm:$0xff]  ;;  %v39_v22 = vld [vmem:[%s273_s0 + $0x28] sm:$0xff] }
   0x3   :  { %v23_v3 = vmul.f32 0.0078125, %v22_v1  ;;  %v27_v10 = vld [vmem:[%s272_s3] sm:$0x1]  ;;  %v40_v23 = vld [vmem:[%s273_s0 + $0x30] sm:$0xff]  ;;  %v41_v24 = vld [vmem:[%s273_s0 + $0x38] sm:$0xff] }
   0x4   :  { %v24_v4 = vmul.f32 %v21_v2, %v21_v2  ;;  %v53_v11 = vsub.s32 0, %v52_v9  ;;  %v31_v14 = vld [vmem:[%s274_s4] sm:$0x1]  ;;  %v43_v26 = vld [vmem:[%s273_s0 + $0x48] sm:$0xff]  ;;  %v44_v27 = vld [vmem:[%s273_s0 + $0x50] sm:$0xff] }
   0x5   :  { %v34_v15 = vld [vmem:[%s273_s0] sm:$0xff]  ;;  %v45_v32 = vld [vmem:[%s273_s0 + $0x58] sm:$0xff]  ;;  %v47_v34 = vld [vmem:[%s273_s0 + $0x68] sm:$0xff] }
   0x6   :  { %v25_v5 = vsub.f32 %v23_v3, %v24_v4  ;;  %v38_v19 = vld [vmem:[%s273_s0 + $0x20] sm:$0xff]  ;;  %v48_v59 = vld [vmem:[%s273_s0 + $0x70] sm:$0xff]  ;;  %v49_v60 = vld [vmem:[%s273_s0 + $0x78] sm:$0xff] }
   0x7   :  { %v42_v25 = vld [vmem:[%s273_s0 + $0x40] sm:$0xff] }
   0x8   :  { %v26_v6 = vmax.f32 %v25_v5, 0.0  ;;  %v46_v33 = vld [vmem:[%s273_s0 + $0x60] sm:$0xff] }
   0xa   :  { %v28_v7 = vadd.f32 1e-05, %v26_v6 }
   0xc   :  { %130 = vrsqrt.f32 %v28_v7 }
  0x16   :  { %v131_v12 = vpop.eup %130 }
  0x17   :  { %v30_v13 = vmul.f32 %v131_v12, %v27_v10 }
  0x19   :  { %v32_v20 = vmul.f32 %v30_v13, %v21_v2  ;;  %v54_v21 = vrot.slane %v30_v13, %v53_v11 }
  0x1b   :  { %v33_v28 = vsub.f32 %v31_v14, %v32_v20  ;;  %v56_v29 = vmul.f32 %v54_v21, %v34_v15  ;;  %v57_v30 = vmul.f32 %v54_v21, %v35_v16  ;;  %v58_v31 = vmul.f32 %v54_v21, %v36_v17 }
  0x1c   :  { %v59_v35 = vmul.f32 %v54_v21, %v37_v18  ;;  %v60_v36 = vmul.f32 %v54_v21, %v38_v19  ;;  %v61_v37 = vmul.f32 %v54_v21, %v39_v22  ;;  %v62_v38 = vmul.f32 %v54_v21, %v40_v23 }
  0x1d   :  { %v76_v39 = vrot.slane %v33_v28, %v53_v11  ;;  %v63_v40 = vmul.f32 %v54_v21, %v41_v24  ;;  %v64_v41 = vmul.f32 %v54_v21, %v42_v25  ;;  %v65_v42 = vmul.f32 %v54_v21, %v43_v26 }
  0x1e   :  { %v66_v43 = vmul.f32 %v54_v21, %v44_v27  ;;  %v67_v44 = vmul.f32 %v54_v21, %v45_v32  ;;  %v68_v45 = vmul.f32 %v54_v21, %v46_v33  ;;  %v69_v46 = vmul.f32 %v54_v21, %v47_v34 }
  0x1f   :  { %v78_v47 = vadd.f32 %v76_v39, %v56_v29  ;;  %v79_v48 = vadd.f32 %v76_v39, %v57_v30  ;;  %v80_v49 = vadd.f32 %v76_v39, %v58_v31  ;;  %v81_v50 = vadd.f32 %v76_v39, %v59_v35 }
  0x20   :  { %v82_v51 = vadd.f32 %v76_v39, %v60_v36  ;;  %v83_v52 = vadd.f32 %v76_v39, %v61_v37  ;;  %v84_v53 = vadd.f32 %v76_v39, %v62_v38  ;;  %v85_v54 = vadd.f32 %v76_v39, %v63_v40 }
  0x21   :  { %v94_v55 = vmax.f32 %v78_v47, 0.0  ;;  %v95_v56 = vmax.f32 %v79_v48, 0.0  ;;  %v96_v57 = vmax.f32 %v80_v49, 0.0  ;;  %v97_v58 = vmax.f32 %v81_v50, 0.0 }
  0x22   :  { %v98_v61 = vmax.f32 %v82_v51, 0.0  ;;  %v99_v62 = vmax.f32 %v83_v52, 0.0  ;;  %v100_v63 = vmax.f32 %v84_v53, 0.0  ;;  %v101_v0 = vmax.f32 %v85_v54, 0.0 }
  0x23   :  { %110 = vst [vmem:[%s275_s5] sm:$0xff] %v94_v55  ;;  %111 = vst [vmem:[%s275_s5 + $0x8] sm:$0xff] %v95_v56  ;;  %v86_v1 = vadd.f32 %v76_v39, %v64_v41  ;;  %v87_v2 = vadd.f32 %v76_v39, %v65_v42  ;;  %v88_v3 = vadd.f32 %v76_v39, %v66_v43 }
  0x24   :  { %112 = vst [vmem:[%s275_s5 + $0x10] sm:$0xff] %v96_v57  ;;  %113 = vst [vmem:[%s275_s5 + $0x18] sm:$0xff] %v97_v58  ;;  %v89_v4 = vadd.f32 %v76_v39, %v67_v44  ;;  %v90_v5 = vadd.f32 %v76_v39, %v68_v45  ;;  %v91_v6 = vadd.f32 %v76_v39, %v69_v46 }
  0x25   :  { %114 = vst [vmem:[%s275_s5 + $0x20] sm:$0xff] %v98_v61  ;;  %115 = vst [vmem:[%s275_s5 + $0x28] sm:$0xff] %v99_v62  ;;  %v70_v7 = vmul.f32 %v54_v21, %v48_v59  ;;  %v71_v8 = vmul.f32 %v54_v21, %v49_v60  ;;  %v102_v9 = vmax.f32 %v86_v1, 0.0  ;;  %v103_v10 = vmax.f32 %v87_v2, 0.0 }
  0x26   :  { %116 = vst [vmem:[%s275_s5 + $0x30] sm:$0xff] %v100_v63  ;;  %117 = vst [vmem:[%s275_s5 + $0x38] sm:$0xff] %v101_v0  ;;  %v104_v11 = vmax.f32 %v88_v3, 0.0  ;;  %v105_v12 = vmax.f32 %v89_v4, 0.0  ;;  %v106_v13 = vmax.f32 %v90_v5, 0.0  ;;  %v107_v14 = vmax.f32 %v91_v6, 0.0 }
  0x27   :  { %v92_v15 = vadd.f32 %v76_v39, %v70_v7  ;;  %v93_v16 = vadd.f32 %v76_v39, %v71_v8  ;;  %118 = vst [vmem:[%s275_s5 + $0x40] sm:$0xff] %v102_v9  ;;  %119 = vst [vmem:[%s275_s5 + $0x48] sm:$0xff] %v103_v10 }
  0x28   :  { %120 = vst [vmem:[%s275_s5 + $0x50] sm:$0xff] %v104_v11  ;;  %121 = vst [vmem:[%s275_s5 + $0x58] sm:$0xff] %v105_v12 }
  0x29   :  { %122 = vst [vmem:[%s275_s5 + $0x60] sm:$0xff] %v106_v13  ;;  %123 = vst [vmem:[%s275_s5 + $0x68] sm:$0xff] %v107_v14  ;;  %v108_v17 = vmax.f32 %v92_v15, 0.0  ;;  %v109_v18 = vmax.f32 %v93_v16, 0.0 }
  0x2b   :  { %124 = vst [vmem:[%s275_s5 + $0x70] sm:$0xff] %v108_v17  ;;  %125 = vst [vmem:[%s275_s5 + $0x78] sm:$0xff] %v109_v18 }

// kernel: rsu6_forward.31
= control target key start
LH: loop header
LB: loop body
LE: loop exit
PB: predicated region body
PF: predicated region fallthrough
CT: control target
= control target key end

     0   :  { %v39_v8 = vlaneseq  ;;  %s138_s1 = inlined_call_operand.vmem [shape: f32[1,128], index: 1, kind: input, shape index: {}]   ;;  %s139_s2 = inlined_call_operand.vmem [shape: f32[1,128], index: 2, kind: input, shape index: {}]   ;;  %s140_s3 = inlined_call_operand.vmem [shape: f32[1,128], index: 3, kind: input, shape index: {}]   ;;  %s141_s4 = inlined_call_operand.vmem [shape: f32[1,128], index: 4, kind: input, shape index: {}]   ;;  %s142_s0 = inlined_call_operand.vmem [shape: f32[32,128], index: 0, kind: input, shape index: {}]   ;;  %s143_s5 = inlined_call_operand.vmem [shape: f32[32,128], index: 5, kind: output, shape index: {}]  }
   0x1   :  { %v20_v0 = vld [vmem:[%s138_s1] sm:$0x1]  ;;  %v35_v16 = vld [vmem:[%s142_s0 + $0x8] sm:$0xff]  ;;  %v36_v17 = vld [vmem:[%s142_s0 + $0x10] sm:$0xff] }
   0x2   :  { %v22_v1 = vld [vmem:[%s139_s2] sm:$0x1]  ;;  %v21_v2 = vmul.f32 0.03125, %v20_v0  ;;  %v40_v9 = vshrl.u32 %v39_v8, 7  ;;  %v37_v20 = vld [vmem:[%s142_s0 + $0x18] sm:$0xff] }
   0x3   :  { %v23_v3 = vmul.f32 0.03125, %v22_v1  ;;  %v27_v10 = vld [vmem:[%s140_s3] sm:$0x1] }
   0x4   :  { %v24_v4 = vmul.f32 %v21_v2, %v21_v2  ;;  %v41_v11 = vsub.s32 0, %v40_v9  ;;  %v31_v14 = vld [vmem:[%s141_s4] sm:$0x1] }
   0x5   :  { %v34_v15 = vld [vmem:[%s142_s0] sm:$0xff] }
   0x6   :  { %v25_v5 = vsub.f32 %v23_v3, %v24_v4 }
   0x8   :  { %v26_v6 = vmax.f32 %v25_v5, 0.0 }
   0xa   :  { %v28_v7 = vadd.f32 1e-05, %v26_v6 }
   0xc   :  { %70 = vrsqrt.f32 %v28_v7 }
  0x16   :  { %v71_v12 = vpop.eup %70 }
  0x17   :  { %v30_v13 = vmul.f32 %v71_v12, %v27_v10 }
  0x19   :  { %v32_v18 = vmul.f32 %v30_v13, %v21_v2  ;;  %v42_v19 = vrot.slane %v30_v13, %v41_v11 }
  0x1b   :  { %v33_v21 = vsub.f32 %v31_v14, %v32_v18  ;;  %v44_v22 = vmul.f32 %v42_v19, %v34_v15  ;;  %v45_v23 = vmul.f32 %v42_v19, %v35_v16  ;;  %v46_v24 = vmul.f32 %v42_v19, %v36_v17 }
  0x1c   :  { %v47_v25 = vmul.f32 %v42_v19, %v37_v20 }
  0x1d   :  { %v52_v26 = vrot.slane %v33_v21, %v41_v11 }
  0x1f   :  { %v54_v27 = vadd.f32 %v52_v26, %v44_v22  ;;  %v55_v28 = vadd.f32 %v52_v26, %v45_v23  ;;  %v56_v29 = vadd.f32 %v52_v26, %v46_v24  ;;  %v57_v30 = vadd.f32 %v52_v26, %v47_v25 }
  0x21   :  { %v58_v31 = vmax.f32 %v54_v27, 0.0  ;;  %v59_v32 = vmax.f32 %v55_v28, 0.0  ;;  %v60_v33 = vmax.f32 %v56_v29, 0.0  ;;  %v61_v34 = vmax.f32 %v57_v30, 0.0 }
  0x23   :  { %62 = vst [vmem:[%s143_s5] sm:$0xff] %v58_v31  ;;  %63 = vst [vmem:[%s143_s5 + $0x8] sm:$0xff] %v59_v32 }
  0x24   :  { %64 = vst [vmem:[%s143_s5 + $0x10] sm:$0xff] %v60_v33  ;;  %65 = vst [vmem:[%s143_s5 + $0x18] sm:$0xff] %v61_v34 }

// kernel: rsu6_forward.30
= control target key start
LH: loop header
LB: loop body
LE: loop exit
PB: predicated region body
PF: predicated region fallthrough
CT: control target
= control target key end

     0   :  { %v245_v10 = vmov 0.0   ;;  %s331_s1 = inlined_call_operand.vmem [shape: bf16[128,128], index: 1, kind: input, shape index: {}]   ;;  %s332_s0 = inlined_call_operand.vmem [shape: bf16[32,128], index: 0, kind: input, shape index: {}]   ;;  %s333_s3 = inlined_call_operand.vmem [shape: f32[1,128], index: 3, kind: output, shape index: {1}]   ;;  %s334_s4 = inlined_call_operand.vmem [shape: f32[1,128], index: 4, kind: output, shape index: {2}]   ;;  %s335_s2 = inlined_call_operand.vmem [shape: f32[32,128], index: 2, kind: output, shape index: {0}]  }
   0x1   :  { %v235_v0 = vld [vmem:[%s331_s1] sm:$0xff]   ;;  %v236_v1 = vld [vmem:[%s331_s1 + $0x8] sm:$0xff]   ;;  %v237_v2 = vld [vmem:[%s331_s1 + $0x10] sm:$0xff]   ;;  %19 = vst [vmem:[%s333_s3] sm:$0x1] %v245_v10 }
   0x2   :  { %214 = vmatprep.subr.bf16.mxu0 %v235_v0  ;;  %v238_v3 = vld [vmem:[%s331_s1 + $0x18] sm:$0xff]   ;;  %v243_v4 = vld [vmem:[%s332_s0] sm:$0xff]   ;;  %v240_v6 = vld [vmem:[%s331_s1 + $0x28] sm:$0xff]   ;;  %20 = vst [vmem:[%s334_s4] sm:$0x1] %v245_v10 }
   0x3   :  { %215 = vmatpush3.bf16.msra.mxu0 %v235_v0  ;;  %230 = vmatprep.mubr.bf16.mxu0 %v243_v4  ;;  %v239_v5 = vld [vmem:[%s331_s1 + $0x20] sm:$0xff]   ;;  %v241_v7 = vld [vmem:[%s331_s1 + $0x30] sm:$0xff]   ;;  %v242_v8 = vld [vmem:[%s331_s1 + $0x38] sm:$0xff]  }
   0x4   :  { %216 = vmatprep.subr.bf16.mxu0 %v236_v1  ;;  %v244_v9 = vld [vmem:[%s332_s0 + $0x8] sm:$0xff]  }
   0x7   :  { %217 = vmatpush3.bf16.msra.mxu0 %v236_v1 }
   0x8   :  { %218 = vmatprep.subr.bf16.mxu0 %v237_v2  ;;  %v154_v34 = vld [vmem:[%s333_s3] sm:$0x1] }
   0x9   :  { %v166_v37 = vld [vmem:[%s334_s4] sm:$0x1] }
   0xb   :  { %219 = vmatpush3.bf16.msra.mxu0 %v237_v2 }
   0xc   :  { %220 = vmatprep.subr.bf16.mxu0 %v238_v3 }
   0xf   :  { %221 = vmatpush3.bf16.msra.mxu0 %v238_v3 }
  0x10   :  { %222 = vmatprep.subr.bf16.mxu0 %v239_v5 }
  0x13   :  { %223 = vmatpush3.bf16.msra.mxu0 %v239_v5 }
  0x14   :  { %224 = vmatprep.subr.bf16.mxu0 %v240_v6 }
  0x17   :  { %225 = vmatpush3.bf16.msra.mxu0 %v240_v6 }
  0x18   :  { %226 = vmatprep.subr.bf16.mxu0 %v241_v7 }
  0x1b   :  { %227 = vmatpush3.bf16.msra.mxu0 %v241_v7 }
  0x1c   :  { %228 = vmatprep.subr.bf16.mxu0 %v242_v8 }
  0x1f   :  { %229 = vmatpush3.bf16.msra.mxu0 %v242_v8 }
  0x22   :  { %231 = vmatmul.mubr.bf16.vlgmr.msra.gmra.mrb[0].mxu0 %v244_v9 }
  0xf5   :  { %v232_v11 = vpop.f32.mrb[0].mxu0 }
  0xf6   :  { %152 = vst [vmem:[%s335_s2 + $0x10] sm:$0xff] %v232_v11  ;;  %v135_v12 = vpop.f32.mrb[1].mxu0  ;;  %v169_v18 = vmul.f32 %v232_v11, %v232_v11 }
  0xf7   :  { %150 = vst [vmem:[%s335_s2] sm:$0xff] %v135_v12  ;;  %v233_v13 = vpop.f32.mrb[2].mxu0  ;;  %v167_v15 = vmul.f32 %v135_v12, %v135_v12 }
  0xf8   :  { %153 = vst [vmem:[%s335_s2 + $0x18] sm:$0xff] %v233_v13  ;;  %v138_v14 = vpop.f32.mrb[3].mxu0  ;;  %v170_v21 = vmul.f32 %v233_v13, %v233_v13 }
  0xf9   :  { %151 = vst [vmem:[%s335_s2 + $0x8] sm:$0xff] %v138_v14  ;;  %v155_v16 = vadd.f32 %v138_v14, %v135_v12  ;;  %v168_v17 = vmul.f32 %v138_v14, %v138_v14 }
  0xfb   :  { %v156_v19 = vadd.f32 %v232_v11, %v155_v16  ;;  %v171_v20 = vadd.f32 %v168_v17, %v167_v15 }
  0xfd   :  { %v157_v22 = vadd.f32 %v233_v13, %v156_v19  ;;  %v172_v23 = vadd.f32 %v171_v20, %v169_v18 }
  0xff   :  { %v158_v24 = vrot.slane %v157_v22, 4  ;;  %v173_v25 = vadd.f32 %v172_v23, %v170_v21 }
 0x101   :  { %v159_v26 = vadd.f32 %v158_v24, %v157_v22  ;;  %v174_v27 = vrot.slane %v173_v25, 4 }
 0x103   :  { %v160_v28 = vrot.slane %v159_v26, 2  ;;  %v175_v29 = vadd.f32 %v174_v27, %v173_v25 }
 0x105   :  { %v161_v30 = vadd.f32 %v160_v28, %v159_v26  ;;  %v176_v31 = vrot.slane %v175_v29, 2 }
 0x107   :  { %v162_v32 = vrot.slane %v161_v30, 1  ;;  %v177_v33 = vadd.f32 %v176_v31, %v175_v29 }
 0x109   :  { %v163_v35 = vadd.f32 %v162_v32, %v161_v30  ;;  %v178_v36 = vrot.slane %v177_v33, 1 }
 0x10b   :  { %v164_v38 = vadd.f32 %v163_v35, %v154_v34  ;;  %v179_v39 = vadd.f32 %v178_v36, %v177_v33 }
 0x10d   :  { %165 = vst [vmem:[%s333_s3] sm:$0x1] %v164_v38  ;;  %v180_v40 = vadd.f32 %v179_v39, %v166_v37 }
 0x10f   :  { %181 = vst [vmem:[%s334_s4] sm:$0x1] %v180_v40 }

// kernel: rsu6_forward.33
= control target key start
LH: loop header
LB: loop body
LE: loop exit
PB: predicated region body
PF: predicated region fallthrough
CT: control target
= control target key end

     0   :  { %v36_v8 = vlaneseq  ;;  %s105_s1 = inlined_call_operand.vmem [shape: f32[1,128], index: 1, kind: input, shape index: {}]   ;;  %s106_s2 = inlined_call_operand.vmem [shape: f32[1,128], index: 2, kind: input, shape index: {}]   ;;  %s107_s3 = inlined_call_operand.vmem [shape: f32[1,128], index: 3, kind: input, shape index: {}]   ;;  %s108_s0 = inlined_call_operand.vmem [shape: f32[8,128], index: 0, kind: input, shape index: {}]   ;;  %s109_s4 = inlined_call_operand.vmem [shape: f32[1,128], index: 4, kind: input, shape index: {}]   ;;  %s110_s5 = inlined_call_operand.vmem [shape: f32[8,128], index: 5, kind: output, shape index: {}]  }
   0x1   :  { %v20_v0 = vld [vmem:[%s105_s1] sm:$0x1] }
   0x2   :  { %v22_v1 = vld [vmem:[%s106_s2] sm:$0x1]  ;;  %v21_v2 = vmul.f32 0.125, %v20_v0  ;;  %v37_v9 = vshrl.u32 %v36_v8, 7 }
   0x3   :  { %v23_v3 = vmul.f32 0.125, %v22_v1  ;;  %v27_v10 = vld [vmem:[%s107_s3] sm:$0x1] }
   0x4   :  { %v24_v4 = vmul.f32 %v21_v2, %v21_v2  ;;  %v38_v11 = vsub.s32 0, %v37_v9  ;;  %v31_v14 = vld [vmem:[%s109_s4] sm:$0x1] }
   0x5   :  { %v34_v15 = vld [vmem:[%s108_s0] sm:$0xff] }
   0x6   :  { %v25_v5 = vsub.f32 %v23_v3, %v24_v4 }
   0x8   :  { %v26_v6 = vmax.f32 %v25_v5, 0.0 }
   0xa   :  { %v28_v7 = vadd.f32 1e-05, %v26_v6 }
   0xc   :  { %55 = vrsqrt.f32 %v28_v7 }
  0x16   :  { %v56_v12 = vpop.eup %55 }
  0x17   :  { %v30_v13 = vmul.f32 %v56_v12, %v27_v10 }
  0x19   :  { %v32_v16 = vmul.f32 %v30_v13, %v21_v2  ;;  %v39_v17 = vrot.slane %v30_v13, %v38_v11 }
  0x1b   :  { %v33_v18 = vsub.f32 %v31_v14, %v32_v16  ;;  %v41_v19 = vmul.f32 %v39_v17, %v34_v15 }
  0x1d   :  { %v46_v20 = vrot.slane %v33_v18, %v38_v11 }
  0x1f   :  { %v48_v21 = vadd.f32 %v46_v20, %v41_v19 }
  0x21   :  { %v49_v22 = vmax.f32 %v48_v21, 0.0 }
  0x23   :  { %50 = vst [vmem:[%s110_s5] sm:$0xff] %v49_v22 }

// kernel: rsu6_forward.32
= control target key start
LH: loop header
LB: loop body
LE: loop exit
PB: predicated region body
PF: predicated region fallthrough
CT: control target
= control target key end

     0   :  { %v205_v0 = vmov 0.0   ;;  %vm206_vm0 = vmmov 0   ;;  %s280_s1 = inlined_call_operand.vmem [shape: bf16[128,128], index: 1, kind: input, shape index: {}]   ;;  %s281_s3 = inlined_call_operand.vmem [shape: f32[1,128], index: 3, kind: output, shape index: {1}]   ;;  %s282_s4 = inlined_call_operand.vmem [shape: f32[1,128], index: 4, kind: output, shape index: {2}]   ;;  %s283_s0 = inlined_call_operand.vmem [shape: bf16[8,128], index: 0, kind: input, shape index: {}]   ;;  %s284_s2 = inlined_call_operand.vmem [shape: f32[8,128], index: 2, kind: output, shape index: {0}]  }
   0x1   :  { %175 = vmatprep.subr.bf16.mxu0 %v205_v0  ;;  %v197_v1 = vld [vmem:[%s280_s1] sm:$0xff]   ;;  %191 = vmatprep.mubr.msk.bf16.mxu0 %vm206_vm0, %v205_v0  ;;  %19 = vst [vmem:[%s281_s3] sm:$0x1] %v205_v0  ;;  %20 = vst [vmem:[%s282_s4] sm:$0x1] %v205_v0  ;;  %v198_v2 = vld [vmem:[%s280_s1 + $0x8] sm:$0xff]  }
   0x2   :  { %176 = vmatpush3.bf16.msra.mxu0 %v197_v1  ;;  %v199_v3 = vld [vmem:[%s280_s1 + $0x10] sm:$0xff]   ;;  %v200_v4 = vld [vmem:[%s280_s1 + $0x18] sm:$0xff]   ;;  %v201_v5 = vld [vmem:[%s280_s1 + $0x20] sm:$0xff]  }
   0x3   :  { %177 = vmatprep.subr.bf16.mxu0 %v205_v0  ;;  %v202_v6 = vld [vmem:[%s280_s1 + $0x28] sm:$0xff]   ;;  %v203_v7 = vld [vmem:[%s280_s1 + $0x30] sm:$0xff]   ;;  %v204_v8 = vld [vmem:[%s280_s1 + $0x38] sm:$0xff]  }
   0x4   :  { %v21_v9 = vld [vmem:[%s283_s0] sm:$0xf] }
   0x6   :  { %178 = vmatpush3.bf16.msra.mxu0 %v198_v2 }
   0x7   :  { %179 = vmatprep.subr.bf16.mxu0 %v205_v0 }
   0x8   :  { %v127_v24 = vld [vmem:[%s281_s3] sm:$0x1] }
   0x9   :  { %v136_v27 = vld [vmem:[%s282_s4] sm:$0x1] }
   0xa   :  { %180 = vmatpush3.bf16.msra.mxu0 %v199_v3 }
   0xb   :  { %181 = vmatprep.subr.bf16.mxu0 %v205_v0 }
   0xe   :  { %182 = vmatpush3.bf16.msra.mxu0 %v200_v4 }
   0xf   :  { %183 = vmatprep.subr.bf16.mxu0 %v205_v0 }
  0x12   :  { %184 = vmatpush3.bf16.msra.mxu0 %v201_v5 }
  0x13   :  { %185 = vmatprep.subr.bf16.mxu0 %v205_v0 }
  0x16   :  { %186 = vmatpush3.bf16.msra.mxu0 %v202_v6 }
  0x17   :  { %187 = vmatprep.subr.bf16.mxu0 %v205_v0 }
  0x1a   :  { %188 = vmatpush3.bf16.msra.mxu0 %v203_v7 }
  0x1b   :  { %189 = vmatprep.subr.bf16.mxu0 %v205_v0 }
  0x1e   :  { %190 = vmatpush3.bf16.msra.mxu0 %v204_v8 }
  0x21   :  { %192 = vmatmul.mubr.bf16.vlgmr.msra.gmra.mrb[0].mxu0 %v21_v9 }
  0xf4   :  { %v120_v10 = vpop.f32.mrb[0].mxu0 }
  0xf5   :  { %126 = vst [vmem:[%s284_s2] sm:$0xff] %v120_v10  ;;  %v128_v11 = vrot.slane %v120_v10, 4  ;;  %v137_v12 = vmul.f32 %v120_v10, %v120_v10  ;;  %v193_v13 = vpop.f32.mrb[1].mxu0 }
  0xf6   :  { %v123_v14 = vpop.f32.mrb[2].mxu0 }
  0xf7   :  { %v129_v15 = vadd.f32 %v128_v11, %v120_v10  ;;  %v138_v16 = vrot.slane %v137_v12, 4  ;;  %v194_v17 = vpop.f32.mrb[3].mxu0 }
  0xf9   :  { %v130_v18 = vrot.slane %v129_v15, 2  ;;  %v139_v19 = vadd.f32 %v138_v16, %v137_v12 }
  0xfb   :  { %v131_v20 = vadd.f32 %v130_v18, %v129_v15  ;;  %v140_v21 = vrot.slane %v139_v19, 2 }
  0xfd   :  { %v132_v22 = vrot.slane %v131_v20, 1  ;;  %v141_v23 = vadd.f32 %v140_v21, %v139_v19 }
  0xff   :  { %v133_v25 = vadd.f32 %v132_v22, %v131_v20  ;;  %v142_v26 = vrot.slane %v141_v23, 1 }
 0x101   :  { %v134_v28 = vadd.f32 %v133_v25, %v127_v24  ;;  %v143_v29 = vadd.f32 %v142_v26, %v141_v23 }
 0x103   :  { %135 = vst [vmem:[%s281_s3] sm:$0x1] %v134_v28  ;;  %v144_v30 = vadd.f32 %v143_v29, %v136_v27 }
 0x105   :  { %145 = vst [vmem:[%s282_s4] sm:$0x1] %v144_v30 }

// kernel: rsu6_forward.35
= control target key start
LH: loop header
LB: loop body
LE: loop exit
PB: predicated region body
PF: predicated region fallthrough
CT: control target
= control target key end

     0   :  { %v36_v8 = vlaneseq  ;;  %s105_s1 = inlined_call_operand.vmem [shape: f32[1,128], index: 1, kind: input, shape index: {}]   ;;  %s106_s2 = inlined_call_operand.vmem [shape: f32[1,128], index: 2, kind: input, shape index: {}]   ;;  %s107_s3 = inlined_call_operand.vmem [shape: f32[1,128], index: 3, kind: input, shape index: {}]   ;;  %s108_s0 = inlined_call_operand.vmem [shape: f32[8,128], index: 0, kind: input, shape index: {}]   ;;  %s109_s4 = inlined_call_operand.vmem [shape: f32[1,128], index: 4, kind: input, shape index: {}]   ;;  %s110_s5 = inlined_call_operand.vmem [shape: f32[8,128], index: 5, kind: output, shape index: {}]  }
   0x1   :  { %v20_v0 = vld [vmem:[%s105_s1] sm:$0x1] }
   0x2   :  { %v22_v1 = vld [vmem:[%s106_s2] sm:$0x1]  ;;  %v21_v2 = vmul.f32 0.5, %v20_v0  ;;  %v37_v9 = vshrl.u32 %v36_v8, 7 }
   0x3   :  { %v23_v3 = vmul.f32 0.5, %v22_v1  ;;  %v27_v10 = vld [vmem:[%s107_s3] sm:$0x1] }
   0x4   :  { %v24_v4 = vmul.f32 %v21_v2, %v21_v2  ;;  %v38_v11 = vsub.s32 0, %v37_v9  ;;  %v31_v14 = vld [vmem:[%s109_s4] sm:$0x1] }
   0x5   :  { %v34_v15 = vld [vmem:[%s108_s0] sm:$0xff] }
   0x6   :  { %v25_v5 = vsub.f32 %v23_v3, %v24_v4 }
   0x8   :  { %v26_v6 = vmax.f32 %v25_v5, 0.0 }
   0xa   :  { %v28_v7 = vadd.f32 1e-05, %v26_v6 }
   0xc   :  { %55 = vrsqrt.f32 %v28_v7 }
  0x16   :  { %v56_v12 = vpop.eup %55 }
  0x17   :  { %v30_v13 = vmul.f32 %v56_v12, %v27_v10 }
  0x19   :  { %v32_v16 = vmul.f32 %v30_v13, %v21_v2  ;;  %v39_v17 = vrot.slane %v30_v13, %v38_v11 }
  0x1b   :  { %v33_v18 = vsub.f32 %v31_v14, %v32_v16  ;;  %v41_v19 = vmul.f32 %v39_v17, %v34_v15 }
  0x1d   :  { %v46_v20 = vrot.slane %v33_v18, %v38_v11 }
  0x1f   :  { %v48_v21 = vadd.f32 %v46_v20, %v41_v19 }
  0x21   :  { %v49_v22 = vmax.f32 %v48_v21, 0.0 }
  0x23   :  { %50 = vst [vmem:[%s110_s5] sm:$0xff] %v49_v22 }

// kernel: rsu6_forward.38
= control target key start
LH: loop header
LB: loop body
LE: loop exit
PB: predicated region body
PF: predicated region fallthrough
CT: control target
= control target key end

     0   :  { %v362_v0 = vmov 0.0   ;;  %vm363_vm0 = vmmov 0   ;;  %s474_s3 = inlined_call_operand.vmem [shape: bf16[128,128], index: 3, kind: input, shape index: {}]   ;;  %s475_s2 = inlined_call_operand.vmem [shape: bf16[128,128], index: 2, kind: input, shape index: {}]   ;;  %s476_s1 = inlined_call_operand.vmem [shape: bf16[8,128], index: 1, kind: input, shape index: {}]   ;;  %s477_s0 = inlined_call_operand.vmem [shape: bf16[8,128], index: 0, kind: input, shape index: {}]   ;;  %s478_s5 = inlined_call_operand.vmem [shape: f32[1,128], index: 5, kind: output, shape index: {1}]   ;;  %s479_s6 = inlined_call_operand.vmem [shape: f32[1,128], index: 6, kind: output, shape index: {2}]   ;;  %s480_s4 = inlined_call_operand.vmem [shape: f32[8,128], index: 4, kind: output, shape index: {0}]  }
   0x1   :  { %303 = vmatprep.subr.bf16.mxu1 %v362_v0  ;;  %323 = vmatprep.subr.bf16.mxu0 %v362_v0  ;;  %v346_v1 = vld [vmem:[%s474_s3] sm:$0xff]   ;;  %v348_v3 = vld [vmem:[%s474_s3 + $0x8] sm:$0xff]   ;;  %v350_v5 = vld [vmem:[%s474_s3 + $0x10] sm:$0xff]   ;;  %25 = vst [vmem:[%s478_s5] sm:$0x1] %v362_v0 }
   0x2   :  { %v347_v2 = vld [vmem:[%s475_s2] sm:$0xff]   ;;  %319 = vmatprep.mubr.msk.bf16.mxu1 %vm363_vm0, %v362_v0  ;;  %339 = vmatprep.mubr.msk.bf16.mxu0 %vm363_vm0, %v362_v0  ;;  %v349_v4 = vld [vmem:[%s475_s2 + $0x8] sm:$0xff]   ;;  %v351_v6 = vld [vmem:[%s475_s2 + $0x10] sm:$0xff]   ;;  %26 = vst [vmem:[%s479_s6] sm:$0x1] %v362_v0 }
   0x3   :  { %304 = vmatpush3.bf16.msra.mxu1 %v346_v1  ;;  %324 = vmatpush3.bf16.msra.mxu0 %v347_v2  ;;  %v352_v7 = vld [vmem:[%s474_s3 + $0x18] sm:$0xff]   ;;  %v354_v9 = vld [vmem:[%s474_s3 + $0x20] sm:$0xff]   ;;  %v356_v11 = vld [vmem:[%s474_s3 + $0x28] sm:$0xff]  }
   0x4   :  { %305 = vmatprep.subr.bf16.mxu1 %v362_v0  ;;  %325 = vmatprep.subr.bf16.mxu0 %v362_v0  ;;  %v353_v8 = vld [vmem:[%s475_s2 + $0x18] sm:$0xff]   ;;  %v355_v10 = vld [vmem:[%s475_s2 + $0x20] sm:$0xff]   ;;  %v357_v12 = vld [vmem:[%s475_s2 + $0x28] sm:$0xff]  }
   0x5   :  { %v358_v13 = vld [vmem:[%s474_s3 + $0x30] sm:$0xff]   ;;  %v360_v15 = vld [vmem:[%s474_s3 + $0x38] sm:$0xff]   ;;  %v44_v17 = vld [vmem:[%s476_s1] sm:$0xf] }
   0x6   :  { %v359_v14 = vld [vmem:[%s475_s2 + $0x30] sm:$0xff]   ;;  %v361_v16 = vld [vmem:[%s475_s2 + $0x38] sm:$0xff]   ;;  %v27_v18 = vld [vmem:[%s477_s0] sm:$0xf] }
   0x7   :  { %306 = vmatpush3.bf16.msra.mxu1 %v348_v3  ;;  %326 = vmatpush3.bf16.msra.mxu0 %v349_v4 }
   0x8   :  { %307 = vmatprep.subr.bf16.mxu1 %v362_v0  ;;  %327 = vmatprep.subr.bf16.mxu0 %v362_v0  ;;  %v238_v38 = vld [vmem:[%s478_s5] sm:$0x1] }
   0x9   :  { %v247_v41 = vld [vmem:[%s479_s6] sm:$0x1] }
   0xb   :  { %308 = vmatpush3.bf16.msra.mxu1 %v350_v5  ;;  %328 = vmatpush3.bf16.msra.mxu0 %v351_v6 }
   0xc   :  { %309 = vmatprep.subr.bf16.mxu1 %v362_v0  ;;  %329 = vmatprep.subr.bf16.mxu0 %v362_v0 }
   0xf   :  { %310 = vmatpush3.bf16.msra.mxu1 %v352_v7  ;;  %330 = vmatpush3.bf16.msra.mxu0 %v353_v8 }
  0x10   :  { %311 = vmatprep.subr.bf16.mxu1 %v362_v0  ;;  %331 = vmatprep.subr.bf16.mxu0 %v362_v0 }
  0x13   :  { %312 = vmatpush3.bf16.msra.mxu1 %v354_v9  ;;  %332 = vmatpush3.bf16.msra.mxu0 %v355_v10 }
  0x14   :  { %313 = vmatprep.subr.bf16.mxu1 %v362_v0  ;;  %333 = vmatprep.subr.bf16.mxu0 %v362_v0 }
  0x17   :  { %314 = vmatpush3.bf16.msra.mxu1 %v356_v11  ;;  %334 = vmatpush3.bf16.msra.mxu0 %v357_v12 }
  0x18   :  { %315 = vmatprep.subr.bf16.mxu1 %v362_v0  ;;  %335 = vmatprep.subr.bf16.mxu0 %v362_v0 }
  0x1b   :  { %316 = vmatpush3.bf16.msra.mxu1 %v358_v13  ;;  %336 = vmatpush3.bf16.msra.mxu0 %v359_v14 }
  0x1c   :  { %317 = vmatprep.subr.bf16.mxu1 %v362_v0  ;;  %337 = vmatprep.subr.bf16.mxu0 %v362_v0 }
  0x1f   :  { %318 = vmatpush3.bf16.msra.mxu1 %v360_v15  ;;  %338 = vmatpush3.bf16.msra.mxu0 %v361_v16 }
  0x22   :  { %320 = vmatmul.mubr.bf16.vlgmr.msra.gmra.mrb[0].mxu1 %v44_v17  ;;  %340 = vmatmul.mubr.bf16.vlgmr.msra.gmra.mrb[0].mxu0 %v27_v18 }
  0xf5   :  { %v143_v19 = vpop.f32.mrb[0].mxu1  ;;  %v231_v20 = vpop.f32.mrb[0].mxu0 }
  0xf6   :  { %v321_v21 = vpop.f32.mrb[1].mxu1  ;;  %v232_v22 = vadd.f32 %v231_v20, %v143_v19  ;;  %v341_v23 = vpop.f32.mrb[1].mxu0 }
  0xf7   :  { %v146_v24 = vpop.f32.mrb[2].mxu1  ;;  %v234_v25 = vpop.f32.mrb[2].mxu0 }
  0xf8   :  { %v322_v26 = vpop.f32.mrb[3].mxu1  ;;  %237 = vst [vmem:[%s480_s4] sm:$0xff] %v232_v22  ;;  %v239_v27 = vrot.slane %v232_v22, 4  ;;  %v248_v28 = vmul.f32 %v232_v22, %v232_v22  ;;  %v342_v29 = vpop.f32.mrb[3].mxu0 }
  0xfa   :  { %v240_v30 = vadd.f32 %v239_v27, %v232_v22  ;;  %v249_v31 = vrot.slane %v248_v28, 4 }
  0xfc   :  { %v241_v32 = vrot.slane %v240_v30, 2  ;;  %v250_v33 = vadd.f32 %v249_v31, %v248_v28 }
  0xfe   :  { %v242_v34 = vadd.f32 %v241_v32, %v240_v30  ;;  %v251_v35 = vrot.slane %v250_v33, 2 }
 0x100   :  { %v243_v36 = vrot.slane %v242_v34, 1  ;;  %v252_v37 = vadd.f32 %v251_v35, %v250_v33 }
 0x102   :  { %v244_v39 = vadd.f32 %v243_v36, %v242_v34  ;;  %v253_v40 = vrot.slane %v252_v37, 1 }
 0x104   :  { %v245_v42 = vadd.f32 %v244_v39, %v238_v38  ;;  %v254_v43 = vadd.f32 %v253_v40, %v252_v37 }
 0x106   :  { %246 = vst [vmem:[%s478_s5] sm:$0x1] %v245_v42  ;;  %v255_v44 = vadd.f32 %v254_v43, %v247_v41 }
 0x108   :  { %256 = vst [vmem:[%s479_s6] sm:$0x1] %v255_v44 }

// kernel: rsu6_forward.44
= control target key start
LH: loop header
LB: loop body
LE: loop exit
PB: predicated region body
PF: predicated region fallthrough
CT: control target
= control target key end

     0   :  { %v434_v20 = vmov 0.0   ;;  %s560_s3 = inlined_call_operand.vmem [shape: bf16[128,128], index: 3, kind: input, shape index: {}]   ;;  %s561_s2 = inlined_call_operand.vmem [shape: bf16[128,128], index: 2, kind: input, shape index: {}]   ;;  %s562_s1 = inlined_call_operand.vmem [shape: bf16[32,128], index: 1, kind: input, shape index: {}]   ;;  %s563_s0 = inlined_call_operand.vmem [shape: bf16[32,128], index: 0, kind: input, shape index: {}]   ;;  %s564_s5 = inlined_call_operand.vmem [shape: f32[1,128], index: 5, kind: output, shape index: {1}]   ;;  %s565_s6 = inlined_call_operand.vmem [shape: f32[1,128], index: 6, kind: output, shape index: {2}]   ;;  %s566_s4 = inlined_call_operand.vmem [shape: f32[32,128], index: 4, kind: output, shape index: {0}]  }
   0x1   :  { %v414_v0 = vld [vmem:[%s560_s3] sm:$0xff]   ;;  %v416_v2 = vld [vmem:[%s560_s3 + $0x8] sm:$0xff]   ;;  %v418_v4 = vld [vmem:[%s560_s3 + $0x10] sm:$0xff]   ;;  %25 = vst [vmem:[%s564_s5] sm:$0x1] %v434_v20 }
   0x2   :  { %v415_v1 = vld [vmem:[%s561_s2] sm:$0xff]   ;;  %369 = vmatprep.subr.bf16.mxu1 %v414_v0  ;;  %v417_v3 = vld [vmem:[%s561_s2 + $0x8] sm:$0xff]   ;;  %v419_v5 = vld [vmem:[%s561_s2 + $0x10] sm:$0xff]   ;;  %26 = vst [vmem:[%s565_s6] sm:$0x1] %v434_v20 }
   0x3   :  { %389 = vmatprep.subr.bf16.mxu0 %v415_v1  ;;  %370 = vmatpush3.bf16.msra.mxu1 %v414_v0  ;;  %v420_v6 = vld [vmem:[%s560_s3 + $0x18] sm:$0xff]   ;;  %v422_v8 = vld [vmem:[%s560_s3 + $0x20] sm:$0xff]   ;;  %v424_v10 = vld [vmem:[%s560_s3 + $0x28] sm:$0xff]  }
   0x4   :  { %390 = vmatpush3.bf16.msra.mxu0 %v415_v1  ;;  %371 = vmatprep.subr.bf16.mxu1 %v416_v2  ;;  %v421_v7 = vld [vmem:[%s561_s2 + $0x18] sm:$0xff]   ;;  %v423_v9 = vld [vmem:[%s561_s2 + $0x20] sm:$0xff]   ;;  %v425_v11 = vld [vmem:[%s561_s2 + $0x28] sm:$0xff]  }
   0x5   :  { %391 = vmatprep.subr.bf16.mxu0 %v417_v3  ;;  %v430_v12 = vld [vmem:[%s562_s1] sm:$0xff]   ;;  %v426_v14 = vld [vmem:[%s560_s3 + $0x30] sm:$0xff]   ;;  %v428_v16 = vld [vmem:[%s560_s3 + $0x38] sm:$0xff]  }
   0x6   :  { %v431_v13 = vld [vmem:[%s563_s0] sm:$0xff]   ;;  %385 = vmatprep.mubr.bf16.mxu1 %v430_v12  ;;  %v427_v15 = vld [vmem:[%s561_s2 + $0x30] sm:$0xff]   ;;  %v429_v17 = vld [vmem:[%s561_s2 + $0x38] sm:$0xff]  }
   0x7   :  { %372 = vmatpush3.bf16.msra.mxu1 %v416_v2  ;;  %405 = vmatprep.mubr.bf16.mxu0 %v431_v13  ;;  %v432_v18 = vld [vmem:[%s562_s1 + $0x8] sm:$0xff]  }
   0x8   :  { %392 = vmatpush3.bf16.msra.mxu0 %v417_v3  ;;  %373 = vmatprep.subr.bf16.mxu1 %v418_v4  ;;  %v433_v19 = vld [vmem:[%s563_s0 + $0x8] sm:$0xff]   ;;  %v289_v52 = vld [vmem:[%s564_s5] sm:$0x1] }
   0x9   :  { %393 = vmatprep.subr.bf16.mxu0 %v419_v5  ;;  %v301_v55 = vld [vmem:[%s565_s6] sm:$0x1] }
   0xb   :  { %374 = vmatpush3.bf16.msra.mxu1 %v418_v4 }
   0xc   :  { %394 = vmatpush3.bf16.msra.mxu0 %v419_v5  ;;  %375 = vmatprep.subr.bf16.mxu1 %v420_v6 }
   0xd   :  { %395 = vmatprep.subr.bf16.mxu0 %v421_v7 }
   0xf   :  { %376 = vmatpush3.bf16.msra.mxu1 %v420_v6 }
  0x10   :  { %396 = vmatpush3.bf16.msra.mxu0 %v421_v7  ;;  %377 = vmatprep.subr.bf16.mxu1 %v422_v8 }
  0x11   :  { %397 = vmatprep.subr.bf16.mxu0 %v423_v9 }
  0x13   :  { %378 = vmatpush3.bf16.msra.mxu1 %v422_v8 }
  0x14   :  { %398 = vmatpush3.bf16.msra.mxu0 %v423_v9  ;;  %379 = vmatprep.subr.bf16.mxu1 %v424_v10 }
  0x15   :  { %399 = vmatprep.subr.bf16.mxu0 %v425_v11 }
  0x17   :  { %380 = vmatpush3.bf16.msra.mxu1 %v424_v10 }
  0x18   :  { %400 = vmatpush3.bf16.msra.mxu0 %v425_v11  ;;  %381 = vmatprep.subr.bf16.mxu1 %v426_v14 }
  0x19   :  { %401 = vmatprep.subr.bf16.mxu0 %v427_v15 }
  0x1b   :  { %382 = vmatpush3.bf16.msra.mxu1 %v426_v14 }
  0x1c   :  { %402 = vmatpush3.bf16.msra.mxu0 %v427_v15  ;;  %383 = vmatprep.subr.bf16.mxu1 %v428_v16 }
  0x1d   :  { %403 = vmatprep.subr.bf16.mxu0 %v429_v17 }
  0x1f   :  { %384 = vmatpush3.bf16.msra.mxu1 %v428_v16 }
  0x20   :  { %404 = vmatpush3.bf16.msra.mxu0 %v429_v17 }
  0x22   :  { %386 = vmatmul.mubr.bf16.vlgmr.msra.gmra.mrb[0].mxu1 %v432_v18 }
  0x23   :  { %406 = vmatmul.mubr.bf16.vlgmr.msra.gmra.mrb[0].mxu0 %v433_v19 }
  0xf5   :  { %v387_v21 = vpop.f32.mrb[0].mxu1 }
  0xf6   :  { %v407_v22 = vpop.f32.mrb[0].mxu0  ;;  %v161_v23 = vpop.f32.mrb[1].mxu1 }
  0xf7   :  { %v279_v24 = vadd.f32 %v407_v22, %v387_v21  ;;  %v270_v25 = vpop.f32.mrb[1].mxu0  ;;  %v388_v26 = vpop.f32.mrb[2].mxu1 }
  0xf8   :  { %v271_v27 = vadd.f32 %v270_v25, %v161_v23  ;;  %v408_v28 = vpop.f32.mrb[2].mxu0  ;;  %v164_v29 = vpop.f32.mrb[3].mxu1 }
  0xf9   :  { %287 = vst [vmem:[%s566_s4 + $0x10] sm:$0xff] %v279_v24  ;;  %v282_v30 = vadd.f32 %v408_v28, %v388_v26  ;;  %v273_v31 = vpop.f32.mrb[3].mxu0  ;;  %v304_v36 = vmul.f32 %v279_v24, %v279_v24 }
  0xfa   :  { %285 = vst [vmem:[%s566_s4] sm:$0xff] %v271_v27  ;;  %v274_v32 = vadd.f32 %v273_v31, %v164_v29  ;;  %v302_v33 = vmul.f32 %v271_v27, %v271_v27 }
  0xfb   :  { %288 = vst [vmem:[%s566_s4 + $0x18] sm:$0xff] %v282_v30  ;;  %v305_v39 = vmul.f32 %v282_v30, %v282_v30 }
  0xfc   :  { %286 = vst [vmem:[%s566_s4 + $0x8] sm:$0xff] %v274_v32  ;;  %v290_v34 = vadd.f32 %v274_v32, %v271_v27  ;;  %v303_v35 = vmul.f32 %v274_v32, %v274_v32 }
  0xfe   :  { %v291_v37 = vadd.f32 %v290_v34, %v279_v24  ;;  %v306_v38 = vadd.f32 %v303_v35, %v302_v33 }
 0x100   :  { %v292_v40 = vadd.f32 %v291_v37, %v282_v30  ;;  %v307_v41 = vadd.f32 %v306_v38, %v304_v36 }
 0x102   :  { %v293_v42 = vrot.slane %v292_v40, 4  ;;  %v308_v43 = vadd.f32 %v307_v41, %v305_v39 }
 0x104   :  { %v294_v44 = vadd.f32 %v293_v42, %v292_v40  ;;  %v309_v45 = vrot.slane %v308_v43, 4 }
 0x106   :  { %v295_v46 = vrot.slane %v294_v44, 2  ;;  %v310_v47 = vadd.f32 %v309_v45, %v308_v43 }
 0x108   :  { %v296_v48 = vadd.f32 %v295_v46, %v294_v44  ;;  %v311_v49 = vrot.slane %v310_v47, 2 }
 0x10a   :  { %v297_v50 = vrot.slane %v296_v48, 1  ;;  %v312_v51 = vadd.f32 %v311_v49, %v310_v47 }
 0x10c   :  { %v298_v53 = vadd.f32 %v297_v50, %v296_v48  ;;  %v313_v54 = vrot.slane %v312_v51, 1 }
 0x10e   :  { %v299_v56 = vadd.f32 %v298_v53, %v289_v52  ;;  %v314_v57 = vadd.f32 %v313_v54, %v312_v51 }
 0x110   :  { %300 = vst [vmem:[%s564_s5] sm:$0x1] %v299_v56  ;;  %v315_v58 = vadd.f32 %v314_v57, %v301_v55 }
 0x112   :  { %316 = vst [vmem:[%s565_s6] sm:$0x1] %v315_v58 }

// kernel: rsu6_forward.46
= control target key start
LH: loop header
LB: loop body
LE: loop exit
PB: predicated region body
PF: predicated region fallthrough
CT: control target
= control target key end

     0   :  { %s2480_s3 = inlined_call_operand.vmem [shape: bf16[128,128], index: 3, kind: input, shape index: {}]   ;;  %s2481_s2 = inlined_call_operand.vmem [shape: bf16[128,128], index: 2, kind: input, shape index: {}]   ;;  %s2482_s1 = inlined_call_operand.vmem [shape: bf16[512,128], index: 1, kind: input, shape index: {}]   ;;  %s2483_s0 = inlined_call_operand.vmem [shape: bf16[512,128], index: 0, kind: input, shape index: {}]   ;;  %s2484_s5 = inlined_call_operand.vmem [shape: f32[1,128], index: 5, kind: output, shape index: {1}]   ;;  %s2485_s6 = inlined_call_operand.vmem [shape: f32[1,128], index: 6, kind: output, shape index: {2}]   ;;  %s2486_s4 = inlined_call_operand.vmem [shape: f32[512,128], index: 4, kind: output, shape index: {0}]  }
   0x1   :  { %v1914_v0 = vld [vmem:[%s2480_s3] sm:$0xff]   ;;  %v1916_v2 = vld [vmem:[%s2480_s3 + $0x8] sm:$0xff]   ;;  %v1918_v4 = vld [vmem:[%s2480_s3 + $0x10] sm:$0xff]  }
   0x2   :  { %v1915_v1 = vld [vmem:[%s2481_s2] sm:$0xff]   ;;  %1689 = vmatprep.subr.bf16.mxu1 %v1914_v0  ;;  %v1917_v3 = vld [vmem:[%s2481_s2 + $0x8] sm:$0xff]   ;;  %v1919_v5 = vld [vmem:[%s2481_s2 + $0x10] sm:$0xff]  }
   0x3   :  { %1769 = vmatprep.subr.bf16.mxu0 %v1915_v1  ;;  %1690 = vmatpush3.bf16.msra.mxu1 %v1914_v0  ;;  %v1920_v6 = vld [vmem:[%s2480_s3 + $0x18] sm:$0xff]   ;;  %v1922_v8 = vld [vmem:[%s2480_s3 + $0x20] sm:$0xff]   ;;  %v1924_v10 = vld [vmem:[%s2480_s3 + $0x28] sm:$0xff]  }
   0x4   :  { %1770 = vmatpush3.bf16.msra.mxu0 %v1915_v1  ;;  %1691 = vmatprep.subr.bf16.mxu1 %v1916_v2  ;;  %v1921_v7 = vld [vmem:[%s2481_s2 + $0x18] sm:$0xff]   ;;  %v1923_v9 = vld [vmem:[%s2481_s2 + $0x20] sm:$0xff]   ;;  %v1925_v11 = vld [vmem:[%s2481_s2 + $0x28] sm:$0xff]  }
   0x5   :  { %1771 = vmatprep.subr.bf16.mxu0 %v1917_v3  ;;  %v1930_v12 = vld [vmem:[%s2482_s1] sm:$0xff]   ;;  %v1926_v14 = vld [vmem:[%s2480_s3 + $0x30] sm:$0xff]   ;;  %v1928_v16 = vld [vmem:[%s2480_s3 + $0x38] sm:$0xff]  }
   0x6   :  { %v1931_v13 = vld [vmem:[%s2483_s0] sm:$0xff]   ;;  %1705 = vmatprep.mubr.bf16.mxu1 %v1930_v12  ;;  %v1927_v15 = vld [vmem:[%s2481_s2 + $0x30] sm:$0xff]   ;;  %v1929_v17 = vld [vmem:[%s2481_s2 + $0x38] sm:$0xff]  }
   0x7   :  { %1692 = vmatpush3.bf16.msra.mxu1 %v1916_v2  ;;  %1785 = vmatprep.mubr.bf16.mxu0 %v1931_v13  ;;  %v1932_v18 = vld [vmem:[%s2482_s1 + $0x8] sm:$0xff]   ;;  %v1934_v20 = vld [vmem:[%s2482_s1 + $0x10] sm:$0xff]   ;;  %v1936_v22 = vld [vmem:[%s2482_s1 + $0x18] sm:$0xff]  }
   0x8   :  { %1772 = vmatpush3.bf16.msra.mxu0 %v1917_v3  ;;  %1693 = vmatprep.subr.bf16.mxu1 %v1918_v4  ;;  %v1933_v19 = vld [vmem:[%s2483_s0 + $0x8] sm:$0xff]   ;;  %v1935_v21 = vld [vmem:[%s2483_s0 + $0x10] sm:$0xff]   ;;  %v1937_v23 = vld [vmem:[%s2483_s0 + $0x18] sm:$0xff]  }
   0x9   :  { %1773 = vmatprep.subr.bf16.mxu0 %v1919_v5  ;;  %v1938_v24 = vld [vmem:[%s2482_s1 + $0x20] sm:$0xff]   ;;  %v1940_v26 = vld [vmem:[%s2482_s1 + $0x28] sm:$0xff]   ;;  %v1942_v28 = vld [vmem:[%s2482_s1 + $0x30] sm:$0xff]  }
   0xa   :  { %v1939_v25 = vld [vmem:[%s2483_s0 + $0x20] sm:$0xff]   ;;  %v1941_v27 = vld [vmem:[%s2483_s0 + $0x28] sm:$0xff]   ;;  %v1943_v29 = vld [vmem:[%s2483_s0 + $0x30] sm:$0xff]  }
   0xb   :  { %1694 = vmatpush3.bf16.msra.mxu1 %v1918_v4  ;;  %v1944_v30 = vld [vmem:[%s2482_s1 + $0x38] sm:$0xff]   ;;  %v1946_v32 = vld [vmem:[%s2482_s1 + $0x40] sm:$0xff]   ;;  %v1948_v34 = vld [vmem:[%s2482_s1 + $0x48] sm:$0xff]  }
   0xc   :  { %1774 = vmatpush3.bf16.msra.mxu0 %v1919_v5  ;;  %1695 = vmatprep.subr.bf16.mxu1 %v1920_v6  ;;  %v1945_v31 = vld [vmem:[%s2483_s0 + $0x38] sm:$0xff]   ;;  %v1947_v33 = vld [vmem:[%s2483_s0 + $0x40] sm:$0xff]   ;;  %v1949_v35 = vld [vmem:[%s2483_s0 + $0x48] sm:$0xff]  }
   0xd   :  { %1775 = vmatprep.subr.bf16.mxu0 %v1921_v7  ;;  %v1950_v36 = vld [vmem:[%s2482_s1 + $0x50] sm:$0xff]   ;;  %v1952_v38 = vld [vmem:[%s2482_s1 + $0x58] sm:$0xff]   ;;  %v1954_v40 = vld [vmem:[%s2482_s1 + $0x60] sm:$0xff]  }
   0xe   :  { %v1951_v37 = vld [vmem:[%s2483_s0 + $0x50] sm:$0xff]   ;;  %v1953_v39 = vld [vmem:[%s2483_s0 + $0x58] sm:$0xff]   ;;  %v1955_v41 = vld [vmem:[%s2483_s0 + $0x60] sm:$0xff]  }
   0xf   :  { %1696 = vmatpush3.bf16.msra.mxu1 %v1920_v6  ;;  %v1956_v42 = vld [vmem:[%s2482_s1 + $0x68] sm:$0xff]   ;;  %v1958_v44 = vld [vmem:[%s2482_s1 + $0x70] sm:$0xff]   ;;  %v1960_v46 = vld [vmem:[%s2482_s1 + $0x78] sm:$0xff]  }
  0x10   :  { %1776 = vmatpush3.bf16.msra.mxu0 %v1921_v7  ;;  %1697 = vmatprep.subr.bf16.mxu1 %v1922_v8  ;;  %v1957_v43 = vld [vmem:[%s2483_s0 + $0x68] sm:$0xff]   ;;  %v1959_v45 = vld [vmem:[%s2483_s0 + $0x70] sm:$0xff]   ;;  %v1961_v47 = vld [vmem:[%s2483_s0 + $0x78] sm:$0xff]  }
  0x11   :  { %1777 = vmatprep.subr.bf16.mxu0 %v1923_v9  ;;  %v1962_v48 = vld [vmem:[%s2482_s1 + $0x80] sm:$0xff]   ;;  %v1964_v50 = vld [vmem:[%s2482_s1 + $0x88] sm:$0xff]   ;;  %v1966_v52 = vld [vmem:[%s2482_s1 + $0x90] sm:$0xff]  }
  0x12   :  { %v1963_v49 = vld [vmem:[%s2483_s0 + $0x80] sm:$0xff]   ;;  %v1965_v51 = vld [vmem:[%s2483_s0 + $0x88] sm:$0xff]   ;;  %v1967_v53 = vld [vmem:[%s2483_s0 + $0x90] sm:$0xff]  }
  0x13   :  { %1698 = vmatpush3.bf16.msra.mxu1 %v1922_v8  ;;  %v1968_v54 = vld [vmem:[%s2482_s1 + $0x98] sm:$0xff]   ;;  %v1970_v56 = vld [vmem:[%s2482_s1 + $0xa0] sm:$0xff]   ;;  %v1972_v58 = vld [vmem:[%s2482_s1 + $0xa8] sm:$0xff]  }
  0x14   :  { %1778 = vmatpush3.bf16.msra.mxu0 %v1923_v9  ;;  %1699 = vmatprep.subr.bf16.mxu1 %v1924_v10  ;;  %v1969_v55 = vld [vmem:[%s2483_s0 + $0x98] sm:$0xff]   ;;  %v1971_v57 = vld [vmem:[%s2483_s0 + $0xa0] sm:$0xff]   ;;  %v1973_v59 = vld [vmem:[%s2483_s0 + $0xa8] sm:$0xff]  }
  0x15   :  { %1779 = vmatprep.subr.bf16.mxu0 %v1925_v11  ;;  %v1974_v60 = vld [vmem:[%s2482_s1 + $0xb0] sm:$0xff]   ;;  %v1976_v62 = vld [vmem:[%s2482_s1 + $0xb8] sm:$0xff]   ;;  %v1978_v0 = vld [vmem:[%s2482_s1 + $0xc0] sm:$0xff]  }
  0x16   :  { %v1975_v61 = vld [vmem:[%s2483_s0 + $0xb0] sm:$0xff]   ;;  %v1977_v63 = vld [vmem:[%s2483_s0 + $0xb8] sm:$0xff]   ;;  %v1979_v1 = vld [vmem:[%s2483_s0 + $0xc0] sm:$0xff]  }
  0x17   :  { %1700 = vmatpush3.bf16.msra.mxu1 %v1924_v10  ;;  %v1980_v2 = vld [vmem:[%s2482_s1 + $0xc8] sm:$0xff]   ;;  %v1982_v4 = vld [vmem:[%s2482_s1 + $0xd0] sm:$0xff]   ;;  %v1984_v6 = vld [vmem:[%s2482_s1 + $0xd8] sm:$0xff]  }
  0x18   :  { %1780 = vmatpush3.bf16.msra.mxu0 %v1925_v11  ;;  %1701 = vmatprep.subr.bf16.mxu1 %v1926_v14  ;;  %v1981_v3 = vld [vmem:[%s2483_s0 + $0xc8] sm:$0xff]   ;;  %v1983_v5 = vld [vmem:[%s2483_s0 + $0xd0] sm:$0xff]   ;;  %v1985_v7 = vld [vmem:[%s2483_s0 + $0xd8] sm:$0xff]  }
  0x19   :  { %1781 = vmatprep.subr.bf16.mxu0 %v1927_v15  ;;  %v1986_v8 = vld [vmem:[%s2482_s1 + $0xe0] sm:$0xff]   ;;  %v1988_v10 = vld [vmem:[%s2482_s1 + $0xe8] sm:$0xff]   ;;  %v1990_v12 = vld [vmem:[%s2482_s1 + $0xf0] sm:$0xff]  }
  0x1a   :  { %v1987_v9 = vld [vmem:[%s2483_s0 + $0xe0] sm:$0xff]   ;;  %v1989_v11 = vld [vmem:[%s2483_s0 + $0xe8] sm:$0xff]   ;;  %v1991_v13 = vld [vmem:[%s2483_s0 + $0xf0] sm:$0xff]  }
  0x1b   :  { %1702 = vmatpush3.bf16.msra.mxu1 %v1926_v14  ;;  %v1992_v14 = vld [vmem:[%s2482_s1 + $0xf8] sm:$0xff]  }
  0x1c   :  { %1782 = vmatpush3.bf16.msra.mxu0 %v1927_v15  ;;  %1703 = vmatprep.subr.bf16.mxu1 %v1928_v16  ;;  %v1993_v15 = vld [vmem:[%s2483_s0 + $0xf8] sm:$0xff]  }
  0x1d   :  { %1783 = vmatprep.subr.bf16.mxu0 %v1929_v17 }
  0x1f   :  { %1704 = vmatpush3.bf16.msra.mxu1 %v1928_v16 }
  0x20   :  { %1784 = vmatpush3.bf16.msra.mxu0 %v1929_v17  ;;  %v1994_v17 = vmov 0.0  }
  0x21   :  { %25 = vst [vmem:[%s2484_s5] sm:$0x1] %v1994_v17  ;;  %26 = vst [vmem:[%s2485_s6] sm:$0x1] %v1994_v17 }
  0x22   :  { %1706 = vmatmul.mubr.bf16.vlgmr.msra.gmra.mrb[0].mxu1 %v1932_v18 }
  0x23   :  { %1786 = vmatmul.mubr.bf16.vlgmr.msra.gmra.mrb[0].mxu0 %v1933_v19  ;;  %1709 = vmatprep.mubr.bf16.mxu1 %v1934_v20 }
  0x24   :  { %1789 = vmatprep.mubr.bf16.mxu0 %v1935_v21 }
  0x2a   :  { %1710 = vmatmul.mubr.bf16.gmra.mrb[4].mxu1 %v1936_v22 }
  0x2b   :  { %1790 = vmatmul.mubr.bf16.gmra.mrb[4].mxu0 %v1937_v23  ;;  %1713 = vmatprep.mubr.bf16.mxu1 %v1938_v24 }
  0x2c   :  { %1793 = vmatprep.mubr.bf16.mxu0 %v1939_v25 }
  0x32   :  { %1714 = vmatmul.mubr.bf16.gmra.mrb[8].mxu1 %v1940_v26 }
  0x33   :  { %1794 = vmatmul.mubr.bf16.gmra.mrb[8].mxu0 %v1941_v27  ;;  %1717 = vmatprep.mubr.bf16.mxu1 %v1942_v28 }
  0x34   :  { %1797 = vmatprep.mubr.bf16.mxu0 %v1943_v29 }
  0x3a   :  { %1718 = vmatmul.mubr.bf16.gmra.mrb[12].mxu1 %v1944_v30 }
  0x3b   :  { %1798 = vmatmul.mubr.bf16.gmra.mrb[12].mxu0 %v1945_v31  ;;  %1721 = vmatprep.mubr.bf16.mxu1 %v1946_v32 }
  0x3c   :  { %1801 = vmatprep.mubr.bf16.mxu0 %v1947_v33 }
  0x42   :  { %1722 = vmatmul.mubr.bf16.gmra.mrb[16].mxu1 %v1948_v34 }
  0x43   :  { %1802 = vmatmul.mubr.bf16.gmra.mrb[16].mxu0 %v1949_v35  ;;  %1725 = vmatprep.mubr.bf16.mxu1 %v1950_v36 }
  0x44   :  { %1805 = vmatprep.mubr.bf16.mxu0 %v1951_v37 }
  0x4a   :  { %1726 = vmatmul.mubr.bf16.gmra.mrb[20].mxu1 %v1952_v38 }
  0x4b   :  { %1806 = vmatmul.mubr.bf16.gmra.mrb[20].mxu0 %v1953_v39  ;;  %1729 = vmatprep.mubr.bf16.mxu1 %v1954_v40 }
  0x4c   :  { %1809 = vmatprep.mubr.bf16.mxu0 %v1955_v41 }
  0x52   :  { %1730 = vmatmul.mubr.bf16.gmra.mrb[24].mxu1 %v1956_v42 }
  0x53   :  { %1810 = vmatmul.mubr.bf16.gmra.mrb[24].mxu0 %v1957_v43  ;;  %1733 = vmatprep.mubr.bf16.mxu1 %v1958_v44 }
  0x54   :  { %1813 = vmatprep.mubr.bf16.mxu0 %v1959_v45 }
  0x5a   :  { %1734 = vmatmul.mubr.bf16.gmra.mrb[28].mxu1 %v1960_v46 }
  0x5b   :  { %1814 = vmatmul.mubr.bf16.gmra.mrb[28].mxu0 %v1961_v47  ;;  %1737 = vmatprep.mubr.bf16.mxu1 %v1962_v48 }
  0x5c   :  { %1817 = vmatprep.mubr.bf16.mxu0 %v1963_v49 }
  0x62   :  { %1738 = vmatmul.mubr.bf16.gmra.mrb[32].mxu1 %v1964_v50 }
  0x63   :  { %1818 = vmatmul.mubr.bf16.gmra.mrb[32].mxu0 %v1965_v51  ;;  %1741 = vmatprep.mubr.bf16.mxu1 %v1966_v52 }
  0x64   :  { %1821 = vmatprep.mubr.bf16.mxu0 %v1967_v53 }
  0x6a   :  { %1742 = vmatmul.mubr.bf16.gmra.mrb[36].mxu1 %v1968_v54 }
  0x6b   :  { %1822 = vmatmul.mubr.bf16.gmra.mrb[36].mxu0 %v1969_v55  ;;  %1745 = vmatprep.mubr.bf16.mxu1 %v1970_v56 }
  0x6c   :  { %1825 = vmatprep.mubr.bf16.mxu0 %v1971_v57 }
  0x72   :  { %1746 = vmatmul.mubr.bf16.gmra.mrb[40].mxu1 %v1972_v58 }
  0x73   :  { %1826 = vmatmul.mubr.bf16.gmra.mrb[40].mxu0 %v1973_v59  ;;  %1749 = vmatprep.mubr.bf16.mxu1 %v1974_v60 }
  0x74   :  { %1829 = vmatprep.mubr.bf16.mxu0 %v1975_v61 }
  0x7a   :  { %1750 = vmatmul.mubr.bf16.gmra.mrb[44].mxu1 %v1976_v62 }
  0x7b   :  { %1830 = vmatmul.mubr.bf16.gmra.mrb[44].mxu0 %v1977_v63  ;;  %1753 = vmatprep.mubr.bf16.mxu1 %v1978_v0 }
  0x7c   :  { %1833 = vmatprep.mubr.bf16.mxu0 %v1979_v1 }
  0x82   :  { %1754 = vmatmul.mubr.bf16.gmra.mrb[48].mxu1 %v1980_v2 }
  0x83   :  { %1834 = vmatmul.mubr.bf16.gmra.mrb[48].mxu0 %v1981_v3  ;;  %1757 = vmatprep.mubr.bf16.mxu1 %v1982_v4 }
  0x84   :  { %1837 = vmatprep.mubr.bf16.mxu0 %v1983_v5 }
  0x8a   :  { %1758 = vmatmul.mubr.bf16.gmra.mrb[52].mxu1 %v1984_v6 }
  0x8b   :  { %1838 = vmatmul.mubr.bf16.gmra.mrb[52].mxu0 %v1985_v7  ;;  %1761 = vmatprep.mubr.bf16.mxu1 %v1986_v8 }
  0x8c   :  { %1841 = vmatprep.mubr.bf16.mxu0 %v1987_v9 }
  0x92   :  { %1762 = vmatmul.mubr.bf16.gmra.mrb[56].mxu1 %v1988_v10 }
  0x93   :  { %1842 = vmatmul.mubr.bf16.gmra.mrb[56].mxu0 %v1989_v11  ;;  %1765 = vmatprep.mubr.bf16.mxu1 %v1990_v12 }
  0x94   :  { %1845 = vmatprep.mubr.bf16.mxu0 %v1991_v13 }
  0x9a   :  { %1766 = vmatmul.mubr.bf16.gmra.mrb[60].mxu1 %v1992_v14 }
  0x9b   :  { %1846 = vmatmul.mubr.bf16.gmra.mrb[60].mxu0 %v1993_v15 }
  0xf5   :  { %v1707_v16 = vpop.f32.mrb[0].mxu1 }
  0xf6   :  { %v1787_v18 = vpop.f32.mrb[0].mxu0  ;;  %v461_v19 = vpop.f32.mrb[1].mxu1 }
  0xf7   :  { %v999_v20 = vadd.f32 %v1787_v18, %v1707_v16  ;;  %v990_v21 = vpop.f32.mrb[1].mxu0  ;;  %v1708_v22 = vpop.f32.mrb[2].mxu1 }
  0xf8   :  { %v991_v23 = vadd.f32 %v990_v21, %v461_v19  ;;  %v1788_v24 = vpop.f32.mrb[2].mxu0  ;;  %v464_v25 = vpop.f32.mrb[3].mxu1 }
  0xf9   :  { %1247 = vst [vmem:[%s2486_s4 + $0x10] sm:$0xff] %v999_v20  ;;  %v1002_v26 = vadd.f32 %v1788_v24, %v1708_v22  ;;  %v993_v27 = vpop.f32.mrb[3].mxu0  ;;  %v1384_v33 = vmul.f32 %v999_v20, %v999_v20 }
  0xfa   :  { %1245 = vst [vmem:[%s2486_s4] sm:$0xff] %v991_v23  ;;  %v994_v28 = vadd.f32 %v993_v27, %v464_v25  ;;  %v1382_v29 = vmul.f32 %v991_v23, %v991_v23 }
  0xfb   :  { %1248 = vst [vmem:[%s2486_s4 + $0x18] sm:$0xff] %v1002_v26  ;;  %v1385_v41 = vmul.f32 %v1002_v26, %v1002_v26 }
  0xfc   :  { %1246 = vst [vmem:[%s2486_s4 + $0x8] sm:$0xff] %v994_v28  ;;  %v1310_v30 = vadd.f32 %v994_v28, %v991_v23  ;;  %v1383_v31 = vmul.f32 %v994_v28, %v994_v28 }
  0xfd   :  { %v1711_v32 = vpop.f32.mrb[4].mxu1 }
  0xfe   :  { %v1311_v34 = vadd.f32 %v1310_v30, %v999_v20  ;;  %v1446_v35 = vadd.f32 %v1383_v31, %v1382_v29  ;;  %v1791_v36 = vpop.f32.mrb[4].mxu0  ;;  %v477_v37 = vpop.f32.mrb[5].mxu1 }
  0xff   :  { %v1015_v38 = vadd.f32 %v1791_v36, %v1711_v32  ;;  %v1006_v39 = vpop.f32.mrb[5].mxu0  ;;  %v1712_v40 = vpop.f32.mrb[6].mxu1 }
 0x100   :  { %v1447_v42 = vadd.f32 %v1446_v35, %v1384_v33  ;;  %v1007_v43 = vadd.f32 %v1006_v39, %v477_v37  ;;  %v1312_v44 = vadd.f32 %v1311_v34, %v1002_v26  ;;  %v1792_v45 = vpop.f32.mrb[6].mxu0  ;;  %v480_v46 = vpop.f32.mrb[7].mxu1 }
 0x101   :  { %1251 = vst [vmem:[%s2486_s4 + $0x30] sm:$0xff] %v1015_v38  ;;  %v1018_v47 = vadd.f32 %v1792_v45, %v1712_v40  ;;  %v1009_v48 = vpop.f32.mrb[7].mxu0  ;;  %v1388_v57 = vmul.f32 %v1015_v38, %v1015_v38 }
 0x102   :  { %1249 = vst [vmem:[%s2486_s4 + $0x20] sm:$0xff] %v1007_v43  ;;  %v1313_v49 = vadd.f32 %v1312_v44, %v1007_v43  ;;  %v1386_v50 = vmul.f32 %v1007_v43, %v1007_v43  ;;  %v1448_v51 = vadd.f32 %v1447_v42, %v1385_v41  ;;  %v1010_v52 = vadd.f32 %v1009_v48, %v480_v46 }
 0x103   :  { %1252 = vst [vmem:[%s2486_s4 + $0x38] sm:$0xff] %v1018_v47  ;;  %v1389_v1 = vmul.f32 %v1018_v47, %v1018_v47 }
 0x104   :  { %v1449_v53 = vadd.f32 %v1448_v51, %v1386_v50  ;;  %1250 = vst [vmem:[%s2486_s4 + $0x28] sm:$0xff] %v1010_v52  ;;  %v1314_v54 = vadd.f32 %v1313_v49, %v1010_v52  ;;  %v1387_v55 = vmul.f32 %v1010_v52, %v1010_v52 }
 0x105   :  { %v1715_v56 = vpop.f32.mrb[8].mxu1 }
 0x106   :  { %v1315_v58 = vadd.f32 %v1314_v54, %v1015_v38  ;;  %v1450_v59 = vadd.f32 %v1449_v53, %v1387_v55  ;;  %v1795_v60 = vpop.f32.mrb[8].mxu0  ;;  %v493_v61 = vpop.f32.mrb[9].mxu1 }
 0x107   :  { %v1031_v62 = vadd.f32 %v1795_v60, %v1715_v56  ;;  %v1022_v63 = vpop.f32.mrb[9].mxu0  ;;  %v1716_v0 = vpop.f32.mrb[10].mxu1 }
 0x108   :  { %v1451_v2 = vadd.f32 %v1450_v59, %v1388_v57  ;;  %v1023_v3 = vadd.f32 %v1022_v63, %v493_v61  ;;  %v1316_v4 = vadd.f32 %v1315_v58, %v1018_v47  ;;  %v1796_v5 = vpop.f32.mrb[10].mxu0  ;;  %v496_v6 = vpop.f32.mrb[11].mxu1 }
 0x109   :  { %1255 = vst [vmem:[%s2486_s4 + $0x50] sm:$0xff] %v1031_v62  ;;  %v1034_v7 = vadd.f32 %v1796_v5, %v1716_v0  ;;  %v1025_v8 = vpop.f32.mrb[11].mxu0  ;;  %v1392_v17 = vmul.f32 %v1031_v62, %v1031_v62 }
 0x10a   :  { %1253 = vst [vmem:[%s2486_s4 + $0x40] sm:$0xff] %v1023_v3  ;;  %v1317_v9 = vadd.f32 %v1316_v4, %v1023_v3  ;;  %v1390_v10 = vmul.f32 %v1023_v3, %v1023_v3  ;;  %v1452_v11 = vadd.f32 %v1451_v2, %v1389_v1  ;;  %v1026_v12 = vadd.f32 %v1025_v8, %v496_v6 }
 0x10b   :  { %1256 = vst [vmem:[%s2486_s4 + $0x58] sm:$0xff] %v1034_v7  ;;  %v1393_v25 = vmul.f32 %v1034_v7, %v1034_v7 }
 0x10c   :  { %v1453_v13 = vadd.f32 %v1452_v11, %v1390_v10  ;;  %1254 = vst [vmem:[%s2486_s4 + $0x48] sm:$0xff] %v1026_v12  ;;  %v1318_v14 = vadd.f32 %v1317_v9, %v1026_v12  ;;  %v1391_v15 = vmul.f32 %v1026_v12, %v1026_v12 }
 0x10d   :  { %v1719_v16 = vpop.f32.mrb[12].mxu1 }
 0x10e   :  { %v1319_v18 = vadd.f32 %v1318_v14, %v1031_v62  ;;  %v1454_v19 = vadd.f32 %v1453_v13, %v1391_v15  ;;  %v1799_v20 = vpop.f32.mrb[12].mxu0  ;;  %v509_v21 = vpop.f32.mrb[13].mxu1 }
 0x10f   :  { %v1047_v22 = vadd.f32 %v1799_v20, %v1719_v16  ;;  %v1038_v23 = vpop.f32.mrb[13].mxu0  ;;  %v1720_v24 = vpop.f32.mrb[14].mxu1 }
 0x110   :  { %v1455_v26 = vadd.f32 %v1454_v19, %v1392_v17  ;;  %v1039_v27 = vadd.f32 %v1038_v23, %v509_v21  ;;  %v1320_v28 = vadd.f32 %v1319_v18, %v1034_v7  ;;  %v1800_v29 = vpop.f32.mrb[14].mxu0  ;;  %v512_v30 = vpop.f32.mrb[15].mxu1 }
 0x111   :  { %1259 = vst [vmem:[%s2486_s4 + $0x70] sm:$0xff] %v1047_v22  ;;  %v1050_v31 = vadd.f32 %v1800_v29, %v1720_v24  ;;  %v1041_v32 = vpop.f32.mrb[15].mxu0  ;;  %v1396_v41 = vmul.f32 %v1047_v22, %v1047_v22 }
 0x112   :  { %1257 = vst [vmem:[%s2486_s4 + $0x60] sm:$0xff] %v1039_v27  ;;  %v1321_v33 = vadd.f32 %v1320_v28, %v1039_v27  ;;  %v1394_v34 = vmul.f32 %v1039_v27, %v1039_v27  ;;  %v1456_v35 = vadd.f32 %v1455_v26, %v1393_v25  ;;  %v1042_v36 = vadd.f32 %v1041_v32, %v512_v30 }
 0x113   :  { %1260 = vst [vmem:[%s2486_s4 + $0x78] sm:$0xff] %v1050_v31  ;;  %v1397_v49 = vmul.f32 %v1050_v31, %v1050_v31 }
 0x114   :  { %v1457_v37 = vadd.f32 %v1456_v35, %v1394_v34  ;;  %1258 = vst [vmem:[%s2486_s4 + $0x68] sm:$0xff] %v1042_v36  ;;  %v1322_v38 = vadd.f32 %v1321_v33, %v1042_v36  ;;  %v1395_v39 = vmul.f32 %v1042_v36, %v1042_v36 }
 0x115   :  { %v1723_v40 = vpop.f32.mrb[16].mxu1 }
 0x116   :  { %v1323_v42 = vadd.f32 %v1322_v38, %v1047_v22  ;;  %v1458_v43 = vadd.f32 %v1457_v37, %v1395_v39  ;;  %v1803_v44 = vpop.f32.mrb[16].mxu0  ;;  %v525_v45 = vpop.f32.mrb[17].mxu1 }
 0x117   :  { %v1063_v46 = vadd.f32 %v1803_v44, %v1723_v40  ;;  %v1054_v47 = vpop.f32.mrb[17].mxu0  ;;  %v1724_v48 = vpop.f32.mrb[18].mxu1 }
 0x118   :  { %v1459_v50 = vadd.f32 %v1458_v43, %v1396_v41  ;;  %v1055_v51 = vadd.f32 %v1054_v47, %v525_v45  ;;  %v1324_v52 = vadd.f32 %v1323_v42, %v1050_v31  ;;  %v1804_v53 = vpop.f32.mrb[18].mxu0  ;;  %v528_v54 = vpop.f32.mrb[19].mxu1 }
 0x119   :  { %1263 = vst [vmem:[%s2486_s4 + $0x90] sm:$0xff] %v1063_v46  ;;  %v1066_v55 = vadd.f32 %v1804_v53, %v1724_v48  ;;  %v1057_v56 = vpop.f32.mrb[19].mxu0  ;;  %v1400_v1 = vmul.f32 %v1063_v46, %v1063_v46 }
 0x11a   :  { %1261 = vst [vmem:[%s2486_s4 + $0x80] sm:$0xff] %v1055_v51  ;;  %v1325_v57 = vadd.f32 %v1324_v52, %v1055_v51  ;;  %v1398_v58 = vmul.f32 %v1055_v51, %v1055_v51  ;;  %v1460_v59 = vadd.f32 %v1459_v50, %v1397_v49  ;;  %v1058_v60 = vadd.f32 %v1057_v56, %v528_v54 }
 0x11b   :  { %1264 = vst [vmem:[%s2486_s4 + $0x98] sm:$0xff] %v1066_v55  ;;  %v1401_v9 = vmul.f32 %v1066_v55, %v1066_v55 }
 0x11c   :  { %v1461_v61 = vadd.f32 %v1460_v59, %v1398_v58  ;;  %1262 = vst [vmem:[%s2486_s4 + $0x88] sm:$0xff] %v1058_v60  ;;  %v1326_v62 = vadd.f32 %v1325_v57, %v1058_v60  ;;  %v1399_v63 = vmul.f32 %v1058_v60, %v1058_v60 }
 0x11d   :  { %v1727_v0 = vpop.f32.mrb[20].mxu1 }
 0x11e   :  { %v1327_v2 = vadd.f32 %v1326_v62, %v1063_v46  ;;  %v1462_v3 = vadd.f32 %v1461_v61, %v1399_v63  ;;  %v1807_v4 = vpop.f32.mrb[20].mxu0  ;;  %v541_v5 = vpop.f32.mrb[21].mxu1 }
 0x11f   :  { %v1079_v6 = vadd.f32 %v1807_v4, %v1727_v0  ;;  %v1070_v7 = vpop.f32.mrb[21].mxu0  ;;  %v1728_v8 = vpop.f32.mrb[22].mxu1 }
 0x120   :  { %v1463_v10 = vadd.f32 %v1462_v3, %v1400_v1  ;;  %v1071_v11 = vadd.f32 %v1070_v7, %v541_v5  ;;  %v1328_v12 = vadd.f32 %v1327_v2, %v1066_v55  ;;  %v1808_v13 = vpop.f32.mrb[22].mxu0  ;;  %v544_v14 = vpop.f32.mrb[23].mxu1 }
 0x121   :  { %1267 = vst [vmem:[%s2486_s4 + $0xb0] sm:$0xff] %v1079_v6  ;;  %v1082_v15 = vadd.f32 %v1808_v13, %v1728_v8  ;;  %v1073_v16 = vpop.f32.mrb[23].mxu0  ;;  %v1404_v25 = vmul.f32 %v1079_v6, %v1079_v6 }
 0x122   :  { %1265 = vst [vmem:[%s2486_s4 + $0xa0] sm:$0xff] %v1071_v11  ;;  %v1329_v17 = vadd.f32 %v1328_v12, %v1071_v11  ;;  %v1402_v18 = vmul.f32 %v1071_v11, %v1071_v11  ;;  %v1464_v19 = vadd.f32 %v1463_v10, %v1401_v9  ;;  %v1074_v20 = vadd.f32 %v1073_v16, %v544_v14 }
 0x123   :  { %1268 = vst [vmem:[%s2486_s4 + $0xb8] sm:$0xff] %v1082_v15  ;;  %v1405_v33 = vmul.f32 %v1082_v15, %v1082_v15 }
 0x124   :  { %v1465_v21 = vadd.f32 %v1464_v19, %v1402_v18  ;;  %1266 = vst [vmem:[%s2486_s4 + $0xa8] sm:$0xff] %v1074_v20  ;;  %v1330_v22 = vadd.f32 %v1329_v17, %v1074_v20  ;;  %v1403_v23 = vmul.f32 %v1074_v20, %v1074_v20 }
 0x125   :  { %v1731_v24 = vpop.f32.mrb[24].mxu1 }
 0x126   :  { %v1331_v26 = vadd.f32 %v1330_v22, %v1079_v6  ;;  %v1466_v27 = vadd.f32 %v1465_v21, %v1403_v23  ;;  %v1811_v28 = vpop.f32.mrb[24].mxu0  ;;  %v557_v29 = vpop.f32.mrb[25].mxu1 }
 0x127   :  { %v1095_v30 = vadd.f32 %v1811_v28, %v1731_v24  ;;  %v1086_v31 = vpop.f32.mrb[25].mxu0  ;;  %v1732_v32 = vpop.f32.mrb[26].mxu1 }
 0x128   :  { %v1467_v34 = vadd.f32 %v1466_v27, %v1404_v25  ;;  %v1087_v35 = vadd.f32 %v1086_v31, %v557_v29  ;;  %v1332_v36 = vadd.f32 %v1331_v26, %v1082_v15  ;;  %v1812_v37 = vpop.f32.mrb[26].mxu0  ;;  %v560_v38 = vpop.f32.mrb[27].mxu1 }
 0x129   :  { %1271 = vst [vmem:[%s2486_s4 + $0xd0] sm:$0xff] %v1095_v30  ;;  %v1098_v39 = vadd.f32 %v1812_v37, %v1732_v32  ;;  %v1089_v40 = vpop.f32.mrb[27].mxu0  ;;  %v1408_v49 = vmul.f32 %v1095_v30, %v1095_v30 }
 0x12a   :  { %1269 = vst [vmem:[%s2486_s4 + $0xc0] sm:$0xff] %v1087_v35  ;;  %v1333_v41 = vadd.f32 %v1332_v36, %v1087_v35  ;;  %v1406_v42 = vmul.f32 %v1087_v35, %v1087_v35  ;;  %v1468_v43 = vadd.f32 %v1467_v34, %v1405_v33  ;;  %v1090_v44 = vadd.f32 %v1089_v40, %v560_v38 }
 0x12b   :  { %1272 = vst [vmem:[%s2486_s4 + $0xd8] sm:$0xff] %v1098_v39  ;;  %v1409_v57 = vmul.f32 %v1098_v39, %v1098_v39 }
 0x12c   :  { %v1469_v45 = vadd.f32 %v1468_v43, %v1406_v42  ;;  %1270 = vst [vmem:[%s2486_s4 + $0xc8] sm:$0xff] %v1090_v44  ;;  %v1334_v46 = vadd.f32 %v1333_v41, %v1090_v44  ;;  %v1407_v47 = vmul.f32 %v1090_v44, %v1090_v44 }
 0x12d   :  { %v1735_v48 = vpop.f32.mrb[28].mxu1 }
 0x12e   :  { %v1335_v50 = vadd.f32 %v1334_v46, %v1095_v30  ;;  %v1470_v51 = vadd.f32 %v1469_v45, %v1407_v47  ;;  %v1815_v52 = vpop.f32.mrb[28].mxu0  ;;  %v573_v53 = vpop.f32.mrb[29].mxu1 }
 0x12f   :  { %v1111_v54 = vadd.f32 %v1815_v52, %v1735_v48  ;;  %v1102_v55 = vpop.f32.mrb[29].mxu0  ;;  %v1736_v56 = vpop.f32.mrb[30].mxu1 }
 0x130   :  { %v1471_v58 = vadd.f32 %v1470_v51, %v1408_v49  ;;  %v1103_v59 = vadd.f32 %v1102_v55, %v573_v53  ;;  %v1336_v60 = vadd.f32 %v1335_v50, %v1098_v39  ;;  %v1816_v61 = vpop.f32.mrb[30].mxu0  ;;  %v576_v62 = vpop.f32.mrb[31].mxu1 }
 0x131   :  { %1275 = vst [vmem:[%s2486_s4 + $0xf0] sm:$0xff] %v1111_v54  ;;  %v1114_v63 = vadd.f32 %v1816_v61, %v1736_v56  ;;  %v1105_v0 = vpop.f32.mrb[31].mxu0  ;;  %v1412_v9 = vmul.f32 %v1111_v54, %v1111_v54 }
 0x132   :  { %1273 = vst [vmem:[%s2486_s4 + $0xe0] sm:$0xff] %v1103_v59  ;;  %v1337_v1 = vadd.f32 %v1336_v60, %v1103_v59  ;;  %v1410_v2 = vmul.f32 %v1103_v59, %v1103_v59  ;;  %v1472_v3 = vadd.f32 %v1471_v58, %v1409_v57  ;;  %v1106_v4 = vadd.f32 %v1105_v0, %v576_v62 }
 0x133   :  { %1276 = vst [vmem:[%s2486_s4 + $0xf8] sm:$0xff] %v1114_v63  ;;  %v1413_v17 = vmul.f32 %v1114_v63, %v1114_v63 }
 0x134   :  { %v1473_v5 = vadd.f32 %v1472_v3, %v1410_v2  ;;  %1274 = vst [vmem:[%s2486_s4 + $0xe8] sm:$0xff] %v1106_v4  ;;  %v1338_v6 = vadd.f32 %v1337_v1, %v1106_v4  ;;  %v1411_v7 = vmul.f32 %v1106_v4, %v1106_v4 }
 0x135   :  { %v1739_v8 = vpop.f32.mrb[32].mxu1 }
 0x136   :  { %v1339_v10 = vadd.f32 %v1338_v6, %v1111_v54  ;;  %v1474_v11 = vadd.f32 %v1473_v5, %v1411_v7  ;;  %v1819_v12 = vpop.f32.mrb[32].mxu0  ;;  %v589_v13 = vpop.f32.mrb[33].mxu1 }
 0x137   :  { %v1127_v14 = vadd.f32 %v1819_v12, %v1739_v8  ;;  %v1118_v15 = vpop.f32.mrb[33].mxu0  ;;  %v1740_v16 = vpop.f32.mrb[34].mxu1 }
 0x138   :  { %v1475_v18 = vadd.f32 %v1474_v11, %v1412_v9  ;;  %v1119_v19 = vadd.f32 %v1118_v15, %v589_v13  ;;  %v1340_v20 = vadd.f32 %v1339_v10, %v1114_v63  ;;  %v1820_v21 = vpop.f32.mrb[34].mxu0  ;;  %v592_v22 = vpop.f32.mrb[35].mxu1 }
 0x139   :  { %1279 = vst [vmem:[%s2486_s4 + $0x110] sm:$0xff] %v1127_v14  ;;  %v1130_v23 = vadd.f32 %v1820_v21, %v1740_v16  ;;  %v1121_v24 = vpop.f32.mrb[35].mxu0  ;;  %v1416_v33 = vmul.f32 %v1127_v14, %v1127_v14 }
 0x13a   :  { %1277 = vst [vmem:[%s2486_s4 + $0x100] sm:$0xff] %v1119_v19  ;;  %v1341_v25 = vadd.f32 %v1340_v20, %v1119_v19  ;;  %v1414_v26 = vmul.f32 %v1119_v19, %v1119_v19  ;;  %v1476_v27 = vadd.f32 %v1475_v18, %v1413_v17  ;;  %v1122_v28 = vadd.f32 %v1121_v24, %v592_v22 }
 0x13b   :  { %1280 = vst [vmem:[%s2486_s4 + $0x118] sm:$0xff] %v1130_v23  ;;  %v1417_v41 = vmul.f32 %v1130_v23, %v1130_v23 }
 0x13c   :  { %v1477_v29 = vadd.f32 %v1476_v27, %v1414_v26  ;;  %1278 = vst [vmem:[%s2486_s4 + $0x108] sm:$0xff] %v1122_v28  ;;  %v1342_v30 = vadd.f32 %v1341_v25, %v1122_v28  ;;  %v1415_v31 = vmul.f32 %v1122_v28, %v1122_v28 }
 0x13d   :  { %v1743_v32 = vpop.f32.mrb[36].mxu1 }
 0x13e   :  { %v1343_v34 = vadd.f32 %v1342_v30, %v1127_v14  ;;  %v1478_v35 = vadd.f32 %v1477_v29, %v1415_v31  ;;  %v1823_v36 = vpop.f32.mrb[36].mxu0  ;;  %v605_v37 = vpop.f32.mrb[37].mxu1 }
 0x13f   :  { %v1143_v38 = vadd.f32 %v1823_v36, %v1743_v32  ;;  %v1134_v39 = vpop.f32.mrb[37].mxu0  ;;  %v1744_v40 = vpop.f32.mrb[38].mxu1 }
 0x140   :  { %v1479_v42 = vadd.f32 %v1478_v35, %v1416_v33  ;;  %v1135_v43 = vadd.f32 %v1134_v39, %v605_v37  ;;  %v1344_v44 = vadd.f32 %v1343_v34, %v1130_v23  ;;  %v1824_v45 = vpop.f32.mrb[38].mxu0  ;;  %v608_v46 = vpop.f32.mrb[39].mxu1 }
 0x141   :  { %1283 = vst [vmem:[%s2486_s4 + $0x130] sm:$0xff] %v1143_v38  ;;  %v1146_v47 = vadd.f32 %v1824_v45, %v1744_v40  ;;  %v1137_v48 = vpop.f32.mrb[39].mxu0  ;;  %v1420_v57 = vmul.f32 %v1143_v38, %v1143_v38 }
 0x142   :  { %1281 = vst [vmem:[%s2486_s4 + $0x120] sm:$0xff] %v1135_v43  ;;  %v1345_v49 = vadd.f32 %v1344_v44, %v1135_v43  ;;  %v1418_v50 = vmul.f32 %v1135_v43, %v1135_v43  ;;  %v1480_v51 = vadd.f32 %v1479_v42, %v1417_v41  ;;  %v1138_v52 = vadd.f32 %v1137_v48, %v608_v46 }
 0x143   :  { %1284 = vst [vmem:[%s2486_s4 + $0x138] sm:$0xff] %v1146_v47  ;;  %v1421_v1 = vmul.f32 %v1146_v47, %v1146_v47 }
 0x144   :  { %v1481_v53 = vadd.f32 %v1480_v51, %v1418_v50  ;;  %1282 = vst [vmem:[%s2486_s4 + $0x128] sm:$0xff] %v1138_v52  ;;  %v1346_v54 = vadd.f32 %v1345_v49, %v1138_v52  ;;  %v1419_v55 = vmul.f32 %v1138_v52, %v1138_v52 }
 0x145   :  { %v1747_v56 = vpop.f32.mrb[40].mxu1 }
 0x146   :  { %v1347_v58 = vadd.f32 %v1346_v54, %v1143_v38  ;;  %v1482_v59 = vadd.f32 %v1481_v53, %v1419_v55  ;;  %v1827_v60 = vpop.f32.mrb[40].mxu0  ;;  %v621_v61 = vpop.f32.mrb[41].mxu1 }
 0x147   :  { %v1159_v62 = vadd.f32 %v1827_v60, %v1747_v56  ;;  %v1150_v63 = vpop.f32.mrb[41].mxu0  ;;  %v1748_v0 = vpop.f32.mrb[42].mxu1 }
 0x148   :  { %v1483_v2 = vadd.f32 %v1482_v59, %v1420_v57  ;;  %v1151_v3 = vadd.f32 %v1150_v63, %v621_v61  ;;  %v1348_v4 = vadd.f32 %v1347_v58, %v1146_v47  ;;  %v1828_v5 = vpop.f32.mrb[42].mxu0  ;;  %v624_v6 = vpop.f32.mrb[43].mxu1 }
 0x149   :  { %1287 = vst [vmem:[%s2486_s4 + $0x150] sm:$0xff] %v1159_v62  ;;  %v1162_v7 = vadd.f32 %v1828_v5, %v1748_v0  ;;  %v1153_v8 = vpop.f32.mrb[43].mxu0  ;;  %v1424_v17 = vmul.f32 %v1159_v62, %v1159_v62 }
 0x14a   :  { %1285 = vst [vmem:[%s2486_s4 + $0x140] sm:$0xff] %v1151_v3  ;;  %v1349_v9 = vadd.f32 %v1348_v4, %v1151_v3  ;;  %v1422_v10 = vmul.f32 %v1151_v3, %v1151_v3  ;;  %v1484_v11 = vadd.f32 %v1483_v2, %v1421_v1  ;;  %v1154_v12 = vadd.f32 %v1153_v8, %v624_v6 }
 0x14b   :  { %1288 = vst [vmem:[%s2486_s4 + $0x158] sm:$0xff] %v1162_v7  ;;  %v1425_v25 = vmul.f32 %v1162_v7, %v1162_v7 }
 0x14c   :  { %v1485_v13 = vadd.f32 %v1484_v11, %v1422_v10  ;;  %1286 = vst [vmem:[%s2486_s4 + $0x148] sm:$0xff] %v1154_v12  ;;  %v1350_v14 = vadd.f32 %v1349_v9, %v1154_v12  ;;  %v1423_v15 = vmul.f32 %v1154_v12, %v1154_v12 }
 0x14d   :  { %v1751_v16 = vpop.f32.mrb[44].mxu1 }
 0x14e   :  { %v1351_v18 = vadd.f32 %v1350_v14, %v1159_v62  ;;  %v1486_v19 = vadd.f32 %v1485_v13, %v1423_v15  ;;  %v1831_v20 = vpop.f32.mrb[44].mxu0  ;;  %v637_v21 = vpop.f32.mrb[45].mxu1 }
 0x14f   :  { %v1175_v22 = vadd.f32 %v1831_v20, %v1751_v16  ;;  %v1166_v23 = vpop.f32.mrb[45].mxu0  ;;  %v1752_v24 = vpop.f32.mrb[46].mxu1 }
 0x150   :  { %v1487_v26 = vadd.f32 %v1486_v19, %v1424_v17  ;;  %v1167_v27 = vadd.f32 %v1166_v23, %v637_v21  ;;  %v1352_v28 = vadd.f32 %v1351_v18, %v1162_v7  ;;  %v1832_v29 = vpop.f32.mrb[46].mxu0  ;;  %v640_v30 = vpop.f32.mrb[47].mxu1 }
 0x151   :  { %1291 = vst [vmem:[%s2486_s4 + $0x170] sm:$0xff] %v1175_v22  ;;  %v1178_v31 = vadd.f32 %v1832_v29, %v1752_v24  ;;  %v1169_v32 = vpop.f32.mrb[47].mxu0  ;;  %v1428_v41 = vmul.f32 %v1175_v22, %v1175_v22 }
 0x152   :  { %1289 = vst [vmem:[%s2486_s4 + $0x160] sm:$0xff] %v1167_v27  ;;  %v1353_v33 = vadd.f32 %v1352_v28, %v1167_v27  ;;  %v1426_v34 = vmul.f32 %v1167_v27, %v1167_v27  ;;  %v1488_v35 = vadd.f32 %v1487_v26, %v1425_v25  ;;  %v1170_v36 = vadd.f32 %v1169_v32, %v640_v30 }
 0x153   :  { %1292 = vst [vmem:[%s2486_s4 + $0x178] sm:$0xff] %v1178_v31  ;;  %v1429_v49 = vmul.f32 %v1178_v31, %v1178_v31 }
 0x154   :  { %v1489_v37 = vadd.f32 %v1488_v35, %v1426_v34  ;;  %1290 = vst [vmem:[%s2486_s4 + $0x168] sm:$0xff] %v1170_v36  ;;  %v1354_v38 = vadd.f32 %v1353_v33, %v1170_v36  ;;  %v1427_v39 = vmul.f32 %v1170_v36, %v1170_v36 }
 0x155   :  { %v1755_v40 = vpop.f32.mrb[48].mxu1 }
 0x156   :  { %v1355_v42 = vadd.f32 %v1354_v38, %v1175_v22  ;;  %v1490_v43 = vadd.f32 %v1489_v37, %v1427_v39  ;;  %v1835_v44 = vpop.f32.mrb[48].mxu0  ;;  %v653_v45 = vpop.f32.mrb[49].mxu1 }
 0x157   :  { %v1191_v46 = vadd.f32 %v1835_v44, %v1755_v40  ;;  %v1182_v47 = vpop.f32.mrb[49].mxu0  ;;  %v1756_v48 = vpop.f32.mrb[50].mxu1 }
 0x158   :  { %v1491_v50 = vadd.f32 %v1490_v43, %v1428_v41  ;;  %v1183_v51 = vadd.f32 %v1182_v47, %v653_v45  ;;  %v1356_v52 = vadd.f32 %v1355_v42, %v1178_v31  ;;  %v1836_v53 = vpop.f32.mrb[50].mxu0  ;;  %v656_v54 = vpop.f32.mrb[51].mxu1 }
 0x159   :  { %1295 = vst [vmem:[%s2486_s4 + $0x190] sm:$0xff] %v1191_v46  ;;  %v1194_v55 = vadd.f32 %v1836_v53, %v1756_v48  ;;  %v1185_v56 = vpop.f32.mrb[51].mxu0  ;;  %v1432_v1 = vmul.f32 %v1191_v46, %v1191_v46 }
 0x15a   :  { %1293 = vst [vmem:[%s2486_s4 + $0x180] sm:$0xff] %v1183_v51  ;;  %v1357_v57 = vadd.f32 %v1356_v52, %v1183_v51  ;;  %v1430_v58 = vmul.f32 %v1183_v51, %v1183_v51  ;;  %v1492_v59 = vadd.f32 %v1491_v50, %v1429_v49  ;;  %v1186_v60 = vadd.f32 %v1185_v56, %v656_v54 }
 0x15b   :  { %1296 = vst [vmem:[%s2486_s4 + $0x198] sm:$0xff] %v1194_v55  ;;  %v1433_v9 = vmul.f32 %v1194_v55, %v1194_v55 }
 0x15c   :  { %v1493_v61 = vadd.f32 %v1492_v59, %v1430_v58  ;;  %1294 = vst [vmem:[%s2486_s4 + $0x188] sm:$0xff] %v1186_v60  ;;  %v1358_v62 = vadd.f32 %v1357_v57, %v1186_v60  ;;  %v1431_v63 = vmul.f32 %v1186_v60, %v1186_v60 }
 0x15d   :  { %v1759_v0 = vpop.f32.mrb[52].mxu1 }
 0x15e   :  { %v1359_v2 = vadd.f32 %v1358_v62, %v1191_v46  ;;  %v1494_v3 = vadd.f32 %v1493_v61, %v1431_v63  ;;  %v1839_v4 = vpop.f32.mrb[52].mxu0  ;;  %v669_v5 = vpop.f32.mrb[53].mxu1 }
 0x15f   :  { %v1207_v6 = vadd.f32 %v1839_v4, %v1759_v0  ;;  %v1198_v7 = vpop.f32.mrb[53].mxu0  ;;  %v1760_v8 = vpop.f32.mrb[54].mxu1 }
 0x160   :  { %v1495_v10 = vadd.f32 %v1494_v3, %v1432_v1  ;;  %v1199_v11 = vadd.f32 %v1198_v7, %v669_v5  ;;  %v1360_v12 = vadd.f32 %v1359_v2, %v1194_v55  ;;  %v1840_v13 = vpop.f32.mrb[54].mxu0  ;;  %v672_v14 = vpop.f32.mrb[55].mxu1 }
 0x161   :  { %1299 = vst [vmem:[%s2486_s4 + $0x1b0] sm:$0xff] %v1207_v6  ;;  %v1210_v15 = vadd.f32 %v1840_v13, %v1760_v8  ;;  %v1201_v16 = vpop.f32.mrb[55].mxu0  ;;  %v1436_v25 = vmul.f32 %v1207_v6, %v1207_v6 }
 0x162   :  { %1297 = vst [vmem:[%s2486_s4 + $0x1a0] sm:$0xff] %v1199_v11  ;;  %v1361_v17 = vadd.f32 %v1360_v12, %v1199_v11  ;;  %v1434_v18 = vmul.f32 %v1199_v11, %v1199_v11  ;;  %v1496_v19 = vadd.f32 %v1495_v10, %v1433_v9  ;;  %v1202_v20 = vadd.f32 %v1201_v16, %v672_v14 }
 0x163   :  { %1300 = vst [vmem:[%s2486_s4 + $0x1b8] sm:$0xff] %v1210_v15  ;;  %v1437_v33 = vmul.f32 %v1210_v15, %v1210_v15 }
 0x164   :  { %v1497_v21 = vadd.f32 %v1496_v19, %v1434_v18  ;;  %1298 = vst [vmem:[%s2486_s4 + $0x1a8] sm:$0xff] %v1202_v20  ;;  %v1362_v22 = vadd.f32 %v1361_v17, %v1202_v20  ;;  %v1435_v23 = vmul.f32 %v1202_v20, %v1202_v20 }
 0x165   :  { %v1763_v24 = vpop.f32.mrb[56].mxu1 }
 0x166   :  { %v1363_v26 = vadd.f32 %v1362_v22, %v1207_v6  ;;  %v1498_v27 = vadd.f32 %v1497_v21, %v1435_v23  ;;  %v1843_v28 = vpop.f32.mrb[56].mxu0  ;;  %v685_v29 = vpop.f32.mrb[57].mxu1 }
 0x167   :  { %v1223_v30 = vadd.f32 %v1843_v28, %v1763_v24  ;;  %v1214_v31 = vpop.f32.mrb[57].mxu0  ;;  %v1764_v32 = vpop.f32.mrb[58].mxu1  ;;  %v1309_v24 = vld [vmem:[%s2484_s5] sm:$0x1] }
 0x168   :  { %v1499_v34 = vadd.f32 %v1498_v27, %v1436_v25  ;;  %v1215_v35 = vadd.f32 %v1214_v31, %v685_v29  ;;  %v1364_v36 = vadd.f32 %v1363_v26, %v1210_v15  ;;  %v1844_v37 = vpop.f32.mrb[58].mxu0  ;;  %v688_v38 = vpop.f32.mrb[59].mxu1  ;;  %v1381_v27 = vld [vmem:[%s2485_s6] sm:$0x1] }
 0x169   :  { %1303 = vst [vmem:[%s2486_s4 + $0x1d0] sm:$0xff] %v1223_v30  ;;  %v1226_v39 = vadd.f32 %v1844_v37, %v1764_v32  ;;  %v1217_v40 = vpop.f32.mrb[59].mxu0  ;;  %v1440_v49 = vmul.f32 %v1223_v30, %v1223_v30 }
 0x16a   :  { %1301 = vst [vmem:[%s2486_s4 + $0x1c0] sm:$0xff] %v1215_v35  ;;  %v1365_v41 = vadd.f32 %v1364_v36, %v1215_v35  ;;  %v1438_v42 = vmul.f32 %v1215_v35, %v1215_v35  ;;  %v1500_v43 = vadd.f32 %v1499_v34, %v1437_v33  ;;  %v1218_v44 = vadd.f32 %v1217_v40, %v688_v38 }
 0x16b   :  { %1304 = vst [vmem:[%s2486_s4 + $0x1d8] sm:$0xff] %v1226_v39  ;;  %v1441_v57 = vmul.f32 %v1226_v39, %v1226_v39 }
 0x16c   :  { %v1501_v45 = vadd.f32 %v1500_v43, %v1438_v42  ;;  %1302 = vst [vmem:[%s2486_s4 + $0x1c8] sm:$0xff] %v1218_v44  ;;  %v1366_v46 = vadd.f32 %v1365_v41, %v1218_v44  ;;  %v1439_v47 = vmul.f32 %v1218_v44, %v1218_v44 }
 0x16d   :  { %v1767_v48 = vpop.f32.mrb[60].mxu1 }
 0x16e   :  { %v1367_v50 = vadd.f32 %v1366_v46, %v1223_v30  ;;  %v1502_v51 = vadd.f32 %v1501_v45, %v1439_v47  ;;  %v1847_v52 = vpop.f32.mrb[60].mxu0  ;;  %v701_v53 = vpop.f32.mrb[61].mxu1 }
 0x16f   :  { %v1239_v54 = vadd.f32 %v1847_v52, %v1767_v48  ;;  %v1230_v55 = vpop.f32.mrb[61].mxu0  ;;  %v1768_v56 = vpop.f32.mrb[62].mxu1 }
 0x170   :  { %v1503_v58 = vadd.f32 %v1502_v51, %v1440_v49  ;;  %v1231_v59 = vadd.f32 %v1230_v55, %v701_v53  ;;  %v1368_v60 = vadd.f32 %v1367_v50, %v1226_v39  ;;  %v1848_v61 = vpop.f32.mrb[62].mxu0  ;;  %v704_v62 = vpop.f32.mrb[63].mxu1 }
 0x171   :  { %1307 = vst [vmem:[%s2486_s4 + $0x1f0] sm:$0xff] %v1239_v54  ;;  %v1242_v63 = vadd.f32 %v1848_v61, %v1768_v56  ;;  %v1233_v0 = vpop.f32.mrb[63].mxu0  ;;  %v1444_v8 = vmul.f32 %v1239_v54, %v1239_v54 }
 0x172   :  { %1305 = vst [vmem:[%s2486_s4 + $0x1e0] sm:$0xff] %v1231_v59  ;;  %v1369_v1 = vadd.f32 %v1368_v60, %v1231_v59  ;;  %v1442_v2 = vmul.f32 %v1231_v59, %v1231_v59  ;;  %v1504_v3 = vadd.f32 %v1503_v58, %v1441_v57  ;;  %v1234_v4 = vadd.f32 %v1233_v0, %v704_v62 }
 0x173   :  { %1308 = vst [vmem:[%s2486_s4 + $0x1f8] sm:$0xff] %v1242_v63  ;;  %v1445_v11 = vmul.f32 %v1242_v63, %v1242_v63 }
 0x174   :  { %v1505_v5 = vadd.f32 %v1504_v3, %v1442_v2  ;;  %1306 = vst [vmem:[%s2486_s4 + $0x1e8] sm:$0xff] %v1234_v4  ;;  %v1370_v6 = vadd.f32 %v1369_v1, %v1234_v4  ;;  %v1443_v7 = vmul.f32 %v1234_v4, %v1234_v4 }
 0x176   :  { %v1371_v9 = vadd.f32 %v1370_v6, %v1239_v54  ;;  %v1506_v10 = vadd.f32 %v1505_v5, %v1443_v7 }
 0x178   :  { %v1372_v12 = vadd.f32 %v1371_v9, %v1242_v63  ;;  %v1507_v13 = vadd.f32 %v1506_v10, %v1444_v8 }
 0x17a   :  { %v1373_v14 = vrot.slane %v1372_v12, 4  ;;  %v1508_v15 = vadd.f32 %v1507_v13, %v1445_v11 }
 0x17c   :  { %v1374_v16 = vadd.f32 %v1373_v14, %v1372_v12  ;;  %v1509_v17 = vrot.slane %v1508_v15, 4 }
 0x17e   :  { %v1375_v18 = vrot.slane %v1374_v16, 2  ;;  %v1510_v19 = vadd.f32 %v1509_v17, %v1508_v15 }
 0x180   :  { %v1376_v20 = vadd.f32 %v1375_v18, %v1374_v16  ;;  %v1511_v21 = vrot.slane %v1510_v19, 2 }
 0x182   :  { %v1377_v22 = vrot.slane %v1376_v20, 1  ;;  %v1512_v23 = vadd.f32 %v1511_v21, %v1510_v19 }
 0x184   :  { %v1378_v25 = vadd.f32 %v1377_v22, %v1376_v20  ;;  %v1513_v26 = vrot.slane %v1512_v23, 1 }
 0x186   :  { %v1379_v28 = vadd.f32 %v1378_v25, %v1309_v24  ;;  %v1514_v29 = vadd.f32 %v1513_v26, %v1512_v23 }
 0x188   :  { %1380 = vst [vmem:[%s2484_s5] sm:$0x1] %v1379_v28  ;;  %v1515_v30 = vadd.f32 %v1514_v29, %v1381_v27 }
 0x18a   :  { %1516 = vst [vmem:[%s2485_s6] sm:$0x1] %v1515_v30 }

// kernel: rsu6_forward.47
= control target key start
LH: loop header
LB: loop body
LE: loop exit
PB: predicated region body
PF: predicated region fallthrough
CT: control target
= control target key end

     0   :  { %v102_v8 = vlaneseq  ;;  %s1258_s1 = inlined_call_operand.vmem [shape: f32[1,128], index: 1, kind: input, shape index: {}]   ;;  %s1259_s2 = inlined_call_operand.vmem [shape: f32[1,128], index: 2, kind: input, shape index: {}]   ;;  %s1260_s3 = inlined_call_operand.vmem [shape: f32[1,128], index: 3, kind: input, shape index: {}]   ;;  %s1261_s0 = inlined_call_operand.vmem [shape: f32[512,128], index: 0, kind: input, shape index: {}]   ;;  %s1262_s4 = inlined_call_operand.vmem [shape: f32[1,128], index: 4, kind: input, shape index: {}]   ;;  %s1263_s5 = inlined_call_operand.vmem [shape: f32[512,128], index: 5, kind: input, shape index: {}]   ;;  %s1264_s6 = inlined_call_operand.vmem [shape: f32[512,128], index: 6, kind: output, shape index: {}]  }
   0x1   :  { %v23_v0 = vld [vmem:[%s1258_s1] sm:$0x1]  ;;  %v38_v16 = vld [vmem:[%s1261_s0 + $0x8] sm:$0xff]  ;;  %v39_v17 = vld [vmem:[%s1261_s0 + $0x10] sm:$0xff] }
   0x2   :  { %v25_v1 = vld [vmem:[%s1259_s2] sm:$0x1]  ;;  %v24_v2 = vmul.f32 0.001953125, %v23_v0  ;;  %v103_v9 = vshrl.u32 %v102_v8, 7  ;;  %v40_v18 = vld [vmem:[%s1261_s0 + $0x18] sm:$0xff]  ;;  %v42_v22 = vld [vmem:[%s1261_s0 + $0x28] sm:$0xff] }
   0x3   :  { %v26_v3 = vmul.f32 0.001953125, %v25_v1  ;;  %v30_v10 = vld [vmem:[%s1260_s3] sm:$0x1]  ;;  %v43_v23 = vld [vmem:[%s1261_s0 + $0x30] sm:$0xff]  ;;  %v44_v24 = vld [vmem:[%s1261_s0 + $0x38] sm:$0xff] }
   0x4   :  { %v27_v4 = vmul.f32 %v24_v2, %v24_v2  ;;  %v104_v11 = vsub.s32 0, %v103_v9  ;;  %v34_v14 = vld [vmem:[%s1262_s4] sm:$0x1]  ;;  %v46_v26 = vld [vmem:[%s1261_s0 + $0x48] sm:$0xff]  ;;  %v47_v27 = vld [vmem:[%s1261_s0 + $0x50] sm:$0xff] }
   0x5   :  { %v37_v15 = vld [vmem:[%s1261_s0] sm:$0xff]  ;;  %v48_v32 = vld [vmem:[%s1261_s0 + $0x58] sm:$0xff]  ;;  %v50_v34 = vld [vmem:[%s1261_s0 + $0x68] sm:$0xff] }
   0x6   :  { %v28_v5 = vsub.f32 %v26_v3, %v27_v4  ;;  %v41_v19 = vld [vmem:[%s1261_s0 + $0x20] sm:$0xff]  ;;  %v306_v50 = vld [vmem:[%s1263_s5 + $0x8] sm:$0xff]  ;;  %v307_v52 = vld [vmem:[%s1263_s5 + $0x10] sm:$0xff] }
   0x7   :  { %v45_v25 = vld [vmem:[%s1261_s0 + $0x40] sm:$0xff]  ;;  %v308_v54 = vld [vmem:[%s1263_s5 + $0x18] sm:$0xff]  ;;  %v310_v58 = vld [vmem:[%s1263_s5 + $0x28] sm:$0xff] }
   0x8   :  { %v29_v6 = vmax.f32 %v28_v5, 0.0  ;;  %v49_v33 = vld [vmem:[%s1261_s0 + $0x60] sm:$0xff]  ;;  %v311_v1 = vld [vmem:[%s1263_s5 + $0x30] sm:$0xff] }
   0x9   :  { %v305_v48 = vld [vmem:[%s1263_s5] sm:$0xff] }
   0xa   :  { %v31_v7 = vadd.f32 1e-05, %v29_v6  ;;  %v309_v56 = vld [vmem:[%s1263_s5 + $0x20] sm:$0xff] }
   0xc   :  { %501 = vrsqrt.f32 %v31_v7 }
  0x16   :  { %v502_v12 = vpop.eup %501 }
  0x17   :  { %v33_v13 = vmul.f32 %v502_v12, %v30_v10  ;;  %v52_v12 = vld [vmem:[%s1261_s0 + $0x78] sm:$0xff] }
  0x19   :  { %v35_v20 = vmul.f32 %v33_v13, %v24_v2  ;;  %v565_v21 = vrot.slane %v33_v13, %v104_v11  ;;  %v312_v2 = vld [vmem:[%s1263_s5 + $0x38] sm:$0xff] }
  0x1b   :  { %v36_v28 = vsub.f32 %v34_v14, %v35_v20  ;;  %v107_v29 = vmul.f32 %v565_v21, %v37_v15  ;;  %v108_v30 = vmul.f32 %v565_v21, %v38_v16  ;;  %v109_v31 = vmul.f32 %v565_v21, %v39_v17  ;;  %v314_v20 = vld [vmem:[%s1263_s5 + $0x48] sm:$0xff] }
  0x1c   :  { %v110_v35 = vmul.f32 %v565_v21, %v40_v18  ;;  %v111_v36 = vmul.f32 %v565_v21, %v41_v19  ;;  %v112_v37 = vmul.f32 %v565_v21, %v42_v22  ;;  %v113_v38 = vmul.f32 %v565_v21, %v43_v23  ;;  %v313_v18 = vld [vmem:[%s1263_s5 + $0x40] sm:$0xff]  ;;  %v315_v23 = vld [vmem:[%s1263_s5 + $0x50] sm:$0xff] }
  0x1d   :  { %v601_v39 = vrot.slane %v36_v28, %v104_v11  ;;  %v114_v40 = vmul.f32 %v565_v21, %v44_v24  ;;  %v115_v41 = vmul.f32 %v565_v21, %v45_v25  ;;  %v116_v42 = vmul.f32 %v565_v21, %v46_v26  ;;  %v51_v11 = vld [vmem:[%s1261_s0 + $0x70] sm:$0xff]  ;;  %v316_v25 = vld [vmem:[%s1263_s5 + $0x58] sm:$0xff] }
  0x1e   :  { %v117_v43 = vmul.f32 %v565_v21, %v47_v27  ;;  %v118_v44 = vmul.f32 %v565_v21, %v48_v32  ;;  %v119_v45 = vmul.f32 %v565_v21, %v49_v33  ;;  %v120_v46 = vmul.f32 %v565_v21, %v50_v34  ;;  %v317_v27 = vld [vmem:[%s1263_s5 + $0x60] sm:$0xff] }
  0x1f   :  { %v177_v47 = vadd.f32 %v601_v39, %v107_v29  ;;  %v178_v49 = vadd.f32 %v601_v39, %v108_v30  ;;  %v179_v51 = vadd.f32 %v601_v39, %v109_v31  ;;  %v180_v53 = vadd.f32 %v601_v39, %v110_v35  ;;  %v318_v29 = vld [vmem:[%s1263_s5 + $0x68] sm:$0xff] }
  0x20   :  { %v181_v55 = vadd.f32 %v601_v39, %v111_v36  ;;  %v182_v57 = vadd.f32 %v601_v39, %v112_v37  ;;  %v183_v59 = vadd.f32 %v601_v39, %v113_v38  ;;  %v184_v60 = vadd.f32 %v601_v39, %v114_v40  ;;  %v319_v36 = vld [vmem:[%s1263_s5 + $0x70] sm:$0xff]  ;;  %v53_v37 = vld [vmem:[%s1261_s0 + $0x80] sm:$0xff] }
  0x21   :  { %v241_v61 = vmax.f32 %v177_v47, 0.0  ;;  %v242_v62 = vmax.f32 %v178_v49, 0.0  ;;  %v243_v63 = vmax.f32 %v179_v51, 0.0  ;;  %v244_v0 = vmax.f32 %v180_v53, 0.0  ;;  %v57_v51 = vld [vmem:[%s1261_s0 + $0xa0] sm:$0xff] }
  0x22   :  { %v245_v3 = vmax.f32 %v181_v55, 0.0  ;;  %v246_v4 = vmax.f32 %v182_v57, 0.0  ;;  %v247_v5 = vmax.f32 %v183_v59, 0.0  ;;  %v248_v6 = vmax.f32 %v184_v60, 0.0 }
  0x23   :  { %v369_v7 = vadd.f32 %v305_v48, %v241_v61  ;;  %v370_v8 = vadd.f32 %v306_v50, %v242_v62  ;;  %v371_v9 = vadd.f32 %v307_v52, %v243_v63  ;;  %v372_v10 = vadd.f32 %v308_v54, %v244_v0  ;;  %v320_v50 = vld [vmem:[%s1263_s5 + $0x78] sm:$0xff]  ;;  %v58_v52 = vld [vmem:[%s1261_s0 + $0xa8] sm:$0xff]  ;;  %v59_v61 = vld [vmem:[%s1261_s0 + $0xb0] sm:$0xff] }
  0x24   :  { %v373_v13 = vadd.f32 %v309_v56, %v245_v3  ;;  %v374_v14 = vadd.f32 %v310_v58, %v246_v4  ;;  %v375_v15 = vadd.f32 %v311_v1, %v247_v5  ;;  %v376_v16 = vadd.f32 %v312_v2, %v248_v6  ;;  %v60_v62 = vld [vmem:[%s1261_s0 + $0xb8] sm:$0xff]  ;;  %v321_v4 = vld [vmem:[%s1263_s5 + $0x80] sm:$0xff]  ;;  %v322_v6 = vld [vmem:[%s1263_s5 + $0x88] sm:$0xff] }
  0x25   :  { %433 = vst [vmem:[%s1264_s6] sm:$0xff] %v369_v7  ;;  %434 = vst [vmem:[%s1264_s6 + $0x8] sm:$0xff] %v370_v8  ;;  %v185_v17 = vadd.f32 %v601_v39, %v115_v41  ;;  %v186_v19 = vadd.f32 %v601_v39, %v116_v42  ;;  %v187_v22 = vadd.f32 %v601_v39, %v117_v43  ;;  %v54_v43 = vld [vmem:[%s1261_s0 + $0x88] sm:$0xff]  ;;  %v323_v8 = vld [vmem:[%s1263_s5 + $0x90] sm:$0xff] }
  0x26   :  { %435 = vst [vmem:[%s1264_s6 + $0x10] sm:$0xff] %v371_v9  ;;  %436 = vst [vmem:[%s1264_s6 + $0x18] sm:$0xff] %v372_v10  ;;  %v188_v24 = vadd.f32 %v601_v39, %v118_v44  ;;  %v189_v26 = vadd.f32 %v601_v39, %v119_v45  ;;  %v190_v28 = vadd.f32 %v601_v39, %v120_v46  ;;  %v55_v44 = vld [vmem:[%s1261_s0 + $0x90] sm:$0xff]  ;;  %v56_v45 = vld [vmem:[%s1261_s0 + $0x98] sm:$0xff] }
  0x27   :  { %437 = vst [vmem:[%s1264_s6 + $0x20] sm:$0xff] %v373_v13  ;;  %438 = vst [vmem:[%s1264_s6 + $0x28] sm:$0xff] %v374_v14  ;;  %v121_v30 = vmul.f32 %v565_v21, %v51_v11  ;;  %v122_v31 = vmul.f32 %v565_v21, %v52_v12  ;;  %v249_v32 = vmax.f32 %v185_v17, 0.0  ;;  %v250_v33 = vmax.f32 %v186_v19, 0.0  ;;  %v324_v10 = vld [vmem:[%s1263_s5 + $0x98] sm:$0xff]  ;;  %v325_v12 = vld [vmem:[%s1263_s5 + $0xa0] sm:$0xff] }
  0x28   :  { %439 = vst [vmem:[%s1264_s6 + $0x30] sm:$0xff] %v375_v15  ;;  %440 = vst [vmem:[%s1264_s6 + $0x38] sm:$0xff] %v376_v16  ;;  %v251_v34 = vmax.f32 %v187_v22, 0.0  ;;  %v252_v35 = vmax.f32 %v188_v24, 0.0  ;;  %v253_v38 = vmax.f32 %v189_v26, 0.0  ;;  %v254_v40 = vmax.f32 %v190_v28, 0.0 }
  0x29   :  { %v191_v41 = vadd.f32 %v601_v39, %v121_v30  ;;  %v192_v42 = vadd.f32 %v601_v39, %v122_v31  ;;  %v377_v46 = vadd.f32 %v313_v18, %v249_v32  ;;  %v378_v47 = vadd.f32 %v314_v20, %v250_v33  ;;  %v326_v14 = vld [vmem:[%s1263_s5 + $0xa8] sm:$0xff]  ;;  %v327_v22 = vld [vmem:[%s1263_s5 + $0xb0] sm:$0xff]  ;;  %v64_v30 = vld [vmem:[%s1261_s0 + $0xd8] sm:$0xff] }
  0x2a   :  { %v379_v48 = vadd.f32 %v315_v23, %v251_v34  ;;  %v380_v49 = vadd.f32 %v316_v25, %v252_v35  ;;  %v381_v53 = vadd.f32 %v317_v27, %v253_v38  ;;  %v382_v54 = vadd.f32 %v318_v29, %v254_v40  ;;  %v61_v23 = vld [vmem:[%s1261_s0 + $0xc0] sm:$0xff]  ;;  %v62_v28 = vld [vmem:[%s1261_s0 + $0xc8] sm:$0xff]  ;;  %v63_v29 = vld [vmem:[%s1261_s0 + $0xd0] sm:$0xff] }
  0x2b   :  { %v255_v55 = vmax.f32 %v191_v41, 0.0  ;;  %v256_v56 = vmax.f32 %v192_v42, 0.0  ;;  %441 = vst [vmem:[%s1264_s6 + $0x40] sm:$0xff] %v377_v46  ;;  %442 = vst [vmem:[%s1264_s6 + $0x48] sm:$0xff] %v378_v47  ;;  %v123_v57 = vmul.f32 %v565_v21, %v53_v37  ;;  %v124_v58 = vmul.f32 %v565_v21, %v54_v43  ;;  %v328_v35 = vld [vmem:[%s1263_s5 + $0xb8] sm:$0xff]  ;;  %v66_v37 = vld [vmem:[%s1261_s0 + $0xe8] sm:$0xff] }
  0x2c   :  { %443 = vst [vmem:[%s1264_s6 + $0x50] sm:$0xff] %v379_v48  ;;  %444 = vst [vmem:[%s1264_s6 + $0x58] sm:$0xff] %v380_v49  ;;  %v125_v59 = vmul.f32 %v565_v21, %v55_v44  ;;  %v126_v60 = vmul.f32 %v565_v21, %v56_v45  ;;  %v127_v1 = vmul.f32 %v565_v21, %v57_v51  ;;  %v67_v47 = vld [vmem:[%s1261_s0 + $0xf0] sm:$0xff]  ;;  %v68_v48 = vld [vmem:[%s1261_s0 + $0xf8] sm:$0xff] }
  0x2d   :  { %445 = vst [vmem:[%s1264_s6 + $0x60] sm:$0xff] %v381_v53  ;;  %446 = vst [vmem:[%s1264_s6 + $0x68] sm:$0xff] %v382_v54  ;;  %v383_v63 = vadd.f32 %v319_v36, %v255_v55  ;;  %v384_v0 = vadd.f32 %v320_v50, %v256_v56  ;;  %v128_v2 = vmul.f32 %v565_v21, %v58_v52  ;;  %v65_v36 = vld [vmem:[%s1261_s0 + $0xe0] sm:$0xff]  ;;  %v330_v56 = vld [vmem:[%s1263_s5 + $0xc8] sm:$0xff] }
  0x2e   :  { %v193_v3 = vadd.f32 %v601_v39, %v123_v57  ;;  %v194_v5 = vadd.f32 %v601_v39, %v124_v58  ;;  %v195_v7 = vadd.f32 %v601_v39, %v125_v59  ;;  %v196_v9 = vadd.f32 %v601_v39, %v126_v60  ;;  %v329_v54 = vld [vmem:[%s1263_s5 + $0xc0] sm:$0xff]  ;;  %v331_v58 = vld [vmem:[%s1263_s5 + $0xd0] sm:$0xff]  ;;  %v332_v60 = vld [vmem:[%s1263_s5 + $0xd8] sm:$0xff] }
  0x2f   :  { %447 = vst [vmem:[%s1264_s6 + $0x70] sm:$0xff] %v383_v63  ;;  %448 = vst [vmem:[%s1264_s6 + $0x78] sm:$0xff] %v384_v0  ;;  %v197_v11 = vadd.f32 %v601_v39, %v127_v1  ;;  %v198_v13 = vadd.f32 %v601_v39, %v128_v2  ;;  %v129_v15 = vmul.f32 %v565_v21, %v59_v61  ;;  %v334_v0 = vld [vmem:[%s1263_s5 + $0xe8] sm:$0xff] }
  0x30   :  { %v130_v16 = vmul.f32 %v565_v21, %v60_v62  ;;  %v257_v17 = vmax.f32 %v193_v3, 0.0  ;;  %v258_v18 = vmax.f32 %v194_v5, 0.0  ;;  %v259_v19 = vmax.f32 %v195_v7, 0.0  ;;  %v333_v62 = vld [vmem:[%s1263_s5 + $0xe0] sm:$0xff]  ;;  %v335_v7 = vld [vmem:[%s1263_s5 + $0xf0] sm:$0xff] }
  0x31   :  { %v260_v20 = vmax.f32 %v196_v9, 0.0  ;;  %v261_v24 = vmax.f32 %v197_v11, 0.0  ;;  %v262_v25 = vmax.f32 %v198_v13, 0.0  ;;  %v199_v26 = vadd.f32 %v601_v39, %v129_v15  ;;  %v70_v13 = vld [vmem:[%s1261_s0 + $0x108] sm:$0xff]  ;;  %v72_v15 = vld [vmem:[%s1261_s0 + $0x118] sm:$0xff] }
  0x32   :  { %v200_v27 = vadd.f32 %v601_v39, %v130_v16  ;;  %v385_v31 = vadd.f32 %v321_v4, %v257_v17  ;;  %v386_v32 = vadd.f32 %v322_v6, %v258_v18  ;;  %v387_v33 = vadd.f32 %v323_v8, %v259_v19  ;;  %v69_v8 = vld [vmem:[%s1261_s0 + $0x100] sm:$0xff] }
  0x33   :  { %v388_v34 = vadd.f32 %v324_v10, %v260_v20  ;;  %v389_v38 = vadd.f32 %v325_v12, %v261_v24  ;;  %v390_v40 = vadd.f32 %v326_v14, %v262_v25  ;;  %v263_v41 = vmax.f32 %v199_v26, 0.0  ;;  %v71_v14 = vld [vmem:[%s1261_s0 + $0x110] sm:$0xff]  ;;  %v336_v20 = vld [vmem:[%s1263_s5 + $0xf8] sm:$0xff] }
  0x34   :  { %v264_v42 = vmax.f32 %v200_v27, 0.0  ;;  %449 = vst [vmem:[%s1264_s6 + $0x80] sm:$0xff] %v385_v31  ;;  %450 = vst [vmem:[%s1264_s6 + $0x88] sm:$0xff] %v386_v32  ;;  %v131_v43 = vmul.f32 %v565_v21, %v61_v23  ;;  %v132_v44 = vmul.f32 %v565_v21, %v62_v28  ;;  %v133_v45 = vmul.f32 %v565_v21, %v63_v29  ;;  %v74_v23 = vld [vmem:[%s1261_s0 + $0x128] sm:$0xff]  ;;  %v75_v32 = vld [vmem:[%s1261_s0 + $0x130] sm:$0xff] }
  0x35   :  { %451 = vst [vmem:[%s1264_s6 + $0x90] sm:$0xff] %v387_v33  ;;  %452 = vst [vmem:[%s1264_s6 + $0x98] sm:$0xff] %v388_v34  ;;  %v134_v46 = vmul.f32 %v565_v21, %v64_v30  ;;  %v391_v49 = vadd.f32 %v327_v22, %v263_v41  ;;  %v135_v51 = vmul.f32 %v565_v21, %v65_v36  ;;  %v73_v22 = vld [vmem:[%s1261_s0 + $0x120] sm:$0xff]  ;;  %v76_v33 = vld [vmem:[%s1261_s0 + $0x138] sm:$0xff] }
  0x36   :  { %453 = vst [vmem:[%s1264_s6 + $0xa0] sm:$0xff] %v389_v38  ;;  %454 = vst [vmem:[%s1264_s6 + $0xa8] sm:$0xff] %v390_v40  ;;  %v392_v50 = vadd.f32 %v328_v35, %v264_v42  ;;  %v136_v52 = vmul.f32 %v565_v21, %v66_v37  ;;  %v201_v53 = vadd.f32 %v601_v39, %v131_v43  ;;  %v337_v40 = vld [vmem:[%s1263_s5 + $0x100] sm:$0xff]  ;;  %v338_v42 = vld [vmem:[%s1263_s5 + $0x108] sm:$0xff] }
  0x37   :  { %v202_v55 = vadd.f32 %v601_v39, %v132_v44  ;;  %v203_v57 = vadd.f32 %v601_v39, %v133_v45  ;;  %v204_v59 = vadd.f32 %v601_v39, %v134_v46  ;;  %455 = vst [vmem:[%s1264_s6 + $0xb0] sm:$0xff] %v391_v49  ;;  %v205_v61 = vadd.f32 %v601_v39, %v135_v51  ;;  %v339_v44 = vld [vmem:[%s1263_s5 + $0x110] sm:$0xff]  ;;  %v340_v46 = vld [vmem:[%s1263_s5 + $0x118] sm:$0xff] }
  0x38   :  { %456 = vst [vmem:[%s1264_s6 + $0xb8] sm:$0xff] %v392_v50  ;;  %v206_v63 = vadd.f32 %v601_v39, %v136_v52  ;;  %v137_v1 = vmul.f32 %v565_v21, %v67_v47  ;;  %v138_v2 = vmul.f32 %v565_v21, %v68_v48  ;;  %v265_v3 = vmax.f32 %v201_v53, 0.0  ;;  %v341_v48 = vld [vmem:[%s1263_s5 + $0x120] sm:$0xff]  ;;  %v342_v50 = vld [vmem:[%s1263_s5 + $0x128] sm:$0xff] }
  0x39   :  { %v266_v4 = vmax.f32 %v202_v55, 0.0  ;;  %v267_v5 = vmax.f32 %v203_v57, 0.0  ;;  %v268_v6 = vmax.f32 %v204_v59, 0.0  ;;  %v269_v9 = vmax.f32 %v205_v61, 0.0  ;;  %v343_v57 = vld [vmem:[%s1263_s5 + $0x130] sm:$0xff] }
  0x3a   :  { %v270_v10 = vmax.f32 %v206_v63, 0.0  ;;  %v207_v11 = vadd.f32 %v601_v39, %v137_v1  ;;  %v208_v12 = vadd.f32 %v601_v39, %v138_v2  ;;  %v393_v16 = vadd.f32 %v329_v54, %v265_v3  ;;  %v78_v63 = vld [vmem:[%s1261_s0 + $0x148] sm:$0xff]  ;;  %v80_v1 = vld [vmem:[%s1261_s0 + $0x158] sm:$0xff] }
  0x3b   :  { %v394_v17 = vadd.f32 %v330_v56, %v266_v4  ;;  %v395_v18 = vadd.f32 %v331_v58, %v267_v5  ;;  %v396_v19 = vadd.f32 %v332_v60, %v268_v6  ;;  %v397_v24 = vadd.f32 %v333_v62, %v269_v9  ;;  %v77_v58 = vld [vmem:[%s1261_s0 + $0x140] sm:$0xff]  ;;  %v344_v6 = vld [vmem:[%s1263_s5 + $0x138] sm:$0xff] }
  0x3c   :  { %v398_v25 = vadd.f32 %v334_v0, %v270_v10  ;;  %v271_v26 = vmax.f32 %v207_v11, 0.0  ;;  %v272_v27 = vmax.f32 %v208_v12, 0.0  ;;  %457 = vst [vmem:[%s1264_s6 + $0xc0] sm:$0xff] %v393_v16  ;;  %v139_v28 = vmul.f32 %v565_v21, %v69_v8  ;;  %v79_v0 = vld [vmem:[%s1261_s0 + $0x150] sm:$0xff]  ;;  %v82_v8 = vld [vmem:[%s1261_s0 + $0x168] sm:$0xff] }
  0x3d   :  { %458 = vst [vmem:[%s1264_s6 + $0xc8] sm:$0xff] %v394_v17  ;;  %459 = vst [vmem:[%s1264_s6 + $0xd0] sm:$0xff] %v395_v18  ;;  %v140_v29 = vmul.f32 %v565_v21, %v70_v13  ;;  %v141_v30 = vmul.f32 %v565_v21, %v71_v14  ;;  %v142_v31 = vmul.f32 %v565_v21, %v72_v15  ;;  %v83_v17 = vld [vmem:[%s1261_s0 + $0x170] sm:$0xff]  ;;  %v84_v18 = vld [vmem:[%s1261_s0 + $0x178] sm:$0xff] }
  0x3e   :  { %460 = vst [vmem:[%s1264_s6 + $0xd8] sm:$0xff] %v396_v19  ;;  %461 = vst [vmem:[%s1264_s6 + $0xe0] sm:$0xff] %v397_v24  ;;  %v399_v34 = vadd.f32 %v335_v7, %v271_v26  ;;  %v400_v35 = vadd.f32 %v336_v20, %v272_v27  ;;  %v143_v36 = vmul.f32 %v565_v21, %v73_v22  ;;  %v81_v7 = vld [vmem:[%s1261_s0 + $0x160] sm:$0xff]  ;;  %v346_v27 = vld [vmem:[%s1263_s5 + $0x148] sm:$0xff] }
  0x3f   :  { %462 = vst [vmem:[%s1264_s6 + $0xe8] sm:$0xff] %v398_v25  ;;  %v144_v37 = vmul.f32 %v565_v21, %v74_v23  ;;  %v209_v38 = vadd.f32 %v601_v39, %v139_v28  ;;  %v210_v41 = vadd.f32 %v601_v39, %v140_v29  ;;  %v211_v43 = vadd.f32 %v601_v39, %v141_v30  ;;  %v345_v25 = vld [vmem:[%s1263_s5 + $0x140] sm:$0xff]  ;;  %v347_v29 = vld [vmem:[%s1263_s5 + $0x150] sm:$0xff] }
  0x40   :  { %v212_v45 = vadd.f32 %v601_v39, %v142_v31  ;;  %463 = vst [vmem:[%s1264_s6 + $0xf0] sm:$0xff] %v399_v34  ;;  %464 = vst [vmem:[%s1264_s6 + $0xf8] sm:$0xff] %v400_v35  ;;  %v213_v47 = vadd.f32 %v601_v39, %v143_v36  ;;  %v145_v51 = vmul.f32 %v565_v21, %v75_v32  ;;  %v348_v31 = vld [vmem:[%s1263_s5 + $0x158] sm:$0xff]  ;;  %v350_v35 = vld [vmem:[%s1263_s5 + $0x168] sm:$0xff] }
  0x41   :  { %v214_v49 = vadd.f32 %v601_v39, %v144_v37  ;;  %v146_v52 = vmul.f32 %v565_v21, %v76_v33  ;;  %v273_v53 = vmax.f32 %v209_v38, 0.0  ;;  %v274_v54 = vmax.f32 %v210_v41, 0.0  ;;  %v349_v33 = vld [vmem:[%s1263_s5 + $0x160] sm:$0xff] }
  0x42   :  { %v275_v55 = vmax.f32 %v211_v43, 0.0  ;;  %v276_v56 = vmax.f32 %v212_v45, 0.0  ;;  %v277_v59 = vmax.f32 %v213_v47, 0.0  ;;  %v215_v61 = vadd.f32 %v601_v39, %v145_v51  ;;  %v351_v43 = vld [vmem:[%s1263_s5 + $0x170] sm:$0xff]  ;;  %v88_v51 = vld [vmem:[%s1261_s0 + $0x198] sm:$0xff] }
  0x43   :  { %v278_v60 = vmax.f32 %v214_v49, 0.0  ;;  %v216_v62 = vadd.f32 %v601_v39, %v146_v52  ;;  %v401_v2 = vadd.f32 %v337_v40, %v273_v53  ;;  %v402_v3 = vadd.f32 %v338_v42, %v274_v54  ;;  %v86_v49 = vld [vmem:[%s1261_s0 + $0x188] sm:$0xff] }
  0x44   :  { %v403_v4 = vadd.f32 %v339_v44, %v275_v55  ;;  %v404_v5 = vadd.f32 %v340_v46, %v276_v56  ;;  %v405_v9 = vadd.f32 %v341_v48, %v277_v59  ;;  %v279_v11 = vmax.f32 %v215_v61, 0.0  ;;  %v85_v44 = vld [vmem:[%s1261_s0 + $0x180] sm:$0xff]  ;;  %v352_v56 = vld [vmem:[%s1263_s5 + $0x178] sm:$0xff] }
  0x45   :  { %v406_v10 = vadd.f32 %v342_v50, %v278_v60  ;;  %v280_v12 = vmax.f32 %v216_v62, 0.0  ;;  %465 = vst [vmem:[%s1264_s6 + $0x100] sm:$0xff] %v401_v2  ;;  %466 = vst [vmem:[%s1264_s6 + $0x108] sm:$0xff] %v402_v3  ;;  %v147_v13 = vmul.f32 %v565_v21, %v77_v58  ;;  %v148_v14 = vmul.f32 %v565_v21, %v78_v63  ;;  %v87_v50 = vld [vmem:[%s1261_s0 + $0x190] sm:$0xff]  ;;  %v90_v58 = vld [vmem:[%s1261_s0 + $0x1a8] sm:$0xff] }
  0x46   :  { %467 = vst [vmem:[%s1264_s6 + $0x110] sm:$0xff] %v403_v4  ;;  %468 = vst [vmem:[%s1264_s6 + $0x118] sm:$0xff] %v404_v5  ;;  %v149_v15 = vmul.f32 %v565_v21, %v79_v0  ;;  %v150_v16 = vmul.f32 %v565_v21, %v80_v1  ;;  %v407_v19 = vadd.f32 %v343_v57, %v279_v11  ;;  %v89_v57 = vld [vmem:[%s1261_s0 + $0x1a0] sm:$0xff]  ;;  %v91_v3 = vld [vmem:[%s1261_s0 + $0x1b0] sm:$0xff] }
  0x47   :  { %469 = vst [vmem:[%s1264_s6 + $0x120] sm:$0xff] %v405_v9  ;;  %470 = vst [vmem:[%s1264_s6 + $0x128] sm:$0xff] %v406_v10  ;;  %v408_v20 = vadd.f32 %v344_v6, %v280_v12  ;;  %v151_v22 = vmul.f32 %v565_v21, %v81_v7  ;;  %v152_v23 = vmul.f32 %v565_v21, %v82_v8  ;;  %v92_v4 = vld [vmem:[%s1261_s0 + $0x1b8] sm:$0xff]  ;;  %v353_v10 = vld [vmem:[%s1263_s5 + $0x180] sm:$0xff] }
  0x48   :  { %v217_v24 = vadd.f32 %v601_v39, %v147_v13  ;;  %v218_v26 = vadd.f32 %v601_v39, %v148_v14  ;;  %v219_v28 = vadd.f32 %v601_v39, %v149_v15  ;;  %v220_v30 = vadd.f32 %v601_v39, %v150_v16  ;;  %471 = vst [vmem:[%s1264_s6 + $0x130] sm:$0xff] %v407_v19  ;;  %v354_v12 = vld [vmem:[%s1263_s5 + $0x188] sm:$0xff]  ;;  %v355_v14 = vld [vmem:[%s1263_s5 + $0x190] sm:$0xff]  ;;  %v356_v16 = vld [vmem:[%s1263_s5 + $0x198] sm:$0xff] }
  0x49   :  { %472 = vst [vmem:[%s1264_s6 + $0x138] sm:$0xff] %v408_v20  ;;  %v221_v32 = vadd.f32 %v601_v39, %v151_v22  ;;  %v222_v34 = vadd.f32 %v601_v39, %v152_v23  ;;  %v153_v36 = vmul.f32 %v565_v21, %v83_v17  ;;  %v154_v37 = vmul.f32 %v565_v21, %v84_v18  ;;  %v357_v18 = vld [vmem:[%s1263_s5 + $0x1a0] sm:$0xff]  ;;  %v358_v20 = vld [vmem:[%s1263_s5 + $0x1a8] sm:$0xff] }
  0x4a   :  { %v281_v38 = vmax.f32 %v217_v24, 0.0  ;;  %v282_v40 = vmax.f32 %v218_v26, 0.0  ;;  %v283_v41 = vmax.f32 %v219_v28, 0.0  ;;  %v284_v42 = vmax.f32 %v220_v30, 0.0  ;;  %v359_v28 = vld [vmem:[%s1263_s5 + $0x1b0] sm:$0xff] }
  0x4b   :  { %v285_v45 = vmax.f32 %v221_v32, 0.0  ;;  %v286_v46 = vmax.f32 %v222_v34, 0.0  ;;  %v223_v47 = vadd.f32 %v601_v39, %v153_v36  ;;  %v224_v48 = vadd.f32 %v601_v39, %v154_v37  ;;  %v94_v34 = vld [vmem:[%s1261_s0 + $0x1c8] sm:$0xff]  ;;  %v96_v36 = vld [vmem:[%s1261_s0 + $0x1d8] sm:$0xff] }
  0x4c   :  { %v409_v52 = vadd.f32 %v345_v25, %v281_v38  ;;  %v410_v53 = vadd.f32 %v346_v27, %v282_v40  ;;  %v411_v54 = vadd.f32 %v347_v29, %v283_v41  ;;  %v412_v55 = vadd.f32 %v348_v31, %v284_v42  ;;  %v93_v29 = vld [vmem:[%s1261_s0 + $0x1c0] sm:$0xff]  ;;  %v360_v42 = vld [vmem:[%s1263_s5 + $0x1b8] sm:$0xff] }
  0x4d   :  { %v413_v59 = vadd.f32 %v349_v33, %v285_v45  ;;  %v414_v60 = vadd.f32 %v350_v35, %v286_v46  ;;  %v287_v61 = vmax.f32 %v223_v47, 0.0  ;;  %v288_v62 = vmax.f32 %v224_v48, 0.0  ;;  %v95_v35 = vld [vmem:[%s1261_s0 + $0x1d0] sm:$0xff] }
  0x4e   :  { %473 = vst [vmem:[%s1264_s6 + $0x140] sm:$0xff] %v409_v52  ;;  %474 = vst [vmem:[%s1264_s6 + $0x148] sm:$0xff] %v410_v53  ;;  %v155_v63 = vmul.f32 %v565_v21, %v85_v44  ;;  %v156_v0 = vmul.f32 %v565_v21, %v86_v49  ;;  %v157_v1 = vmul.f32 %v565_v21, %v87_v50  ;;  %v98_v44 = vld [vmem:[%s1261_s0 + $0x1e8] sm:$0xff]  ;;  %v99_v53 = vld [vmem:[%s1261_s0 + $0x1f0] sm:$0xff] }
  0x4f   :  { %475 = vst [vmem:[%s1264_s6 + $0x150] sm:$0xff] %v411_v54  ;;  %476 = vst [vmem:[%s1264_s6 + $0x158] sm:$0xff] %v412_v55  ;;  %v158_v2 = vmul.f32 %v565_v21, %v88_v51  ;;  %v415_v5 = vadd.f32 %v351_v43, %v287_v61  ;;  %v416_v6 = vadd.f32 %v352_v56, %v288_v62  ;;  %v97_v43 = vld [vmem:[%s1261_s0 + $0x1e0] sm:$0xff]  ;;  %v100_v54 = vld [vmem:[%s1261_s0 + $0x1f8] sm:$0xff] }
  0x50   :  { %477 = vst [vmem:[%s1264_s6 + $0x160] sm:$0xff] %v413_v59  ;;  %478 = vst [vmem:[%s1264_s6 + $0x168] sm:$0xff] %v414_v60  ;;  %v159_v7 = vmul.f32 %v565_v21, %v89_v57  ;;  %v160_v8 = vmul.f32 %v565_v21, %v90_v58  ;;  %v225_v9 = vadd.f32 %v601_v39, %v155_v63  ;;  %v361_v60 = vld [vmem:[%s1263_s5 + $0x1c0] sm:$0xff] }
  0x51   :  { %v226_v11 = vadd.f32 %v601_v39, %v156_v0  ;;  %v227_v13 = vadd.f32 %v601_v39, %v157_v1  ;;  %v228_v15 = vadd.f32 %v601_v39, %v158_v2  ;;  %479 = vst [vmem:[%s1264_s6 + $0x170] sm:$0xff] %v415_v5  ;;  %480 = vst [vmem:[%s1264_s6 + $0x178] sm:$0xff] %v416_v6  ;;  %v362_v0 = vld [vmem:[%s1263_s5 + $0x1c8] sm:$0xff]  ;;  %v363_v1 = vld [vmem:[%s1263_s5 + $0x1d0] sm:$0xff] }
  0x52   :  { %v229_v17 = vadd.f32 %v601_v39, %v159_v7  ;;  %v230_v19 = vadd.f32 %v601_v39, %v160_v8  ;;  %v161_v22 = vmul.f32 %v565_v21, %v91_v3  ;;  %v162_v23 = vmul.f32 %v565_v21, %v92_v4  ;;  %v364_v2 = vld [vmem:[%s1263_s5 + $0x1d8] sm:$0xff] }
  0x53   :  { %v289_v24 = vmax.f32 %v225_v9, 0.0  ;;  %v290_v25 = vmax.f32 %v226_v11, 0.0  ;;  %v291_v26 = vmax.f32 %v227_v13, 0.0  ;;  %v292_v27 = vmax.f32 %v228_v15, 0.0  ;;  %v365_v11 = vld [vmem:[%s1263_s5 + $0x1e0] sm:$0xff] }
  0x54   :  { %v293_v30 = vmax.f32 %v229_v17, 0.0  ;;  %v294_v31 = vmax.f32 %v230_v19, 0.0  ;;  %v231_v32 = vadd.f32 %v601_v39, %v161_v22  ;;  %v232_v33 = vadd.f32 %v601_v39, %v162_v23  ;;  %v368_v22 = vld [vmem:[%s1263_s5 + $0x1f8] sm:$0xff] }
  0x55   :  { %v417_v37 = vadd.f32 %v353_v10, %v289_v24  ;;  %v418_v38 = vadd.f32 %v354_v12, %v290_v25  ;;  %v419_v40 = vadd.f32 %v355_v14, %v291_v26  ;;  %v420_v41 = vadd.f32 %v356_v16, %v292_v27  ;;  %v366_v12 = vld [vmem:[%s1263_s5 + $0x1e8] sm:$0xff] }
  0x56   :  { %v421_v45 = vadd.f32 %v357_v18, %v293_v30  ;;  %v422_v46 = vadd.f32 %v358_v20, %v294_v31  ;;  %v295_v47 = vmax.f32 %v231_v32, 0.0  ;;  %v296_v48 = vmax.f32 %v232_v33, 0.0  ;;  %v367_v20 = vld [vmem:[%s1263_s5 + $0x1f0] sm:$0xff] }
  0x57   :  { %481 = vst [vmem:[%s1264_s6 + $0x180] sm:$0xff] %v417_v37  ;;  %482 = vst [vmem:[%s1264_s6 + $0x188] sm:$0xff] %v418_v38  ;;  %v163_v49 = vmul.f32 %v565_v21, %v93_v29  ;;  %v164_v50 = vmul.f32 %v565_v21, %v94_v34  ;;  %v165_v51 = vmul.f32 %v565_v21, %v95_v35 }
  0x58   :  { %483 = vst [vmem:[%s1264_s6 + $0x190] sm:$0xff] %v419_v40  ;;  %484 = vst [vmem:[%s1264_s6 + $0x198] sm:$0xff] %v420_v41  ;;  %v166_v52 = vmul.f32 %v565_v21, %v96_v36  ;;  %v423_v55 = vadd.f32 %v359_v28, %v295_v47  ;;  %v424_v56 = vadd.f32 %v360_v42, %v296_v48 }
  0x59   :  { %485 = vst [vmem:[%s1264_s6 + $0x1a0] sm:$0xff] %v421_v45  ;;  %486 = vst [vmem:[%s1264_s6 + $0x1a8] sm:$0xff] %v422_v46  ;;  %v167_v57 = vmul.f32 %v565_v21, %v97_v43  ;;  %v168_v58 = vmul.f32 %v565_v21, %v98_v44  ;;  %v233_v59 = vadd.f32 %v601_v39, %v163_v49 }
  0x5a   :  { %v234_v61 = vadd.f32 %v601_v39, %v164_v50  ;;  %v235_v62 = vadd.f32 %v601_v39, %v165_v51  ;;  %v236_v63 = vadd.f32 %v601_v39, %v166_v52  ;;  %487 = vst [vmem:[%s1264_s6 + $0x1b0] sm:$0xff] %v423_v55  ;;  %488 = vst [vmem:[%s1264_s6 + $0x1b8] sm:$0xff] %v424_v56 }
  0x5b   :  { %v237_v3 = vadd.f32 %v601_v39, %v167_v57  ;;  %v238_v4 = vadd.f32 %v601_v39, %v168_v58  ;;  %v169_v5 = vmul.f32 %v565_v21, %v99_v53  ;;  %v170_v6 = vmul.f32 %v565_v21, %v100_v54 }
  0x5c   :  { %v297_v7 = vmax.f32 %v233_v59, 0.0  ;;  %v298_v8 = vmax.f32 %v234_v61, 0.0  ;;  %v299_v9 = vmax.f32 %v235_v62, 0.0  ;;  %v300_v10 = vmax.f32 %v236_v63, 0.0 }
  0x5d   :  { %v301_v13 = vmax.f32 %v237_v3, 0.0  ;;  %v302_v14 = vmax.f32 %v238_v4, 0.0  ;;  %v239_v15 = vadd.f32 %v601_v39, %v169_v5  ;;  %v240_v16 = vadd.f32 %v601_v39, %v170_v6 }
  0x5e   :  { %v425_v17 = vadd.f32 %v361_v60, %v297_v7  ;;  %v426_v21 = vadd.f32 %v362_v0, %v298_v8  ;;  %v427_v18 = vadd.f32 %v363_v1, %v299_v9  ;;  %v428_v19 = vadd.f32 %v364_v2, %v300_v10 }
  0x5f   :  { %v429_v23 = vadd.f32 %v365_v11, %v301_v13  ;;  %v430_v24 = vadd.f32 %v366_v12, %v302_v14  ;;  %v303_v25 = vmax.f32 %v239_v15, 0.0  ;;  %v304_v26 = vmax.f32 %v240_v16, 0.0 }
  0x60   :  { %489 = vst [vmem:[%s1264_s6 + $0x1c0] sm:$0xff] %v425_v17  ;;  %490 = vst [vmem:[%s1264_s6 + $0x1c8] sm:$0xff] %v426_v21 }
  0x61   :  { %491 = vst [vmem:[%s1264_s6 + $0x1d0] sm:$0xff] %v427_v18  ;;  %492 = vst [vmem:[%s1264_s6 + $0x1d8] sm:$0xff] %v428_v19  ;;  %v431_v39 = vadd.f32 %v367_v20, %v303_v25  ;;  %v432_v27 = vadd.f32 %v368_v22, %v304_v26 }
  0x62   :  { %493 = vst [vmem:[%s1264_s6 + $0x1e0] sm:$0xff] %v429_v23  ;;  %494 = vst [vmem:[%s1264_s6 + $0x1e8] sm:$0xff] %v430_v24 }
  0x63   :  { %495 = vst [vmem:[%s1264_s6 + $0x1f0] sm:$0xff] %v431_v39  ;;  %496 = vst [vmem:[%s1264_s6 + $0x1f8] sm:$0xff] %v432_v27 }

</bundles_post_ra>
